<compile_context>
chip_gen: v6e
topology: v6e:2x2x1
jax: 0.10.0
libtpu: 0.0.40
codegen_flags: <defaults>
</compile_context>

<pallas_src>
import jax
import jax.numpy as jnp
from jax import lax
from jax.experimental import pallas as pl
from jax.experimental.pallas import tpu as pltpu

# ---------------- small, self-consistent config ----------------
BATCH = 2
NUM_QUBITS = 8          # seq len AND raw input feature dim
CONTEXT_WINDOW = 1      # embed dim after quantum enhancement (forced to 1)
NUM_HEADS = 1
MEMORY_SIZE = 32        # LSTM hidden (scaled down from 1e6)
LSTM_LAYERS = 4
DEC_DIMS = (1024, 512, 256)


# ---------------- fused forward kernel ----------------
def _brain_kernel(x_ref, ent_ref, qs_ref, attn_ref,
                  wih0_ref, wih_ref, whh_ref, bl_ref,
                  w1_hbm, w2_hbm, w3_hbm, b1_ref, b2_ref, b3_ref,
                  out_ref,
                  seq_io, w1_v, w2_v, w3_v, dma_sem):
    B, S, _ = x_ref.shape
    H = whh_ref.shape[1]
    f32 = jnp.float32

    # Start streaming the bf16 MLP weights HBM->VMEM now; wait right before each matmul.
    cp1 = pltpu.make_async_copy(w1_hbm, w1_v, dma_sem.at[0]); cp1.start()
    cp2 = pltpu.make_async_copy(w2_hbm, w2_v, dma_sem.at[1]); cp2.start()
    cp3 = pltpu.make_async_copy(w3_hbm, w3_v, dma_sem.at[2]); cp3.start()

    # attention params: embed_dim == 1 -> every weight/bias is a scalar.
    # Read from SMEM before any DMA .wait() to keep scalar-load forwarding.
    wq = attn_ref[0]; wk = attn_ref[1]; wv = attn_ref[2]; wo = attn_ref[3]
    bq = attn_ref[4]; bk = attn_ref[5]; bv = attn_ref[6]; bo = attn_ref[7]

    # ---- quantum enhancement via associativity: (ent @ x) @ qs_col == ent @ (x @ qs_col) ----
    # v_red[b, j] = sum_k x[b, j, k] * qs[k]            (VPU multiply + lane reduce)
    v_red = jnp.sum(x_ref[...] * qs_ref[...], axis=-1)                       # (B, S)
    # enh_rows[b, i] = sum_j ent[i, j] * v_red[b, j]    (one tiny MXU matmul for both batches)
    enh_rows = lax.dot_general(v_red, ent_ref[...],
                               (((1,), (1,)), ((), ())),
                               preferred_element_type=f32)                   # (B, S)

    # ---- single-head attention, embed_dim = 1: all-VPU (no K=1 / N=1 MXU calls) ----
    xw0 = []
    for b in range(B):
        enh_row = enh_rows[b:b + 1, :]                                       # (1, S) lanes
        # column form computed directly with a VPU reduce (avoids any relayout/transpose)
        enh_col = jnp.sum(ent_ref[...] * v_red[b:b + 1, :],
                          axis=-1, keepdims=True)                            # (S, 1) sublanes
        q = enh_col * wq + bq                                                # (S, 1)
        k = enh_row * wk + bk                                                # (1, S)
        vv = enh_row * wv + bv                                               # (1, S)
        s = q * k                                                            # (S, S) outer product
        s = s - jnp.max(s, axis=-1, keepdims=True)
        p = jnp.exp(s)
        p = p / jnp.sum(p, axis=-1, keepdims=True)
        ctx = jnp.sum(p * vv, axis=-1, keepdims=True)                        # (S, 1)
        attn_b = ctx * wo + bo                                               # (S, 1)
        # LSTM layer-0 input projection (in_dim == 1): VPU broadcast outer product
        xw0.append(attn_b * wih0_ref[...])                                   # (S, 4H)

    # interleave batches t-major: row index = t*B + b
    xw0_all = jnp.stack(xw0, axis=1).reshape(B * S, 4 * H) + bl_ref[0]       # (B*S, 4H)

    # ---- 4-layer LSTM: batch chains merged per step, single sigmoid per step ----
    # init_params pre-scales the g-gate block of W_ih / W_hh / bias by 2, so
    # tanh(g_raw) == 2*sigmoid(2*g_raw) - 1 == 2*sig[g-block] - 1.
    for layer in range(LSTM_LAYERS):
        last = layer == LSTM_LAYERS - 1
        if layer == 0:
            xw_all = xw0_all
        else:
            xw_all = jnp.dot(seq_io[...], wih_ref[layer - 1],
                             preferred_element_type=f32) + bl_ref[layer]     # (B*S, 4H)
        whh_l = whh_ref[layer]                                               # (H, 4H)
        # TODO(synk): could keep whh_l resident in the MXU via pltpu.matmul_push_rhs/acc_lhs/pop.
        h = jnp.zeros((B, H), dtype=f32)
        c = jnp.zeros((B, H), dtype=f32)
        for t in range(S):                           # S = 8 serialized steps (static unroll)
            gates = xw_all[t * B:(t + 1) * B, :] + jnp.dot(
                h, whh_l, preferred_element_type=f32)                        # (B, 4H) = one vreg row
            sig = jax.nn.sigmoid(gates)              # single full-width EUP pass
            i_g = sig[:, 0 * H:1 * H]
            f_g = sig[:, 1 * H:2 * H]
            g_g = 2.0 * sig[:, 2 * H:3 * H] - 1.0    # == tanh(raw g)
            o_g = sig[:, 3 * H:4 * H]
            c = f_g * c + i_g * g_g
            h = o_g * jnp.tanh(c)
            if last:
                # final layer: store b-major (row b*S + t) so MLP/output slices are contiguous
                for b in range(B):
                    seq_io[b * S + t:b * S + t + 1, :] = h[b:b + 1, :]
            else:
                seq_io[t * B:(t + 1) * B, :] = h     # t-major (row t*B + b) for next-layer slicing

    mem = seq_io[...]                                                        # (B*S, H), b-major

    # ---- decision MLP: prefetched bf16 weights, fp32 accumulation ----
    cp1.wait()
    h1 = jnp.dot(mem.astype(jnp.bfloat16), w1_v[...],
                 preferred_element_type=f32) + b1_ref[...]
    h1 = jnp.maximum(h1, 0.0)
    cp2.wait()
    h2 = jnp.dot(h1.astype(jnp.bfloat16), w2_v[...],
                 preferred_element_type=f32) + b2_ref[...]
    h2 = jnp.maximum(h2, 0.0)
    cp3.wait()
    dec = jnp.dot(h2.astype(jnp.bfloat16), w3_v[...],
                  preferred_element_type=f32) + b3_ref[...]                  # (B*S, 256)

    for b in range(B):
        out_ref[b] = dec[b * S:(b + 1) * S, :]


# ---------------- wrapper ----------------
@jax.jit
def quantum_brain_forward(x, params):
    B, S, _ = x.shape
    H = MEMORY_SIZE
    d1, d2, d3 = DEC_DIMS
    vmem = lambda: pl.BlockSpec(memory_space=pltpu.MemorySpace.VMEM)
    return pl.pallas_call(
        _brain_kernel,
        out_shape=jax.ShapeDtypeStruct((B, S, d3), jnp.float32),
        in_specs=[vmem(), vmem(), vmem(),
                  pl.BlockSpec(memory_space=pltpu.MemorySpace.SMEM),   # attention scalars
                  vmem(), vmem(), vmem(), vmem(),
                  pl.BlockSpec(memory_space=pl.ANY),                   # w1 (bf16, prefetched)
                  pl.BlockSpec(memory_space=pl.ANY),                   # w2
                  pl.BlockSpec(memory_space=pl.ANY),                   # w3
                  vmem(), vmem(), vmem()],
        out_specs=vmem(),
        scratch_shapes=[pltpu.VMEM((B * S, H), jnp.float32),           # LSTM layer-IO scratch
                        pltpu.VMEM((H, d1), jnp.bfloat16),
                        pltpu.VMEM((d1, d2), jnp.bfloat16),
                        pltpu.VMEM((d2, d3), jnp.bfloat16),
                        pltpu.SemaphoreType.DMA((3,))],
    )(x, params["ent"], params["qs"], params["attn"],
      params["wih0"], params["wih_rest"], params["whh"], params["b_lstm"],
      params["w1"], params["w2"], params["w3"],
      params["b1"], params["b2"], params["b3"])


# ---------------- parameter init (deterministic, synthetic) ----------------
def init_params(key):
    ks = iter(jax.random.split(key, 16))
    rnd = lambda shape, s=0.1: (s * jax.random.normal(next(ks), shape)).astype(jnp.float32)
    H, Nq = MEMORY_SIZE, NUM_QUBITS
    d1, d2, d3 = DEC_DIMS
    # g-gate block (cols 2H:3H, gate order i,f,g,o) pre-scaled by 2 so the kernel computes
    # tanh(g) = 2*sigmoid(2g) - 1 with a single full-width sigmoid per step.
    g_scale = jnp.concatenate([jnp.ones(2 * H), 2.0 * jnp.ones(H),
                               jnp.ones(H)]).astype(jnp.float32)
    return {
        # quantum buffers (shapes from __init__: eye(Nq), complex64 zeros(Nq) -> real part only)
        "ent": rnd((Nq, Nq), 0.2) + jnp.eye(Nq, dtype=jnp.float32),
        "qs": rnd((1, Nq), 0.2),
        # attention (embed_dim = 1): [wq, wk, wv, wo, bq, bk, bv, bo] as scalars
        "attn": rnd((8,), 0.1),
        # LSTM: W_ih / W_hh pre-transposed to (in, 4H), gate order i,f,g,o; bias = b_ih + b_hh
        "wih0": rnd((1, 4 * H)) * g_scale,                        # layer 0 input dim = 1
        "wih_rest": rnd((LSTM_LAYERS - 1, H, 4 * H)) * g_scale,   # layers 1..3
        "whh": rnd((LSTM_LAYERS, H, 4 * H)) * g_scale,
        "b_lstm": rnd((LSTM_LAYERS, 1, 4 * H)) * g_scale,
        # decision MLP: H -> 1024 -> 512 -> 256 (weights pre-transposed, stored bf16)
        "w1": rnd((H, d1), 0.05).astype(jnp.bfloat16), "b1": rnd((1, d1)),
        "w2": rnd((d1, d2), 0.05).astype(jnp.bfloat16), "b2": rnd((1, d2)),
        "w3": rnd((d2, d3), 0.05).astype(jnp.bfloat16), "b3": rnd((1, d3)),
    }


# ---------------- pure-JAX fp32 reference (standard LSTM / module semantics) ----------------
def reference_forward(x, params):
    f32 = jnp.float32
    H = MEMORY_SIZE
    ent = params["ent"]; qs = params["qs"]
    a = params["attn"]
    wq, wk, wv, wo, bq, bk, bv, bo = [a[i] for i in range(8)]
    # undo the g-gate pre-scale to recover the raw LSTM weights
    inv = jnp.concatenate([jnp.ones(2 * H), 0.5 * jnp.ones(H), jnp.ones(H)]).astype(f32)
    wih0 = params["wih0"] * inv
    wih_rest = params["wih_rest"] * inv
    whh = params["whh"] * inv
    bl = params["b_lstm"] * inv
    w1 = params["w1"].astype(f32); w2 = params["w2"].astype(f32); w3 = params["w3"].astype(f32)
    outs = []
    for b in range(x.shape[0]):
        xb = x[b].astype(f32)
        enh = (ent @ xb) @ qs.T                                   # module order: (ent@x)@qs_col
        q = enh * wq + bq; k = enh * wk + bk; v = enh * wv + bv
        p = jax.nn.softmax(q @ k.T, axis=-1)
        seq = (p @ v) * wo + bo                                   # (S, 1)
        for layer in range(LSTM_LAYERS):
            wih = wih0 if layer == 0 else wih_rest[layer - 1]
            wh = whh[layer]; bb = bl[layer]
            h = jnp.zeros((1, H), f32); c = jnp.zeros((1, H), f32)
            hs = []
            for t in range(seq.shape[0]):
                g = seq[t:t + 1] @ wih + h @ wh + bb
                i_g = jax.nn.sigmoid(g[:, :H])
                f_g = jax.nn.sigmoid(g[:, H:2 * H])
                g_g = jnp.tanh(g[:, 2 * H:3 * H])
                o_g = jax.nn.sigmoid(g[:, 3 * H:])
                c = f_g * c + i_g * g_g
                h = o_g * jnp.tanh(c)
                hs.append(h)
            seq = jnp.concatenate(hs, axis=0)
        h1 = jnp.maximum(seq @ w1 + params["b1"], 0.0)
        h2 = jnp.maximum(h1 @ w2 + params["b2"], 0.0)
        outs.append(h2 @ w3 + params["b3"])
    return jnp.stack(outs, axis=0)


if __name__ == "__main__":
    key = jax.random.PRNGKey(0)
    k_param, k_x = jax.random.split(key)
    params = init_params(k_param)
    # input: (batch, seq_len=num_qubits, feat=num_qubits) -- required by the
    # entanglement_matrix @ x and x @ quantum_state[:, None] matmuls.
    x = jax.random.normal(k_x, (BATCH, NUM_QUBITS, NUM_QUBITS), dtype=jnp.float32)

    out = jax.block_until_ready(quantum_brain_forward(x, params))

    assert out.shape == (BATCH, NUM_QUBITS, DEC_DIMS[-1]), out.shape
    assert bool(jnp.all(jnp.isfinite(out))), "non-finite output"

    ref = reference_forward(x, params)
    max_err = float(jnp.max(jnp.abs(out - ref)))
    assert max_err < 5e-2, f"kernel vs fp32 reference max |err| = {max_err}"

    print("KERNEL_OK")
</pallas_src>

<mosaic_0001>
module attributes {stable_mosaic.version = 11 : i64} {
  func.func @_brain_kernel(%arg0: memref<2x8x8xf32, #tpu.memory_space<vmem>>, %arg1: memref<8x8xf32, #tpu.memory_space<vmem>>, %arg2: memref<1x8xf32, #tpu.memory_space<vmem>>, %arg3: memref<8xf32, #tpu.memory_space<smem>>, %arg4: memref<1x128xf32, #tpu.memory_space<vmem>>, %arg5: memref<3x32x128xf32, #tpu.memory_space<vmem>>, %arg6: memref<4x32x128xf32, #tpu.memory_space<vmem>>, %arg7: memref<4x1x128xf32, #tpu.memory_space<vmem>>, %arg8: memref<32x1024xbf16, #tpu.memory_space<any>>, %arg9: memref<1024x512xbf16, #tpu.memory_space<any>>, %arg10: memref<512x256xbf16, #tpu.memory_space<any>>, %arg11: memref<1x1024xf32, #tpu.memory_space<vmem>>, %arg12: memref<1x512xf32, #tpu.memory_space<vmem>>, %arg13: memref<1x256xf32, #tpu.memory_space<vmem>>, %arg14: memref<2x8x256xf32, #tpu.memory_space<vmem>>, %arg15: memref<16x32xf32, #tpu.memory_space<vmem>>, %arg16: memref<32x1024xbf16, #tpu.memory_space<vmem>>, %arg17: memref<1024x512xbf16, #tpu.memory_space<vmem>>, %arg18: memref<512x256xbf16, #tpu.memory_space<vmem>>, %arg19: memref<3x!tpu.dma_semaphore, #tpu.memory_space<semaphore_mem>>) attributes {dimension_semantics = [], scalar_prefetch = 0 : i64, scratch_operands = 5 : i64, tpu.core_type = #tpu.core_type<tc>} {
    %c0_i32 = arith.constant 0 : i32
    %0 = tpu.memref_slice %arg19[%c0_i32] : memref<3x!tpu.dma_semaphore, #tpu.memory_space<semaphore_mem>> -> memref<1x!tpu.dma_semaphore, #tpu.memory_space<semaphore_mem>>
    %1 = tpu.memref_squeeze %0 : memref<1x!tpu.dma_semaphore, #tpu.memory_space<semaphore_mem>> -> memref<!tpu.dma_semaphore, #tpu.memory_space<semaphore_mem>>
    tpu.enqueue_dma source(%arg8 : memref<32x1024xbf16, #tpu.memory_space<any>>) target(%arg16 : memref<32x1024xbf16, #tpu.memory_space<vmem>>) target_semaphore(%1 : memref<!tpu.dma_semaphore, #tpu.memory_space<semaphore_mem>>)
    %c1_i32 = arith.constant 1 : i32
    %2 = tpu.memref_slice %arg19[%c1_i32] : memref<3x!tpu.dma_semaphore, #tpu.memory_space<semaphore_mem>> -> memref<1x!tpu.dma_semaphore, #tpu.memory_space<semaphore_mem>>
    %3 = tpu.memref_squeeze %2 : memref<1x!tpu.dma_semaphore, #tpu.memory_space<semaphore_mem>> -> memref<!tpu.dma_semaphore, #tpu.memory_space<semaphore_mem>>
    tpu.enqueue_dma source(%arg9 : memref<1024x512xbf16, #tpu.memory_space<any>>) target(%arg17 : memref<1024x512xbf16, #tpu.memory_space<vmem>>) target_semaphore(%3 : memref<!tpu.dma_semaphore, #tpu.memory_space<semaphore_mem>>)
    %c2_i32 = arith.constant 2 : i32
    %4 = tpu.memref_slice %arg19[%c2_i32] : memref<3x!tpu.dma_semaphore, #tpu.memory_space<semaphore_mem>> -> memref<1x!tpu.dma_semaphore, #tpu.memory_space<semaphore_mem>>
    %5 = tpu.memref_squeeze %4 : memref<1x!tpu.dma_semaphore, #tpu.memory_space<semaphore_mem>> -> memref<!tpu.dma_semaphore, #tpu.memory_space<semaphore_mem>>
    tpu.enqueue_dma source(%arg10 : memref<512x256xbf16, #tpu.memory_space<any>>) target(%arg18 : memref<512x256xbf16, #tpu.memory_space<vmem>>) target_semaphore(%5 : memref<!tpu.dma_semaphore, #tpu.memory_space<semaphore_mem>>)
    %c0 = arith.constant 0 : index
    %6 = memref.load %arg3[%c0] : memref<8xf32, #tpu.memory_space<smem>>
    %c1 = arith.constant 1 : index
    %7 = memref.load %arg3[%c1] : memref<8xf32, #tpu.memory_space<smem>>
    %c2 = arith.constant 2 : index
    %8 = memref.load %arg3[%c2] : memref<8xf32, #tpu.memory_space<smem>>
    %c3 = arith.constant 3 : index
    %9 = memref.load %arg3[%c3] : memref<8xf32, #tpu.memory_space<smem>>
    %c4 = arith.constant 4 : index
    %10 = memref.load %arg3[%c4] : memref<8xf32, #tpu.memory_space<smem>>
    %c5 = arith.constant 5 : index
    %11 = memref.load %arg3[%c5] : memref<8xf32, #tpu.memory_space<smem>>
    %c6 = arith.constant 6 : index
    %12 = memref.load %arg3[%c6] : memref<8xf32, #tpu.memory_space<smem>>
    %c7 = arith.constant 7 : index
    %13 = memref.load %arg3[%c7] : memref<8xf32, #tpu.memory_space<smem>>
    %c0_0 = arith.constant 0 : index
    %c0_1 = arith.constant 0 : index
    %c0_2 = arith.constant 0 : index
    %14 = vector.load %arg0[%c0_0, %c0_1, %c0_2] : memref<2x8x8xf32, #tpu.memory_space<vmem>>, vector<2x8x8xf32>
    %c0_3 = arith.constant 0 : index
    %c0_4 = arith.constant 0 : index
    %15 = vector.load %arg2[%c0_3, %c0_4] : memref<1x8xf32, #tpu.memory_space<vmem>>, vector<1x8xf32>
    %16 = vector.shape_cast %15 : vector<1x8xf32> to vector<1x1x8xf32>
    %17 = vector.broadcast %16 : vector<1x1x8xf32> to vector<2x8x8xf32>
    %18 = arith.mulf %14, %17 : vector<2x8x8xf32>
    %cst = arith.constant dense<0.000000e+00> : vector<2x8xf32>
    %19 = vector.multi_reduction <add>, %18, %cst [2] : vector<2x8x8xf32> to vector<2x8xf32>
    %c0_5 = arith.constant 0 : index
    %c0_6 = arith.constant 0 : index
    %20 = vector.load %arg1[%c0_5, %c0_6] : memref<8x8xf32, #tpu.memory_space<vmem>>, vector<8x8xf32>
    %cst_7 = arith.constant dense<0.000000e+00> : vector<2x8xf32>
    %21 = tpu.matmul %19, %20, %cst_7 {dimension_numbers = #tpu.dot_dimension_numbers<[1], [1], [0], [0], [0, 0, 1, 0], [], []>} : vector<2x8xf32>, vector<8x8xf32>, vector<2x8xf32> -> vector<2x8xf32>
    %22 = vector.extract_strided_slice %21 {offsets = [0, 0], sizes = [1, 8], strides = [1, 1]} : vector<2x8xf32> to vector<1x8xf32>
    %c0_8 = arith.constant 0 : index
    %c0_9 = arith.constant 0 : index
    %23 = vector.load %arg1[%c0_8, %c0_9] : memref<8x8xf32, #tpu.memory_space<vmem>>, vector<8x8xf32>
    %24 = vector.extract_strided_slice %19 {offsets = [0, 0], sizes = [1, 8], strides = [1, 1]} : vector<2x8xf32> to vector<1x8xf32>
    %25 = vector.broadcast %24 : vector<1x8xf32> to vector<8x8xf32>
    %26 = arith.mulf %23, %25 : vector<8x8xf32>
    %cst_10 = arith.constant dense<0.000000e+00> : vector<8xf32>
    %27 = vector.multi_reduction <add>, %26, %cst_10 [1] : vector<8x8xf32> to vector<8xf32>
    %28 = vector.shape_cast %27 : vector<8xf32> to vector<8x1xf32>
    %29 = vector.broadcast %6 : f32 to vector<8x1xf32>
    %30 = arith.mulf %28, %29 : vector<8x1xf32>
    %31 = vector.broadcast %10 : f32 to vector<8x1xf32>
    %32 = arith.addf %30, %31 : vector<8x1xf32>
    %33 = vector.broadcast %7 : f32 to vector<1x8xf32>
    %34 = arith.mulf %22, %33 : vector<1x8xf32>
    %35 = vector.broadcast %11 : f32 to vector<1x8xf32>
    %36 = arith.addf %34, %35 : vector<1x8xf32>
    %37 = vector.broadcast %8 : f32 to vector<1x8xf32>
    %38 = arith.mulf %22, %37 : vector<1x8xf32>
    %39 = vector.broadcast %12 : f32 to vector<1x8xf32>
    %40 = arith.addf %38, %39 : vector<1x8xf32>
    %41 = vector.broadcast %32 : vector<8x1xf32> to vector<8x8xf32>
    %42 = vector.broadcast %36 : vector<1x8xf32> to vector<8x8xf32>
    %43 = arith.mulf %41, %42 : vector<8x8xf32>
    %cst_11 = arith.constant dense<0xFF800000> : vector<8xf32>
    %44 = vector.multi_reduction <maximumf>, %43, %cst_11 [1] : vector<8x8xf32> to vector<8xf32>
    %45 = vector.shape_cast %44 : vector<8xf32> to vector<8x1xf32>
    %46 = vector.broadcast %45 : vector<8x1xf32> to vector<8x8xf32>
    %47 = arith.subf %43, %46 : vector<8x8xf32>
    %48 = math.exp %47 : vector<8x8xf32>
    %cst_12 = arith.constant dense<0.000000e+00> : vector<8xf32>
    %49 = vector.multi_reduction <add>, %48, %cst_12 [1] : vector<8x8xf32> to vector<8xf32>
    %50 = vector.shape_cast %49 : vector<8xf32> to vector<8x1xf32>
    %51 = vector.broadcast %50 : vector<8x1xf32> to vector<8x8xf32>
    %52 = arith.divf %48, %51 : vector<8x8xf32>
    %53 = vector.broadcast %40 : vector<1x8xf32> to vector<8x8xf32>
    %54 = arith.mulf %52, %53 : vector<8x8xf32>
    %cst_13 = arith.constant dense<0.000000e+00> : vector<8xf32>
    %55 = vector.multi_reduction <add>, %54, %cst_13 [1] : vector<8x8xf32> to vector<8xf32>
    %56 = vector.shape_cast %55 : vector<8xf32> to vector<8x1xf32>
    %57 = vector.broadcast %9 : f32 to vector<8x1xf32>
    %58 = arith.mulf %56, %57 : vector<8x1xf32>
    %59 = vector.broadcast %13 : f32 to vector<8x1xf32>
    %60 = arith.addf %58, %59 : vector<8x1xf32>
    %c0_14 = arith.constant 0 : index
    %c0_15 = arith.constant 0 : index
    %61 = vector.load %arg4[%c0_14, %c0_15] : memref<1x128xf32, #tpu.memory_space<vmem>>, vector<1x128xf32>
    %62 = vector.broadcast %60 : vector<8x1xf32> to vector<8x128xf32>
    %63 = vector.broadcast %61 : vector<1x128xf32> to vector<8x128xf32>
    %64 = arith.mulf %62, %63 : vector<8x128xf32>
    %65 = vector.extract_strided_slice %21 {offsets = [1, 0], sizes = [1, 8], strides = [1, 1]} : vector<2x8xf32> to vector<1x8xf32>
    %c0_16 = arith.constant 0 : index
    %c0_17 = arith.constant 0 : index
    %66 = vector.load %arg1[%c0_16, %c0_17] : memref<8x8xf32, #tpu.memory_space<vmem>>, vector<8x8xf32>
    %67 = vector.extract_strided_slice %19 {offsets = [1, 0], sizes = [1, 8], strides = [1, 1]} : vector<2x8xf32> to vector<1x8xf32>
    %68 = vector.broadcast %67 : vector<1x8xf32> to vector<8x8xf32>
    %69 = arith.mulf %66, %68 : vector<8x8xf32>
    %cst_18 = arith.constant dense<0.000000e+00> : vector<8xf32>
    %70 = vector.multi_reduction <add>, %69, %cst_18 [1] : vector<8x8xf32> to vector<8xf32>
    %71 = vector.shape_cast %70 : vector<8xf32> to vector<8x1xf32>
    %72 = vector.broadcast %6 : f32 to vector<8x1xf32>
    %73 = arith.mulf %71, %72 : vector<8x1xf32>
    %74 = vector.broadcast %10 : f32 to vector<8x1xf32>
    %75 = arith.addf %73, %74 : vector<8x1xf32>
    %76 = vector.broadcast %7 : f32 to vector<1x8xf32>
    %77 = arith.mulf %65, %76 : vector<1x8xf32>
    %78 = vector.broadcast %11 : f32 to vector<1x8xf32>
    %79 = arith.addf %77, %78 : vector<1x8xf32>
    %80 = vector.broadcast %8 : f32 to vector<1x8xf32>
    %81 = arith.mulf %65, %80 : vector<1x8xf32>
    %82 = vector.broadcast %12 : f32 to vector<1x8xf32>
    %83 = arith.addf %81, %82 : vector<1x8xf32>
    %84 = vector.broadcast %75 : vector<8x1xf32> to vector<8x8xf32>
    %85 = vector.broadcast %79 : vector<1x8xf32> to vector<8x8xf32>
    %86 = arith.mulf %84, %85 : vector<8x8xf32>
    %cst_19 = arith.constant dense<0xFF800000> : vector<8xf32>
    %87 = vector.multi_reduction <maximumf>, %86, %cst_19 [1] : vector<8x8xf32> to vector<8xf32>
    %88 = vector.shape_cast %87 : vector<8xf32> to vector<8x1xf32>
    %89 = vector.broadcast %88 : vector<8x1xf32> to vector<8x8xf32>
    %90 = arith.subf %86, %89 : vector<8x8xf32>
    %91 = math.exp %90 : vector<8x8xf32>
    %cst_20 = arith.constant dense<0.000000e+00> : vector<8xf32>
    %92 = vector.multi_reduction <add>, %91, %cst_20 [1] : vector<8x8xf32> to vector<8xf32>
    %93 = vector.shape_cast %92 : vector<8xf32> to vector<8x1xf32>
    %94 = vector.broadcast %93 : vector<8x1xf32> to vector<8x8xf32>
    %95 = arith.divf %91, %94 : vector<8x8xf32>
    %96 = vector.broadcast %83 : vector<1x8xf32> to vector<8x8xf32>
    %97 = arith.mulf %95, %96 : vector<8x8xf32>
    %cst_21 = arith.constant dense<0.000000e+00> : vector<8xf32>
    %98 = vector.multi_reduction <add>, %97, %cst_21 [1] : vector<8x8xf32> to vector<8xf32>
    %99 = vector.shape_cast %98 : vector<8xf32> to vector<8x1xf32>
    %100 = vector.broadcast %9 : f32 to vector<8x1xf32>
    %101 = arith.mulf %99, %100 : vector<8x1xf32>
    %102 = vector.broadcast %13 : f32 to vector<8x1xf32>
    %103 = arith.addf %101, %102 : vector<8x1xf32>
    %c0_22 = arith.constant 0 : index
    %c0_23 = arith.constant 0 : index
    %104 = vector.load %arg4[%c0_22, %c0_23] : memref<1x128xf32, #tpu.memory_space<vmem>>, vector<1x128xf32>
    %105 = vector.broadcast %103 : vector<8x1xf32> to vector<8x128xf32>
    %106 = vector.broadcast %104 : vector<1x128xf32> to vector<8x128xf32>
    %107 = arith.mulf %105, %106 : vector<8x128xf32>
    %108 = vector.shape_cast %64 : vector<8x128xf32> to vector<8x1x128xf32>
    %109 = vector.shape_cast %107 : vector<8x128xf32> to vector<8x1x128xf32>
    %110 = tpu.concatenate %108, %109 in 1 : vector<8x1x128xf32>, vector<8x1x128xf32> -> vector<8x2x128xf32>
    %111 = vector.shape_cast %110 : vector<8x2x128xf32> to vector<16x128xf32>
    %c0_24 = arith.constant 0 : index
    %c0_25 = arith.constant 0 : index
    %c0_26 = arith.constant 0 : index
    %112 = vector.load %arg7[%c0_24, %c0_25, %c0_26] : memref<4x1x128xf32, #tpu.memory_space<vmem>>, vector<1x1x128xf32>
    %113 = vector.shape_cast %112 : vector<1x1x128xf32> to vector<1x128xf32>
    %114 = vector.broadcast %113 : vector<1x128xf32> to vector<16x128xf32>
    %115 = arith.addf %111, %114 : vector<16x128xf32>
    %c0_27 = arith.constant 0 : index
    %c0_28 = arith.constant 0 : index
    %c0_29 = arith.constant 0 : index
    %116 = vector.load %arg6[%c0_27, %c0_28, %c0_29] : memref<4x32x128xf32, #tpu.memory_space<vmem>>, vector<1x32x128xf32>
    %117 = vector.shape_cast %116 : vector<1x32x128xf32> to vector<32x128xf32>
    %cst_30 = arith.constant 0.000000e+00 : f32
    %118 = vector.broadcast %cst_30 : f32 to vector<2x32xf32>
    %cst_31 = arith.constant 0.000000e+00 : f32
    %119 = vector.broadcast %cst_31 : f32 to vector<2x32xf32>
    %120 = vector.extract_strided_slice %115 {offsets = [0, 0], sizes = [2, 128], strides = [1, 1]} : vector<16x128xf32> to vector<2x128xf32>
    %cst_32 = arith.constant dense<0.000000e+00> : vector<2x128xf32>
    %121 = tpu.matmul %118, %117, %cst_32 {dimension_numbers = #tpu.dot_dimension_numbers<[1], [0], [0], [1], [0, 0, 1, 1], [], []>} : vector<2x32xf32>, vector<32x128xf32>, vector<2x128xf32> -> vector<2x128xf32>
    %122 = arith.addf %120, %121 : vector<2x128xf32>
    %123 = arith.negf %122 : vector<2x128xf32>
    %124 = math.exp %123 : vector<2x128xf32>
    %cst_33 = arith.constant 1.000000e+00 : f32
    %125 = vector.broadcast %cst_33 : f32 to vector<2x128xf32>
    %126 = arith.addf %125, %124 : vector<2x128xf32>
    %127 = arith.divf %125, %126 : vector<2x128xf32>
    %128 = vector.extract_strided_slice %127 {offsets = [0, 0], sizes = [2, 32], strides = [1, 1]} : vector<2x128xf32> to vector<2x32xf32>
    %129 = vector.extract_strided_slice %127 {offsets = [0, 32], sizes = [2, 32], strides = [1, 1]} : vector<2x128xf32> to vector<2x32xf32>
    %130 = vector.extract_strided_slice %127 {offsets = [0, 64], sizes = [2, 32], strides = [1, 1]} : vector<2x128xf32> to vector<2x32xf32>
    %cst_34 = arith.constant 2.000000e+00 : f32
    %131 = vector.broadcast %cst_34 : f32 to vector<2x32xf32>
    %132 = arith.mulf %131, %130 : vector<2x32xf32>
    %cst_35 = arith.constant 1.000000e+00 : f32
    %133 = vector.broadcast %cst_35 : f32 to vector<2x32xf32>
    %134 = arith.subf %132, %133 : vector<2x32xf32>
    %135 = vector.extract_strided_slice %127 {offsets = [0, 96], sizes = [2, 32], strides = [1, 1]} : vector<2x128xf32> to vector<2x32xf32>
    %136 = arith.mulf %129, %119 : vector<2x32xf32>
    %137 = arith.mulf %128, %134 : vector<2x32xf32>
    %138 = arith.addf %136, %137 : vector<2x32xf32>
    %139 = math.tanh %138 : vector<2x32xf32>
    %140 = arith.mulf %135, %139 : vector<2x32xf32>
    %c0_36 = arith.constant 0 : index
    %c0_37 = arith.constant 0 : index
    %141 = vector.load %arg15[%c0_36, %c0_37] : memref<16x32xf32, #tpu.memory_space<vmem>>, vector<2x32xf32>
    tpu.vector_store %arg15[%c0_36, %c0_37], %140 {strides = array<i32>} : memref<16x32xf32, #tpu.memory_space<vmem>>, vector<2x32xf32>,
    %142 = vector.extract_strided_slice %115 {offsets = [2, 0], sizes = [2, 128], strides = [1, 1]} : vector<16x128xf32> to vector<2x128xf32>
    %cst_38 = arith.constant dense<0.000000e+00> : vector<2x128xf32>
    %143 = tpu.matmul %140, %117, %cst_38 {dimension_numbers = #tpu.dot_dimension_numbers<[1], [0], [0], [1], [0, 0, 1, 1], [], []>} : vector<2x32xf32>, vector<32x128xf32>, vector<2x128xf32> -> vector<2x128xf32>
    %144 = arith.addf %142, %143 : vector<2x128xf32>
    %145 = arith.negf %144 : vector<2x128xf32>
    %146 = math.exp %145 : vector<2x128xf32>
    %cst_39 = arith.constant 1.000000e+00 : f32
    %147 = vector.broadcast %cst_39 : f32 to vector<2x128xf32>
    %148 = arith.addf %147, %146 : vector<2x128xf32>
    %149 = arith.divf %147, %148 : vector<2x128xf32>
    %150 = vector.extract_strided_slice %149 {offsets = [0, 0], sizes = [2, 32], strides = [1, 1]} : vector<2x128xf32> to vector<2x32xf32>
    %151 = vector.extract_strided_slice %149 {offsets = [0, 32], sizes = [2, 32], strides = [1, 1]} : vector<2x128xf32> to vector<2x32xf32>
    %152 = vector.extract_strided_slice %149 {offsets = [0, 64], sizes = [2, 32], strides = [1, 1]} : vector<2x128xf32> to vector<2x32xf32>
    %cst_40 = arith.constant 2.000000e+00 : f32
    %153 = vector.broadcast %cst_40 : f32 to vector<2x32xf32>
    %154 = arith.mulf %153, %152 : vector<2x32xf32>
    %cst_41 = arith.constant 1.000000e+00 : f32
    %155 = vector.broadcast %cst_41 : f32 to vector<2x32xf32>
    %156 = arith.subf %154, %155 : vector<2x32xf32>
    %157 = vector.extract_strided_slice %149 {offsets = [0, 96], sizes = [2, 32], strides = [1, 1]} : vector<2x128xf32> to vector<2x32xf32>
    %158 = arith.mulf %151, %138 : vector<2x32xf32>
    %159 = arith.mulf %150, %156 : vector<2x32xf32>
    %160 = arith.addf %158, %159 : vector<2x32xf32>
    %161 = math.tanh %160 : vector<2x32xf32>
    %162 = arith.mulf %157, %161 : vector<2x32xf32>
    %c2_42 = arith.constant 2 : index
    %c0_43 = arith.constant 0 : index
    %163 = vector.load %arg15[%c2_42, %c0_43] : memref<16x32xf32, #tpu.memory_space<vmem>>, vector<2x32xf32>
    tpu.vector_store %arg15[%c2_42, %c0_43], %162 {strides = array<i32>} : memref<16x32xf32, #tpu.memory_space<vmem>>, vector<2x32xf32>,
    %164 = vector.extract_strided_slice %115 {offsets = [4, 0], sizes = [2, 128], strides = [1, 1]} : vector<16x128xf32> to vector<2x128xf32>
    %cst_44 = arith.constant dense<0.000000e+00> : vector<2x128xf32>
    %165 = tpu.matmul %162, %117, %cst_44 {dimension_numbers = #tpu.dot_dimension_numbers<[1], [0], [0], [1], [0, 0, 1, 1], [], []>} : vector<2x32xf32>, vector<32x128xf32>, vector<2x128xf32> -> vector<2x128xf32>
    %166 = arith.addf %164, %165 : vector<2x128xf32>
    %167 = arith.negf %166 : vector<2x128xf32>
    %168 = math.exp %167 : vector<2x128xf32>
    %cst_45 = arith.constant 1.000000e+00 : f32
    %169 = vector.broadcast %cst_45 : f32 to vector<2x128xf32>
    %170 = arith.addf %169, %168 : vector<2x128xf32>
    %171 = arith.divf %169, %170 : vector<2x128xf32>
    %172 = vector.extract_strided_slice %171 {offsets = [0, 0], sizes = [2, 32], strides = [1, 1]} : vector<2x128xf32> to vector<2x32xf32>
    %173 = vector.extract_strided_slice %171 {offsets = [0, 32], sizes = [2, 32], strides = [1, 1]} : vector<2x128xf32> to vector<2x32xf32>
    %174 = vector.extract_strided_slice %171 {offsets = [0, 64], sizes = [2, 32], strides = [1, 1]} : vector<2x128xf32> to vector<2x32xf32>
    %cst_46 = arith.constant 2.000000e+00 : f32
    %175 = vector.broadcast %cst_46 : f32 to vector<2x32xf32>
    %176 = arith.mulf %175, %174 : vector<2x32xf32>
    %cst_47 = arith.constant 1.000000e+00 : f32
    %177 = vector.broadcast %cst_47 : f32 to vector<2x32xf32>
    %178 = arith.subf %176, %177 : vector<2x32xf32>
    %179 = vector.extract_strided_slice %171 {offsets = [0, 96], sizes = [2, 32], strides = [1, 1]} : vector<2x128xf32> to vector<2x32xf32>
    %180 = arith.mulf %173, %160 : vector<2x32xf32>
    %181 = arith.mulf %172, %178 : vector<2x32xf32>
    %182 = arith.addf %180, %181 : vector<2x32xf32>
    %183 = math.tanh %182 : vector<2x32xf32>
    %184 = arith.mulf %179, %183 : vector<2x32xf32>
    %c4_48 = arith.constant 4 : index
    %c0_49 = arith.constant 0 : index
    %185 = vector.load %arg15[%c4_48, %c0_49] : memref<16x32xf32, #tpu.memory_space<vmem>>, vector<2x32xf32>
    tpu.vector_store %arg15[%c4_48, %c0_49], %184 {strides = array<i32>} : memref<16x32xf32, #tpu.memory_space<vmem>>, vector<2x32xf32>,
    %186 = vector.extract_strided_slice %115 {offsets = [6, 0], sizes = [2, 128], strides = [1, 1]} : vector<16x128xf32> to vector<2x128xf32>
    %cst_50 = arith.constant dense<0.000000e+00> : vector<2x128xf32>
    %187 = tpu.matmul %184, %117, %cst_50 {dimension_numbers = #tpu.dot_dimension_numbers<[1], [0], [0], [1], [0, 0, 1, 1], [], []>} : vector<2x32xf32>, vector<32x128xf32>, vector<2x128xf32> -> vector<2x128xf32>
    %188 = arith.addf %186, %187 : vector<2x128xf32>
    %189 = arith.negf %188 : vector<2x128xf32>
    %190 = math.exp %189 : vector<2x128xf32>
    %cst_51 = arith.constant 1.000000e+00 : f32
    %191 = vector.broadcast %cst_51 : f32 to vector<2x128xf32>
    %192 = arith.addf %191, %190 : vector<2x128xf32>
    %193 = arith.divf %191, %192 : vector<2x128xf32>
    %194 = vector.extract_strided_slice %193 {offsets = [0, 0], sizes = [2, 32], strides = [1, 1]} : vector<2x128xf32> to vector<2x32xf32>
    %195 = vector.extract_strided_slice %193 {offsets = [0, 32], sizes = [2, 32], strides = [1, 1]} : vector<2x128xf32> to vector<2x32xf32>
    %196 = vector.extract_strided_slice %193 {offsets = [0, 64], sizes = [2, 32], strides = [1, 1]} : vector<2x128xf32> to vector<2x32xf32>
    %cst_52 = arith.constant 2.000000e+00 : f32
    %197 = vector.broadcast %cst_52 : f32 to vector<2x32xf32>
    %198 = arith.mulf %197, %196 : vector<2x32xf32>
    %cst_53 = arith.constant 1.000000e+00 : f32
    %199 = vector.broadcast %cst_53 : f32 to vector<2x32xf32>
    %200 = arith.subf %198, %199 : vector<2x32xf32>
    %201 = vector.extract_strided_slice %193 {offsets = [0, 96], sizes = [2, 32], strides = [1, 1]} : vector<2x128xf32> to vector<2x32xf32>
    %202 = arith.mulf %195, %182 : vector<2x32xf32>
    %203 = arith.mulf %194, %200 : vector<2x32xf32>
    %204 = arith.addf %202, %203 : vector<2x32xf32>
    %205 = math.tanh %204 : vector<2x32xf32>
    %206 = arith.mulf %201, %205 : vector<2x32xf32>
    %c6_54 = arith.constant 6 : index
    %c0_55 = arith.constant 0 : index
    %207 = vector.load %arg15[%c6_54, %c0_55] : memref<16x32xf32, #tpu.memory_space<vmem>>, vector<2x32xf32>
    tpu.vector_store %arg15[%c6_54, %c0_55], %206 {strides = array<i32>} : memref<16x32xf32, #tpu.memory_space<vmem>>, vector<2x32xf32>,
    %208 = vector.extract_strided_slice %115 {offsets = [8, 0], sizes = [2, 128], strides = [1, 1]} : vector<16x128xf32> to vector<2x128xf32>
    %cst_56 = arith.constant dense<0.000000e+00> : vector<2x128xf32>
    %209 = tpu.matmul %206, %117, %cst_56 {dimension_numbers = #tpu.dot_dimension_numbers<[1], [0], [0], [1], [0, 0, 1, 1], [], []>} : vector<2x32xf32>, vector<32x128xf32>, vector<2x128xf32> -> vector<2x128xf32>
    %210 = arith.addf %208, %209 : vector<2x128xf32>
    %211 = arith.negf %210 : vector<2x128xf32>
    %212 = math.exp %211 : vector<2x128xf32>
    %cst_57 = arith.constant 1.000000e+00 : f32
    %213 = vector.broadcast %cst_57 : f32 to vector<2x128xf32>
    %214 = arith.addf %213, %212 : vector<2x128xf32>
    %215 = arith.divf %213, %214 : vector<2x128xf32>
    %216 = vector.extract_strided_slice %215 {offsets = [0, 0], sizes = [2, 32], strides = [1, 1]} : vector<2x128xf32> to vector<2x32xf32>
    %217 = vector.extract_strided_slice %215 {offsets = [0, 32], sizes = [2, 32], strides = [1, 1]} : vector<2x128xf32> to vector<2x32xf32>
    %218 = vector.extract_strided_slice %215 {offsets = [0, 64], sizes = [2, 32], strides = [1, 1]} : vector<2x128xf32> to vector<2x32xf32>
    %cst_58 = arith.constant 2.000000e+00 : f32
    %219 = vector.broadcast %cst_58 : f32 to vector<2x32xf32>
    %220 = arith.mulf %219, %218 : vector<2x32xf32>
    %cst_59 = arith.constant 1.000000e+00 : f32
    %221 = vector.broadcast %cst_59 : f32 to vector<2x32xf32>
    %222 = arith.subf %220, %221 : vector<2x32xf32>
    %223 = vector.extract_strided_slice %215 {offsets = [0, 96], sizes = [2, 32], strides = [1, 1]} : vector<2x128xf32> to vector<2x32xf32>
    %224 = arith.mulf %217, %204 : vector<2x32xf32>
    %225 = arith.mulf %216, %222 : vector<2x32xf32>
    %226 = arith.addf %224, %225 : vector<2x32xf32>
    %227 = math.tanh %226 : vector<2x32xf32>
    %228 = arith.mulf %223, %227 : vector<2x32xf32>
    %c8 = arith.constant 8 : index
    %c0_60 = arith.constant 0 : index
    %229 = vector.load %arg15[%c8, %c0_60] : memref<16x32xf32, #tpu.memory_space<vmem>>, vector<2x32xf32>
    tpu.vector_store %arg15[%c8, %c0_60], %228 {strides = array<i32>} : memref<16x32xf32, #tpu.memory_space<vmem>>, vector<2x32xf32>,
    %230 = vector.extract_strided_slice %115 {offsets = [10, 0], sizes = [2, 128], strides = [1, 1]} : vector<16x128xf32> to vector<2x128xf32>
    %cst_61 = arith.constant dense<0.000000e+00> : vector<2x128xf32>
    %231 = tpu.matmul %228, %117, %cst_61 {dimension_numbers = #tpu.dot_dimension_numbers<[1], [0], [0], [1], [0, 0, 1, 1], [], []>} : vector<2x32xf32>, vector<32x128xf32>, vector<2x128xf32> -> vector<2x128xf32>
    %232 = arith.addf %230, %231 : vector<2x128xf32>
    %233 = arith.negf %232 : vector<2x128xf32>
    %234 = math.exp %233 : vector<2x128xf32>
    %cst_62 = arith.constant 1.000000e+00 : f32
    %235 = vector.broadcast %cst_62 : f32 to vector<2x128xf32>
    %236 = arith.addf %235, %234 : vector<2x128xf32>
    %237 = arith.divf %235, %236 : vector<2x128xf32>
    %238 = vector.extract_strided_slice %237 {offsets = [0, 0], sizes = [2, 32], strides = [1, 1]} : vector<2x128xf32> to vector<2x32xf32>
    %239 = vector.extract_strided_slice %237 {offsets = [0, 32], sizes = [2, 32], strides = [1, 1]} : vector<2x128xf32> to vector<2x32xf32>
    %240 = vector.extract_strided_slice %237 {offsets = [0, 64], sizes = [2, 32], strides = [1, 1]} : vector<2x128xf32> to vector<2x32xf32>
    %cst_63 = arith.constant 2.000000e+00 : f32
    %241 = vector.broadcast %cst_63 : f32 to vector<2x32xf32>
    %242 = arith.mulf %241, %240 : vector<2x32xf32>
    %cst_64 = arith.constant 1.000000e+00 : f32
    %243 = vector.broadcast %cst_64 : f32 to vector<2x32xf32>
    %244 = arith.subf %242, %243 : vector<2x32xf32>
    %245 = vector.extract_strided_slice %237 {offsets = [0, 96], sizes = [2, 32], strides = [1, 1]} : vector<2x128xf32> to vector<2x32xf32>
    %246 = arith.mulf %239, %226 : vector<2x32xf32>
    %247 = arith.mulf %238, %244 : vector<2x32xf32>
    %248 = arith.addf %246, %247 : vector<2x32xf32>
    %249 = math.tanh %248 : vector<2x32xf32>
    %250 = arith.mulf %245, %249 : vector<2x32xf32>
    %c10 = arith.constant 10 : index
    %c0_65 = arith.constant 0 : index
    %251 = vector.load %arg15[%c10, %c0_65] : memref<16x32xf32, #tpu.memory_space<vmem>>, vector<2x32xf32>
    tpu.vector_store %arg15[%c10, %c0_65], %250 {strides = array<i32>} : memref<16x32xf32, #tpu.memory_space<vmem>>, vector<2x32xf32>,
    %252 = vector.extract_strided_slice %115 {offsets = [12, 0], sizes = [2, 128], strides = [1, 1]} : vector<16x128xf32> to vector<2x128xf32>
    %cst_66 = arith.constant dense<0.000000e+00> : vector<2x128xf32>
    %253 = tpu.matmul %250, %117, %cst_66 {dimension_numbers = #tpu.dot_dimension_numbers<[1], [0], [0], [1], [0, 0, 1, 1], [], []>} : vector<2x32xf32>, vector<32x128xf32>, vector<2x128xf32> -> vector<2x128xf32>
    %254 = arith.addf %252, %253 : vector<2x128xf32>
    %255 = arith.negf %254 : vector<2x128xf32>
    %256 = math.exp %255 : vector<2x128xf32>
    %cst_67 = arith.constant 1.000000e+00 : f32
    %257 = vector.broadcast %cst_67 : f32 to vector<2x128xf32>
    %258 = arith.addf %257, %256 : vector<2x128xf32>
    %259 = arith.divf %257, %258 : vector<2x128xf32>
    %260 = vector.extract_strided_slice %259 {offsets = [0, 0], sizes = [2, 32], strides = [1, 1]} : vector<2x128xf32> to vector<2x32xf32>
    %261 = vector.extract_strided_slice %259 {offsets = [0, 32], sizes = [2, 32], strides = [1, 1]} : vector<2x128xf32> to vector<2x32xf32>
    %262 = vector.extract_strided_slice %259 {offsets = [0, 64], sizes = [2, 32], strides = [1, 1]} : vector<2x128xf32> to vector<2x32xf32>
    %cst_68 = arith.constant 2.000000e+00 : f32
    %263 = vector.broadcast %cst_68 : f32 to vector<2x32xf32>
    %264 = arith.mulf %263, %262 : vector<2x32xf32>
    %cst_69 = arith.constant 1.000000e+00 : f32
    %265 = vector.broadcast %cst_69 : f32 to vector<2x32xf32>
    %266 = arith.subf %264, %265 : vector<2x32xf32>
    %267 = vector.extract_strided_slice %259 {offsets = [0, 96], sizes = [2, 32], strides = [1, 1]} : vector<2x128xf32> to vector<2x32xf32>
    %268 = arith.mulf %261, %248 : vector<2x32xf32>
    %269 = arith.mulf %260, %266 : vector<2x32xf32>
    %270 = arith.addf %268, %269 : vector<2x32xf32>
    %271 = math.tanh %270 : vector<2x32xf32>
    %272 = arith.mulf %267, %271 : vector<2x32xf32>
    %c12 = arith.constant 12 : index
    %c0_70 = arith.constant 0 : index
    %273 = vector.load %arg15[%c12, %c0_70] : memref<16x32xf32, #tpu.memory_space<vmem>>, vector<2x32xf32>
    tpu.vector_store %arg15[%c12, %c0_70], %272 {strides = array<i32>} : memref<16x32xf32, #tpu.memory_space<vmem>>, vector<2x32xf32>,
    %274 = vector.extract_strided_slice %115 {offsets = [14, 0], sizes = [2, 128], strides = [1, 1]} : vector<16x128xf32> to vector<2x128xf32>
    %cst_71 = arith.constant dense<0.000000e+00> : vector<2x128xf32>
    %275 = tpu.matmul %272, %117, %cst_71 {dimension_numbers = #tpu.dot_dimension_numbers<[1], [0], [0], [1], [0, 0, 1, 1], [], []>} : vector<2x32xf32>, vector<32x128xf32>, vector<2x128xf32> -> vector<2x128xf32>
    %276 = arith.addf %274, %275 : vector<2x128xf32>
    %277 = arith.negf %276 : vector<2x128xf32>
    %278 = math.exp %277 : vector<2x128xf32>
    %cst_72 = arith.constant 1.000000e+00 : f32
    %279 = vector.broadcast %cst_72 : f32 to vector<2x128xf32>
    %280 = arith.addf %279, %278 : vector<2x128xf32>
    %281 = arith.divf %279, %280 : vector<2x128xf32>
    %282 = vector.extract_strided_slice %281 {offsets = [0, 0], sizes = [2, 32], strides = [1, 1]} : vector<2x128xf32> to vector<2x32xf32>
    %283 = vector.extract_strided_slice %281 {offsets = [0, 32], sizes = [2, 32], strides = [1, 1]} : vector<2x128xf32> to vector<2x32xf32>
    %284 = vector.extract_strided_slice %281 {offsets = [0, 64], sizes = [2, 32], strides = [1, 1]} : vector<2x128xf32> to vector<2x32xf32>
    %cst_73 = arith.constant 2.000000e+00 : f32
    %285 = vector.broadcast %cst_73 : f32 to vector<2x32xf32>
    %286 = arith.mulf %285, %284 : vector<2x32xf32>
    %cst_74 = arith.constant 1.000000e+00 : f32
    %287 = vector.broadcast %cst_74 : f32 to vector<2x32xf32>
    %288 = arith.subf %286, %287 : vector<2x32xf32>
    %289 = vector.extract_strided_slice %281 {offsets = [0, 96], sizes = [2, 32], strides = [1, 1]} : vector<2x128xf32> to vector<2x32xf32>
    %290 = arith.mulf %283, %270 : vector<2x32xf32>
    %291 = arith.mulf %282, %288 : vector<2x32xf32>
    %292 = arith.addf %290, %291 : vector<2x32xf32>
    %293 = math.tanh %292 : vector<2x32xf32>
    %294 = arith.mulf %289, %293 : vector<2x32xf32>
    %c14 = arith.constant 14 : index
    %c0_75 = arith.constant 0 : index
    %295 = vector.load %arg15[%c14, %c0_75] : memref<16x32xf32, #tpu.memory_space<vmem>>, vector<2x32xf32>
    tpu.vector_store %arg15[%c14, %c0_75], %294 {strides = array<i32>} : memref<16x32xf32, #tpu.memory_space<vmem>>, vector<2x32xf32>,
    %c0_76 = arith.constant 0 : index
    %c0_77 = arith.constant 0 : index
    %296 = vector.load %arg15[%c0_76, %c0_77] : memref<16x32xf32, #tpu.memory_space<vmem>>, vector<16x32xf32>
    %c0_78 = arith.constant 0 : index
    %c0_79 = arith.constant 0 : index
    %c0_80 = arith.constant 0 : index
    %297 = vector.load %arg5[%c0_78, %c0_79, %c0_80] : memref<3x32x128xf32, #tpu.memory_space<vmem>>, vector<1x32x128xf32>
    %298 = vector.shape_cast %297 : vector<1x32x128xf32> to vector<32x128xf32>
    %cst_81 = arith.constant dense<0.000000e+00> : vector<16x128xf32>
    %299 = tpu.matmul %296, %298, %cst_81 {dimension_numbers = #tpu.dot_dimension_numbers<[1], [0], [0], [1], [0, 0, 1, 1], [], []>} : vector<16x32xf32>, vector<32x128xf32>, vector<16x128xf32> -> vector<16x128xf32>
    %c1_82 = arith.constant 1 : index
    %c0_83 = arith.constant 0 : index
    %c0_84 = arith.constant 0 : index
    %300 = vector.load %arg7[%c1_82, %c0_83, %c0_84] : memref<4x1x128xf32, #tpu.memory_space<vmem>>, vector<1x1x128xf32>
    %301 = vector.shape_cast %300 : vector<1x1x128xf32> to vector<1x128xf32>
    %302 = vector.broadcast %301 : vector<1x128xf32> to vector<16x128xf32>
    %303 = arith.addf %299, %302 : vector<16x128xf32>
    %c1_85 = arith.constant 1 : index
    %c0_86 = arith.constant 0 : index
    %c0_87 = arith.constant 0 : index
    %304 = vector.load %arg6[%c1_85, %c0_86, %c0_87] : memref<4x32x128xf32, #tpu.memory_space<vmem>>, vector<1x32x128xf32>
    %305 = vector.shape_cast %304 : vector<1x32x128xf32> to vector<32x128xf32>
    %cst_88 = arith.constant 0.000000e+00 : f32
    %306 = vector.broadcast %cst_88 : f32 to vector<2x32xf32>
    %cst_89 = arith.constant 0.000000e+00 : f32
    %307 = vector.broadcast %cst_89 : f32 to vector<2x32xf32>
    %308 = vector.extract_strided_slice %303 {offsets = [0, 0], sizes = [2, 128], strides = [1, 1]} : vector<16x128xf32> to vector<2x128xf32>
    %cst_90 = arith.constant dense<0.000000e+00> : vector<2x128xf32>
    %309 = tpu.matmul %306, %305, %cst_90 {dimension_numbers = #tpu.dot_dimension_numbers<[1], [0], [0], [1], [0, 0, 1, 1], [], []>} : vector<2x32xf32>, vector<32x128xf32>, vector<2x128xf32> -> vector<2x128xf32>
    %310 = arith.addf %308, %309 : vector<2x128xf32>
    %311 = arith.negf %310 : vector<2x128xf32>
    %312 = math.exp %311 : vector<2x128xf32>
    %cst_91 = arith.constant 1.000000e+00 : f32
    %313 = vector.broadcast %cst_91 : f32 to vector<2x128xf32>
    %314 = arith.addf %313, %312 : vector<2x128xf32>
    %315 = arith.divf %313, %314 : vector<2x128xf32>
    %316 = vector.extract_strided_slice %315 {offsets = [0, 0], sizes = [2, 32], strides = [1, 1]} : vector<2x128xf32> to vector<2x32xf32>
    %317 = vector.extract_strided_slice %315 {offsets = [0, 32], sizes = [2, 32], strides = [1, 1]} : vector<2x128xf32> to vector<2x32xf32>
    %318 = vector.extract_strided_slice %315 {offsets = [0, 64], sizes = [2, 32], strides = [1, 1]} : vector<2x128xf32> to vector<2x32xf32>
    %cst_92 = arith.constant 2.000000e+00 : f32
    %319 = vector.broadcast %cst_92 : f32 to vector<2x32xf32>
    %320 = arith.mulf %319, %318 : vector<2x32xf32>
    %cst_93 = arith.constant 1.000000e+00 : f32
    %321 = vector.broadcast %cst_93 : f32 to vector<2x32xf32>
    %322 = arith.subf %320, %321 : vector<2x32xf32>
    %323 = vector.extract_strided_slice %315 {offsets = [0, 96], sizes = [2, 32], strides = [1, 1]} : vector<2x128xf32> to vector<2x32xf32>
    %324 = arith.mulf %317, %307 : vector<2x32xf32>
    %325 = arith.mulf %316, %322 : vector<2x32xf32>
    %326 = arith.addf %324, %325 : vector<2x32xf32>
    %327 = math.tanh %326 : vector<2x32xf32>
    %328 = arith.mulf %323, %327 : vector<2x32xf32>
    %c0_94 = arith.constant 0 : index
    %c0_95 = arith.constant 0 : index
    %329 = vector.load %arg15[%c0_94, %c0_95] : memref<16x32xf32, #tpu.memory_space<vmem>>, vector<2x32xf32>
    tpu.vector_store %arg15[%c0_94, %c0_95], %328 {strides = array<i32>} : memref<16x32xf32, #tpu.memory_space<vmem>>, vector<2x32xf32>,
    %330 = vector.extract_strided_slice %303 {offsets = [2, 0], sizes = [2, 128], strides = [1, 1]} : vector<16x128xf32> to vector<2x128xf32>
    %cst_96 = arith.constant dense<0.000000e+00> : vector<2x128xf32>
    %331 = tpu.matmul %328, %305, %cst_96 {dimension_numbers = #tpu.dot_dimension_numbers<[1], [0], [0], [1], [0, 0, 1, 1], [], []>} : vector<2x32xf32>, vector<32x128xf32>, vector<2x128xf32> -> vector<2x128xf32>
    %332 = arith.addf %330, %331 : vector<2x128xf32>
    %333 = arith.negf %332 : vector<2x128xf32>
    %334 = math.exp %333 : vector<2x128xf32>
    %cst_97 = arith.constant 1.000000e+00 : f32
    %335 = vector.broadcast %cst_97 : f32 to vector<2x128xf32>
    %336 = arith.addf %335, %334 : vector<2x128xf32>
    %337 = arith.divf %335, %336 : vector<2x128xf32>
    %338 = vector.extract_strided_slice %337 {offsets = [0, 0], sizes = [2, 32], strides = [1, 1]} : vector<2x128xf32> to vector<2x32xf32>
    %339 = vector.extract_strided_slice %337 {offsets = [0, 32], sizes = [2, 32], strides = [1, 1]} : vector<2x128xf32> to vector<2x32xf32>
    %340 = vector.extract_strided_slice %337 {offsets = [0, 64], sizes = [2, 32], strides = [1, 1]} : vector<2x128xf32> to vector<2x32xf32>
    %cst_98 = arith.constant 2.000000e+00 : f32
    %341 = vector.broadcast %cst_98 : f32 to vector<2x32xf32>
    %342 = arith.mulf %341, %340 : vector<2x32xf32>
    %cst_99 = arith.constant 1.000000e+00 : f32
    %343 = vector.broadcast %cst_99 : f32 to vector<2x32xf32>
    %344 = arith.subf %342, %343 : vector<2x32xf32>
    %345 = vector.extract_strided_slice %337 {offsets = [0, 96], sizes = [2, 32], strides = [1, 1]} : vector<2x128xf32> to vector<2x32xf32>
    %346 = arith.mulf %339, %326 : vector<2x32xf32>
    %347 = arith.mulf %338, %344 : vector<2x32xf32>
    %348 = arith.addf %346, %347 : vector<2x32xf32>
    %349 = math.tanh %348 : vector<2x32xf32>
    %350 = arith.mulf %345, %349 : vector<2x32xf32>
    %c2_100 = arith.constant 2 : index
    %c0_101 = arith.constant 0 : index
    %351 = vector.load %arg15[%c2_100, %c0_101] : memref<16x32xf32, #tpu.memory_space<vmem>>, vector<2x32xf32>
    tpu.vector_store %arg15[%c2_100, %c0_101], %350 {strides = array<i32>} : memref<16x32xf32, #tpu.memory_space<vmem>>, vector<2x32xf32>,
    %352 = vector.extract_strided_slice %303 {offsets = [4, 0], sizes = [2, 128], strides = [1, 1]} : vector<16x128xf32> to vector<2x128xf32>
    %cst_102 = arith.constant dense<0.000000e+00> : vector<2x128xf32>
    %353 = tpu.matmul %350, %305, %cst_102 {dimension_numbers = #tpu.dot_dimension_numbers<[1], [0], [0], [1], [0, 0, 1, 1], [], []>} : vector<2x32xf32>, vector<32x128xf32>, vector<2x128xf32> -> vector<2x128xf32>
    %354 = arith.addf %352, %353 : vector<2x128xf32>
    %355 = arith.negf %354 : vector<2x128xf32>
    %356 = math.exp %355 : vector<2x128xf32>
    %cst_103 = arith.constant 1.000000e+00 : f32
    %357 = vector.broadcast %cst_103 : f32 to vector<2x128xf32>
    %358 = arith.addf %357, %356 : vector<2x128xf32>
    %359 = arith.divf %357, %358 : vector<2x128xf32>
    %360 = vector.extract_strided_slice %359 {offsets = [0, 0], sizes = [2, 32], strides = [1, 1]} : vector<2x128xf32> to vector<2x32xf32>
    %361 = vector.extract_strided_slice %359 {offsets = [0, 32], sizes = [2, 32], strides = [1, 1]} : vector<2x128xf32> to vector<2x32xf32>
    %362 = vector.extract_strided_slice %359 {offsets = [0, 64], sizes = [2, 32], strides = [1, 1]} : vector<2x128xf32> to vector<2x32xf32>
    %cst_104 = arith.constant 2.000000e+00 : f32
    %363 = vector.broadcast %cst_104 : f32 to vector<2x32xf32>
    %364 = arith.mulf %363, %362 : vector<2x32xf32>
    %cst_105 = arith.constant 1.000000e+00 : f32
    %365 = vector.broadcast %cst_105 : f32 to vector<2x32xf32>
    %366 = arith.subf %364, %365 : vector<2x32xf32>
    %367 = vector.extract_strided_slice %359 {offsets = [0, 96], sizes = [2, 32], strides = [1, 1]} : vector<2x128xf32> to vector<2x32xf32>
    %368 = arith.mulf %361, %348 : vector<2x32xf32>
    %369 = arith.mulf %360, %366 : vector<2x32xf32>
    %370 = arith.addf %368, %369 : vector<2x32xf32>
    %371 = math.tanh %370 : vector<2x32xf32>
    %372 = arith.mulf %367, %371 : vector<2x32xf32>
    %c4_106 = arith.constant 4 : index
    %c0_107 = arith.constant 0 : index
    %373 = vector.load %arg15[%c4_106, %c0_107] : memref<16x32xf32, #tpu.memory_space<vmem>>, vector<2x32xf32>
    tpu.vector_store %arg15[%c4_106, %c0_107], %372 {strides = array<i32>} : memref<16x32xf32, #tpu.memory_space<vmem>>, vector<2x32xf32>,
    %374 = vector.extract_strided_slice %303 {offsets = [6, 0], sizes = [2, 128], strides = [1, 1]} : vector<16x128xf32> to vector<2x128xf32>
    %cst_108 = arith.constant dense<0.000000e+00> : vector<2x128xf32>
    %375 = tpu.matmul %372, %305, %cst_108 {dimension_numbers = #tpu.dot_dimension_numbers<[1], [0], [0], [1], [0, 0, 1, 1], [], []>} : vector<2x32xf32>, vector<32x128xf32>, vector<2x128xf32> -> vector<2x128xf32>
    %376 = arith.addf %374, %375 : vector<2x128xf32>
    %377 = arith.negf %376 : vector<2x128xf32>
    %378 = math.exp %377 : vector<2x128xf32>
    %cst_109 = arith.constant 1.000000e+00 : f32
    %379 = vector.broadcast %cst_109 : f32 to vector<2x128xf32>
    %380 = arith.addf %379, %378 : vector<2x128xf32>
    %381 = arith.divf %379, %380 : vector<2x128xf32>
    %382 = vector.extract_strided_slice %381 {offsets = [0, 0], sizes = [2, 32], strides = [1, 1]} : vector<2x128xf32> to vector<2x32xf32>
    %383 = vector.extract_strided_slice %381 {offsets = [0, 32], sizes = [2, 32], strides = [1, 1]} : vector<2x128xf32> to vector<2x32xf32>
    %384 = vector.extract_strided_slice %381 {offsets = [0, 64], sizes = [2, 32], strides = [1, 1]} : vector<2x128xf32> to vector<2x32xf32>
    %cst_110 = arith.constant 2.000000e+00 : f32
    %385 = vector.broadcast %cst_110 : f32 to vector<2x32xf32>
    %386 = arith.mulf %385, %384 : vector<2x32xf32>
    %cst_111 = arith.constant 1.000000e+00 : f32
    %387 = vector.broadcast %cst_111 : f32 to vector<2x32xf32>
    %388 = arith.subf %386, %387 : vector<2x32xf32>
    %389 = vector.extract_strided_slice %381 {offsets = [0, 96], sizes = [2, 32], strides = [1, 1]} : vector<2x128xf32> to vector<2x32xf32>
    %390 = arith.mulf %383, %370 : vector<2x32xf32>
    %391 = arith.mulf %382, %388 : vector<2x32xf32>
    %392 = arith.addf %390, %391 : vector<2x32xf32>
    %393 = math.tanh %392 : vector<2x32xf32>
    %394 = arith.mulf %389, %393 : vector<2x32xf32>
    %c6_112 = arith.constant 6 : index
    %c0_113 = arith.constant 0 : index
    %395 = vector.load %arg15[%c6_112, %c0_113] : memref<16x32xf32, #tpu.memory_space<vmem>>, vector<2x32xf32>
    tpu.vector_store %arg15[%c6_112, %c0_113], %394 {strides = array<i32>} : memref<16x32xf32, #tpu.memory_space<vmem>>, vector<2x32xf32>,
    %396 = vector.extract_strided_slice %303 {offsets = [8, 0], sizes = [2, 128], strides = [1, 1]} : vector<16x128xf32> to vector<2x128xf32>
    %cst_114 = arith.constant dense<0.000000e+00> : vector<2x128xf32>
    %397 = tpu.matmul %394, %305, %cst_114 {dimension_numbers = #tpu.dot_dimension_numbers<[1], [0], [0], [1], [0, 0, 1, 1], [], []>} : vector<2x32xf32>, vector<32x128xf32>, vector<2x128xf32> -> vector<2x128xf32>
    %398 = arith.addf %396, %397 : vector<2x128xf32>
    %399 = arith.negf %398 : vector<2x128xf32>
    %400 = math.exp %399 : vector<2x128xf32>
    %cst_115 = arith.constant 1.000000e+00 : f32
    %401 = vector.broadcast %cst_115 : f32 to vector<2x128xf32>
    %402 = arith.addf %401, %400 : vector<2x128xf32>
    %403 = arith.divf %401, %402 : vector<2x128xf32>
    %404 = vector.extract_strided_slice %403 {offsets = [0, 0], sizes = [2, 32], strides = [1, 1]} : vector<2x128xf32> to vector<2x32xf32>
    %405 = vector.extract_strided_slice %403 {offsets = [0, 32], sizes = [2, 32], strides = [1, 1]} : vector<2x128xf32> to vector<2x32xf32>
    %406 = vector.extract_strided_slice %403 {offsets = [0, 64], sizes = [2, 32], strides = [1, 1]} : vector<2x128xf32> to vector<2x32xf32>
    %cst_116 = arith.constant 2.000000e+00 : f32
    %407 = vector.broadcast %cst_116 : f32 to vector<2x32xf32>
    %408 = arith.mulf %407, %406 : vector<2x32xf32>
    %cst_117 = arith.constant 1.000000e+00 : f32
    %409 = vector.broadcast %cst_117 : f32 to vector<2x32xf32>
    %410 = arith.subf %408, %409 : vector<2x32xf32>
    %411 = vector.extract_strided_slice %403 {offsets = [0, 96], sizes = [2, 32], strides = [1, 1]} : vector<2x128xf32> to vector<2x32xf32>
    %412 = arith.mulf %405, %392 : vector<2x32xf32>
    %413 = arith.mulf %404, %410 : vector<2x32xf32>
    %414 = arith.addf %412, %413 : vector<2x32xf32>
    %415 = math.tanh %414 : vector<2x32xf32>
    %416 = arith.mulf %411, %415 : vector<2x32xf32>
    %c8_118 = arith.constant 8 : index
    %c0_119 = arith.constant 0 : index
    %417 = vector.load %arg15[%c8_118, %c0_119] : memref<16x32xf32, #tpu.memory_space<vmem>>, vector<2x32xf32>
    tpu.vector_store %arg15[%c8_118, %c0_119], %416 {strides = array<i32>} : memref<16x32xf32, #tpu.memory_space<vmem>>, vector<2x32xf32>,
    %418 = vector.extract_strided_slice %303 {offsets = [10, 0], sizes = [2, 128], strides = [1, 1]} : vector<16x128xf32> to vector<2x128xf32>
    %cst_120 = arith.constant dense<0.000000e+00> : vector<2x128xf32>
    %419 = tpu.matmul %416, %305, %cst_120 {dimension_numbers = #tpu.dot_dimension_numbers<[1], [0], [0], [1], [0, 0, 1, 1], [], []>} : vector<2x32xf32>, vector<32x128xf32>, vector<2x128xf32> -> vector<2x128xf32>
    %420 = arith.addf %418, %419 : vector<2x128xf32>
    %421 = arith.negf %420 : vector<2x128xf32>
    %422 = math.exp %421 : vector<2x128xf32>
    %cst_121 = arith.constant 1.000000e+00 : f32
    %423 = vector.broadcast %cst_121 : f32 to vector<2x128xf32>
    %424 = arith.addf %423, %422 : vector<2x128xf32>
    %425 = arith.divf %423, %424 : vector<2x128xf32>
    %426 = vector.extract_strided_slice %425 {offsets = [0, 0], sizes = [2, 32], strides = [1, 1]} : vector<2x128xf32> to vector<2x32xf32>
    %427 = vector.extract_strided_slice %425 {offsets = [0, 32], sizes = [2, 32], strides = [1, 1]} : vector<2x128xf32> to vector<2x32xf32>
    %428 = vector.extract_strided_slice %425 {offsets = [0, 64], sizes = [2, 32], strides = [1, 1]} : vector<2x128xf32> to vector<2x32xf32>
    %cst_122 = arith.constant 2.000000e+00 : f32
    %429 = vector.broadcast %cst_122 : f32 to vector<2x32xf32>
    %430 = arith.mulf %429, %428 : vector<2x32xf32>
    %cst_123 = arith.constant 1.000000e+00 : f32
    %431 = vector.broadcast %cst_123 : f32 to vector<2x32xf32>
    %432 = arith.subf %430, %431 : vector<2x32xf32>
    %433 = vector.extract_strided_slice %425 {offsets = [0, 96], sizes = [2, 32], strides = [1, 1]} : vector<2x128xf32> to vector<2x32xf32>
    %434 = arith.mulf %427, %414 : vector<2x32xf32>
    %435 = arith.mulf %426, %432 : vector<2x32xf32>
    %436 = arith.addf %434, %435 : vector<2x32xf32>
    %437 = math.tanh %436 : vector<2x32xf32>
    %438 = arith.mulf %433, %437 : vector<2x32xf32>
    %c10_124 = arith.constant 10 : index
    %c0_125 = arith.constant 0 : index
    %439 = vector.load %arg15[%c10_124, %c0_125] : memref<16x32xf32, #tpu.memory_space<vmem>>, vector<2x32xf32>
    tpu.vector_store %arg15[%c10_124, %c0_125], %438 {strides = array<i32>} : memref<16x32xf32, #tpu.memory_space<vmem>>, vector<2x32xf32>,
    %440 = vector.extract_strided_slice %303 {offsets = [12, 0], sizes = [2, 128], strides = [1, 1]} : vector<16x128xf32> to vector<2x128xf32>
    %cst_126 = arith.constant dense<0.000000e+00> : vector<2x128xf32>
    %441 = tpu.matmul %438, %305, %cst_126 {dimension_numbers = #tpu.dot_dimension_numbers<[1], [0], [0], [1], [0, 0, 1, 1], [], []>} : vector<2x32xf32>, vector<32x128xf32>, vector<2x128xf32> -> vector<2x128xf32>
    %442 = arith.addf %440, %441 : vector<2x128xf32>
    %443 = arith.negf %442 : vector<2x128xf32>
    %444 = math.exp %443 : vector<2x128xf32>
    %cst_127 = arith.constant 1.000000e+00 : f32
    %445 = vector.broadcast %cst_127 : f32 to vector<2x128xf32>
    %446 = arith.addf %445, %444 : vector<2x128xf32>
    %447 = arith.divf %445, %446 : vector<2x128xf32>
    %448 = vector.extract_strided_slice %447 {offsets = [0, 0], sizes = [2, 32], strides = [1, 1]} : vector<2x128xf32> to vector<2x32xf32>
    %449 = vector.extract_strided_slice %447 {offsets = [0, 32], sizes = [2, 32], strides = [1, 1]} : vector<2x128xf32> to vector<2x32xf32>
    %450 = vector.extract_strided_slice %447 {offsets = [0, 64], sizes = [2, 32], strides = [1, 1]} : vector<2x128xf32> to vector<2x32xf32>
    %cst_128 = arith.constant 2.000000e+00 : f32
    %451 = vector.broadcast %cst_128 : f32 to vector<2x32xf32>
    %452 = arith.mulf %451, %450 : vector<2x32xf32>
    %cst_129 = arith.constant 1.000000e+00 : f32
    %453 = vector.broadcast %cst_129 : f32 to vector<2x32xf32>
    %454 = arith.subf %452, %453 : vector<2x32xf32>
    %455 = vector.extract_strided_slice %447 {offsets = [0, 96], sizes = [2, 32], strides = [1, 1]} : vector<2x128xf32> to vector<2x32xf32>
    %456 = arith.mulf %449, %436 : vector<2x32xf32>
    %457 = arith.mulf %448, %454 : vector<2x32xf32>
    %458 = arith.addf %456, %457 : vector<2x32xf32>
    %459 = math.tanh %458 : vector<2x32xf32>
    %460 = arith.mulf %455, %459 : vector<2x32xf32>
    %c12_130 = arith.constant 12 : index
    %c0_131 = arith.constant 0 : index
    %461 = vector.load %arg15[%c12_130, %c0_131] : memref<16x32xf32, #tpu.memory_space<vmem>>, vector<2x32xf32>
    tpu.vector_store %arg15[%c12_130, %c0_131], %460 {strides = array<i32>} : memref<16x32xf32, #tpu.memory_space<vmem>>, vector<2x32xf32>,
    %462 = vector.extract_strided_slice %303 {offsets = [14, 0], sizes = [2, 128], strides = [1, 1]} : vector<16x128xf32> to vector<2x128xf32>
    %cst_132 = arith.constant dense<0.000000e+00> : vector<2x128xf32>
    %463 = tpu.matmul %460, %305, %cst_132 {dimension_numbers = #tpu.dot_dimension_numbers<[1], [0], [0], [1], [0, 0, 1, 1], [], []>} : vector<2x32xf32>, vector<32x128xf32>, vector<2x128xf32> -> vector<2x128xf32>
    %464 = arith.addf %462, %463 : vector<2x128xf32>
    %465 = arith.negf %464 : vector<2x128xf32>
    %466 = math.exp %465 : vector<2x128xf32>
    %cst_133 = arith.constant 1.000000e+00 : f32
    %467 = vector.broadcast %cst_133 : f32 to vector<2x128xf32>
    %468 = arith.addf %467, %466 : vector<2x128xf32>
    %469 = arith.divf %467, %468 : vector<2x128xf32>
    %470 = vector.extract_strided_slice %469 {offsets = [0, 0], sizes = [2, 32], strides = [1, 1]} : vector<2x128xf32> to vector<2x32xf32>
    %471 = vector.extract_strided_slice %469 {offsets = [0, 32], sizes = [2, 32], strides = [1, 1]} : vector<2x128xf32> to vector<2x32xf32>
    %472 = vector.extract_strided_slice %469 {offsets = [0, 64], sizes = [2, 32], strides = [1, 1]} : vector<2x128xf32> to vector<2x32xf32>
    %cst_134 = arith.constant 2.000000e+00 : f32
    %473 = vector.broadcast %cst_134 : f32 to vector<2x32xf32>
    %474 = arith.mulf %473, %472 : vector<2x32xf32>
    %cst_135 = arith.constant 1.000000e+00 : f32
    %475 = vector.broadcast %cst_135 : f32 to vector<2x32xf32>
    %476 = arith.subf %474, %475 : vector<2x32xf32>
    %477 = vector.extract_strided_slice %469 {offsets = [0, 96], sizes = [2, 32], strides = [1, 1]} : vector<2x128xf32> to vector<2x32xf32>
    %478 = arith.mulf %471, %458 : vector<2x32xf32>
    %479 = arith.mulf %470, %476 : vector<2x32xf32>
    %480 = arith.addf %478, %479 : vector<2x32xf32>
    %481 = math.tanh %480 : vector<2x32xf32>
    %482 = arith.mulf %477, %481 : vector<2x32xf32>
    %c14_136 = arith.constant 14 : index
    %c0_137 = arith.constant 0 : index
    %483 = vector.load %arg15[%c14_136, %c0_137] : memref<16x32xf32, #tpu.memory_space<vmem>>, vector<2x32xf32>
    tpu.vector_store %arg15[%c14_136, %c0_137], %482 {strides = array<i32>} : memref<16x32xf32, #tpu.memory_space<vmem>>, vector<2x32xf32>,
    %c0_138 = arith.constant 0 : index
    %c0_139 = arith.constant 0 : index
    %484 = vector.load %arg15[%c0_138, %c0_139] : memref<16x32xf32, #tpu.memory_space<vmem>>, vector<16x32xf32>
    %c1_140 = arith.constant 1 : index
    %c0_141 = arith.constant 0 : index
    %c0_142 = arith.constant 0 : index
    %485 = vector.load %arg5[%c1_140, %c0_141, %c0_142] : memref<3x32x128xf32, #tpu.memory_space<vmem>>, vector<1x32x128xf32>
    %486 = vector.shape_cast %485 : vector<1x32x128xf32> to vector<32x128xf32>
    %cst_143 = arith.constant dense<0.000000e+00> : vector<16x128xf32>
    %487 = tpu.matmul %484, %486, %cst_143 {dimension_numbers = #tpu.dot_dimension_numbers<[1], [0], [0], [1], [0, 0, 1, 1], [], []>} : vector<16x32xf32>, vector<32x128xf32>, vector<16x128xf32> -> vector<16x128xf32>
    %c2_144 = arith.constant 2 : index
    %c0_145 = arith.constant 0 : index
    %c0_146 = arith.constant 0 : index
    %488 = vector.load %arg7[%c2_144, %c0_145, %c0_146] : memref<4x1x128xf32, #tpu.memory_space<vmem>>, vector<1x1x128xf32>
    %489 = vector.shape_cast %488 : vector<1x1x128xf32> to vector<1x128xf32>
    %490 = vector.broadcast %489 : vector<1x128xf32> to vector<16x128xf32>
    %491 = arith.addf %487, %490 : vector<16x128xf32>
    %c2_147 = arith.constant 2 : index
    %c0_148 = arith.constant 0 : index
    %c0_149 = arith.constant 0 : index
    %492 = vector.load %arg6[%c2_147, %c0_148, %c0_149] : memref<4x32x128xf32, #tpu.memory_space<vmem>>, vector<1x32x128xf32>
    %493 = vector.shape_cast %492 : vector<1x32x128xf32> to vector<32x128xf32>
    %cst_150 = arith.constant 0.000000e+00 : f32
    %494 = vector.broadcast %cst_150 : f32 to vector<2x32xf32>
    %cst_151 = arith.constant 0.000000e+00 : f32
    %495 = vector.broadcast %cst_151 : f32 to vector<2x32xf32>
    %496 = vector.extract_strided_slice %491 {offsets = [0, 0], sizes = [2, 128], strides = [1, 1]} : vector<16x128xf32> to vector<2x128xf32>
    %cst_152 = arith.constant dense<0.000000e+00> : vector<2x128xf32>
    %497 = tpu.matmul %494, %493, %cst_152 {dimension_numbers = #tpu.dot_dimension_numbers<[1], [0], [0], [1], [0, 0, 1, 1], [], []>} : vector<2x32xf32>, vector<32x128xf32>, vector<2x128xf32> -> vector<2x128xf32>
    %498 = arith.addf %496, %497 : vector<2x128xf32>
    %499 = arith.negf %498 : vector<2x128xf32>
    %500 = math.exp %499 : vector<2x128xf32>
    %cst_153 = arith.constant 1.000000e+00 : f32
    %501 = vector.broadcast %cst_153 : f32 to vector<2x128xf32>
    %502 = arith.addf %501, %500 : vector<2x128xf32>
    %503 = arith.divf %501, %502 : vector<2x128xf32>
    %504 = vector.extract_strided_slice %503 {offsets = [0, 0], sizes = [2, 32], strides = [1, 1]} : vector<2x128xf32> to vector<2x32xf32>
    %505 = vector.extract_strided_slice %503 {offsets = [0, 32], sizes = [2, 32], strides = [1, 1]} : vector<2x128xf32> to vector<2x32xf32>
    %506 = vector.extract_strided_slice %503 {offsets = [0, 64], sizes = [2, 32], strides = [1, 1]} : vector<2x128xf32> to vector<2x32xf32>
    %cst_154 = arith.constant 2.000000e+00 : f32
    %507 = vector.broadcast %cst_154 : f32 to vector<2x32xf32>
    %508 = arith.mulf %507, %506 : vector<2x32xf32>
    %cst_155 = arith.constant 1.000000e+00 : f32
    %509 = vector.broadcast %cst_155 : f32 to vector<2x32xf32>
    %510 = arith.subf %508, %509 : vector<2x32xf32>
    %511 = vector.extract_strided_slice %503 {offsets = [0, 96], sizes = [2, 32], strides = [1, 1]} : vector<2x128xf32> to vector<2x32xf32>
    %512 = arith.mulf %505, %495 : vector<2x32xf32>
    %513 = arith.mulf %504, %510 : vector<2x32xf32>
    %514 = arith.addf %512, %513 : vector<2x32xf32>
    %515 = math.tanh %514 : vector<2x32xf32>
    %516 = arith.mulf %511, %515 : vector<2x32xf32>
    %c0_156 = arith.constant 0 : index
    %c0_157 = arith.constant 0 : index
    %517 = vector.load %arg15[%c0_156, %c0_157] : memref<16x32xf32, #tpu.memory_space<vmem>>, vector<2x32xf32>
    tpu.vector_store %arg15[%c0_156, %c0_157], %516 {strides = array<i32>} : memref<16x32xf32, #tpu.memory_space<vmem>>, vector<2x32xf32>,
    %518 = vector.extract_strided_slice %491 {offsets = [2, 0], sizes = [2, 128], strides = [1, 1]} : vector<16x128xf32> to vector<2x128xf32>
    %cst_158 = arith.constant dense<0.000000e+00> : vector<2x128xf32>
    %519 = tpu.matmul %516, %493, %cst_158 {dimension_numbers = #tpu.dot_dimension_numbers<[1], [0], [0], [1], [0, 0, 1, 1], [], []>} : vector<2x32xf32>, vector<32x128xf32>, vector<2x128xf32> -> vector<2x128xf32>
    %520 = arith.addf %518, %519 : vector<2x128xf32>
    %521 = arith.negf %520 : vector<2x128xf32>
    %522 = math.exp %521 : vector<2x128xf32>
    %cst_159 = arith.constant 1.000000e+00 : f32
    %523 = vector.broadcast %cst_159 : f32 to vector<2x128xf32>
    %524 = arith.addf %523, %522 : vector<2x128xf32>
    %525 = arith.divf %523, %524 : vector<2x128xf32>
    %526 = vector.extract_strided_slice %525 {offsets = [0, 0], sizes = [2, 32], strides = [1, 1]} : vector<2x128xf32> to vector<2x32xf32>
    %527 = vector.extract_strided_slice %525 {offsets = [0, 32], sizes = [2, 32], strides = [1, 1]} : vector<2x128xf32> to vector<2x32xf32>
    %528 = vector.extract_strided_slice %525 {offsets = [0, 64], sizes = [2, 32], strides = [1, 1]} : vector<2x128xf32> to vector<2x32xf32>
    %cst_160 = arith.constant 2.000000e+00 : f32
    %529 = vector.broadcast %cst_160 : f32 to vector<2x32xf32>
    %530 = arith.mulf %529, %528 : vector<2x32xf32>
    %cst_161 = arith.constant 1.000000e+00 : f32
    %531 = vector.broadcast %cst_161 : f32 to vector<2x32xf32>
    %532 = arith.subf %530, %531 : vector<2x32xf32>
    %533 = vector.extract_strided_slice %525 {offsets = [0, 96], sizes = [2, 32], strides = [1, 1]} : vector<2x128xf32> to vector<2x32xf32>
    %534 = arith.mulf %527, %514 : vector<2x32xf32>
    %535 = arith.mulf %526, %532 : vector<2x32xf32>
    %536 = arith.addf %534, %535 : vector<2x32xf32>
    %537 = math.tanh %536 : vector<2x32xf32>
    %538 = arith.mulf %533, %537 : vector<2x32xf32>
    %c2_162 = arith.constant 2 : index
    %c0_163 = arith.constant 0 : index
    %539 = vector.load %arg15[%c2_162, %c0_163] : memref<16x32xf32, #tpu.memory_space<vmem>>, vector<2x32xf32>
    tpu.vector_store %arg15[%c2_162, %c0_163], %538 {strides = array<i32>} : memref<16x32xf32, #tpu.memory_space<vmem>>, vector<2x32xf32>,
    %540 = vector.extract_strided_slice %491 {offsets = [4, 0], sizes = [2, 128], strides = [1, 1]} : vector<16x128xf32> to vector<2x128xf32>
    %cst_164 = arith.constant dense<0.000000e+00> : vector<2x128xf32>
    %541 = tpu.matmul %538, %493, %cst_164 {dimension_numbers = #tpu.dot_dimension_numbers<[1], [0], [0], [1], [0, 0, 1, 1], [], []>} : vector<2x32xf32>, vector<32x128xf32>, vector<2x128xf32> -> vector<2x128xf32>
    %542 = arith.addf %540, %541 : vector<2x128xf32>
    %543 = arith.negf %542 : vector<2x128xf32>
    %544 = math.exp %543 : vector<2x128xf32>
    %cst_165 = arith.constant 1.000000e+00 : f32
    %545 = vector.broadcast %cst_165 : f32 to vector<2x128xf32>
    %546 = arith.addf %545, %544 : vector<2x128xf32>
    %547 = arith.divf %545, %546 : vector<2x128xf32>
    %548 = vector.extract_strided_slice %547 {offsets = [0, 0], sizes = [2, 32], strides = [1, 1]} : vector<2x128xf32> to vector<2x32xf32>
    %549 = vector.extract_strided_slice %547 {offsets = [0, 32], sizes = [2, 32], strides = [1, 1]} : vector<2x128xf32> to vector<2x32xf32>
    %550 = vector.extract_strided_slice %547 {offsets = [0, 64], sizes = [2, 32], strides = [1, 1]} : vector<2x128xf32> to vector<2x32xf32>
    %cst_166 = arith.constant 2.000000e+00 : f32
    %551 = vector.broadcast %cst_166 : f32 to vector<2x32xf32>
    %552 = arith.mulf %551, %550 : vector<2x32xf32>
    %cst_167 = arith.constant 1.000000e+00 : f32
    %553 = vector.broadcast %cst_167 : f32 to vector<2x32xf32>
    %554 = arith.subf %552, %553 : vector<2x32xf32>
    %555 = vector.extract_strided_slice %547 {offsets = [0, 96], sizes = [2, 32], strides = [1, 1]} : vector<2x128xf32> to vector<2x32xf32>
    %556 = arith.mulf %549, %536 : vector<2x32xf32>
    %557 = arith.mulf %548, %554 : vector<2x32xf32>
    %558 = arith.addf %556, %557 : vector<2x32xf32>
    %559 = math.tanh %558 : vector<2x32xf32>
    %560 = arith.mulf %555, %559 : vector<2x32xf32>
    %c4_168 = arith.constant 4 : index
    %c0_169 = arith.constant 0 : index
    %561 = vector.load %arg15[%c4_168, %c0_169] : memref<16x32xf32, #tpu.memory_space<vmem>>, vector<2x32xf32>
    tpu.vector_store %arg15[%c4_168, %c0_169], %560 {strides = array<i32>} : memref<16x32xf32, #tpu.memory_space<vmem>>, vector<2x32xf32>,
    %562 = vector.extract_strided_slice %491 {offsets = [6, 0], sizes = [2, 128], strides = [1, 1]} : vector<16x128xf32> to vector<2x128xf32>
    %cst_170 = arith.constant dense<0.000000e+00> : vector<2x128xf32>
    %563 = tpu.matmul %560, %493, %cst_170 {dimension_numbers = #tpu.dot_dimension_numbers<[1], [0], [0], [1], [0, 0, 1, 1], [], []>} : vector<2x32xf32>, vector<32x128xf32>, vector<2x128xf32> -> vector<2x128xf32>
    %564 = arith.addf %562, %563 : vector<2x128xf32>
    %565 = arith.negf %564 : vector<2x128xf32>
    %566 = math.exp %565 : vector<2x128xf32>
    %cst_171 = arith.constant 1.000000e+00 : f32
    %567 = vector.broadcast %cst_171 : f32 to vector<2x128xf32>
    %568 = arith.addf %567, %566 : vector<2x128xf32>
    %569 = arith.divf %567, %568 : vector<2x128xf32>
    %570 = vector.extract_strided_slice %569 {offsets = [0, 0], sizes = [2, 32], strides = [1, 1]} : vector<2x128xf32> to vector<2x32xf32>
    %571 = vector.extract_strided_slice %569 {offsets = [0, 32], sizes = [2, 32], strides = [1, 1]} : vector<2x128xf32> to vector<2x32xf32>
    %572 = vector.extract_strided_slice %569 {offsets = [0, 64], sizes = [2, 32], strides = [1, 1]} : vector<2x128xf32> to vector<2x32xf32>
    %cst_172 = arith.constant 2.000000e+00 : f32
    %573 = vector.broadcast %cst_172 : f32 to vector<2x32xf32>
    %574 = arith.mulf %573, %572 : vector<2x32xf32>
    %cst_173 = arith.constant 1.000000e+00 : f32
    %575 = vector.broadcast %cst_173 : f32 to vector<2x32xf32>
    %576 = arith.subf %574, %575 : vector<2x32xf32>
    %577 = vector.extract_strided_slice %569 {offsets = [0, 96], sizes = [2, 32], strides = [1, 1]} : vector<2x128xf32> to vector<2x32xf32>
    %578 = arith.mulf %571, %558 : vector<2x32xf32>
    %579 = arith.mulf %570, %576 : vector<2x32xf32>
    %580 = arith.addf %578, %579 : vector<2x32xf32>
    %581 = math.tanh %580 : vector<2x32xf32>
    %582 = arith.mulf %577, %581 : vector<2x32xf32>
    %c6_174 = arith.constant 6 : index
    %c0_175 = arith.constant 0 : index
    %583 = vector.load %arg15[%c6_174, %c0_175] : memref<16x32xf32, #tpu.memory_space<vmem>>, vector<2x32xf32>
    tpu.vector_store %arg15[%c6_174, %c0_175], %582 {strides = array<i32>} : memref<16x32xf32, #tpu.memory_space<vmem>>, vector<2x32xf32>,
    %584 = vector.extract_strided_slice %491 {offsets = [8, 0], sizes = [2, 128], strides = [1, 1]} : vector<16x128xf32> to vector<2x128xf32>
    %cst_176 = arith.constant dense<0.000000e+00> : vector<2x128xf32>
    %585 = tpu.matmul %582, %493, %cst_176 {dimension_numbers = #tpu.dot_dimension_numbers<[1], [0], [0], [1], [0, 0, 1, 1], [], []>} : vector<2x32xf32>, vector<32x128xf32>, vector<2x128xf32> -> vector<2x128xf32>
    %586 = arith.addf %584, %585 : vector<2x128xf32>
    %587 = arith.negf %586 : vector<2x128xf32>
    %588 = math.exp %587 : vector<2x128xf32>
    %cst_177 = arith.constant 1.000000e+00 : f32
    %589 = vector.broadcast %cst_177 : f32 to vector<2x128xf32>
    %590 = arith.addf %589, %588 : vector<2x128xf32>
    %591 = arith.divf %589, %590 : vector<2x128xf32>
    %592 = vector.extract_strided_slice %591 {offsets = [0, 0], sizes = [2, 32], strides = [1, 1]} : vector<2x128xf32> to vector<2x32xf32>
    %593 = vector.extract_strided_slice %591 {offsets = [0, 32], sizes = [2, 32], strides = [1, 1]} : vector<2x128xf32> to vector<2x32xf32>
    %594 = vector.extract_strided_slice %591 {offsets = [0, 64], sizes = [2, 32], strides = [1, 1]} : vector<2x128xf32> to vector<2x32xf32>
    %cst_178 = arith.constant 2.000000e+00 : f32
    %595 = vector.broadcast %cst_178 : f32 to vector<2x32xf32>
    %596 = arith.mulf %595, %594 : vector<2x32xf32>
    %cst_179 = arith.constant 1.000000e+00 : f32
    %597 = vector.broadcast %cst_179 : f32 to vector<2x32xf32>
    %598 = arith.subf %596, %597 : vector<2x32xf32>
    %599 = vector.extract_strided_slice %591 {offsets = [0, 96], sizes = [2, 32], strides = [1, 1]} : vector<2x128xf32> to vector<2x32xf32>
    %600 = arith.mulf %593, %580 : vector<2x32xf32>
    %601 = arith.mulf %592, %598 : vector<2x32xf32>
    %602 = arith.addf %600, %601 : vector<2x32xf32>
    %603 = math.tanh %602 : vector<2x32xf32>
    %604 = arith.mulf %599, %603 : vector<2x32xf32>
    %c8_180 = arith.constant 8 : index
    %c0_181 = arith.constant 0 : index
    %605 = vector.load %arg15[%c8_180, %c0_181] : memref<16x32xf32, #tpu.memory_space<vmem>>, vector<2x32xf32>
    tpu.vector_store %arg15[%c8_180, %c0_181], %604 {strides = array<i32>} : memref<16x32xf32, #tpu.memory_space<vmem>>, vector<2x32xf32>,
    %606 = vector.extract_strided_slice %491 {offsets = [10, 0], sizes = [2, 128], strides = [1, 1]} : vector<16x128xf32> to vector<2x128xf32>
    %cst_182 = arith.constant dense<0.000000e+00> : vector<2x128xf32>
    %607 = tpu.matmul %604, %493, %cst_182 {dimension_numbers = #tpu.dot_dimension_numbers<[1], [0], [0], [1], [0, 0, 1, 1], [], []>} : vector<2x32xf32>, vector<32x128xf32>, vector<2x128xf32> -> vector<2x128xf32>
    %608 = arith.addf %606, %607 : vector<2x128xf32>
    %609 = arith.negf %608 : vector<2x128xf32>
    %610 = math.exp %609 : vector<2x128xf32>
    %cst_183 = arith.constant 1.000000e+00 : f32
    %611 = vector.broadcast %cst_183 : f32 to vector<2x128xf32>
    %612 = arith.addf %611, %610 : vector<2x128xf32>
    %613 = arith.divf %611, %612 : vector<2x128xf32>
    %614 = vector.extract_strided_slice %613 {offsets = [0, 0], sizes = [2, 32], strides = [1, 1]} : vector<2x128xf32> to vector<2x32xf32>
    %615 = vector.extract_strided_slice %613 {offsets = [0, 32], sizes = [2, 32], strides = [1, 1]} : vector<2x128xf32> to vector<2x32xf32>
    %616 = vector.extract_strided_slice %613 {offsets = [0, 64], sizes = [2, 32], strides = [1, 1]} : vector<2x128xf32> to vector<2x32xf32>
    %cst_184 = arith.constant 2.000000e+00 : f32
    %617 = vector.broadcast %cst_184 : f32 to vector<2x32xf32>
    %618 = arith.mulf %617, %616 : vector<2x32xf32>
    %cst_185 = arith.constant 1.000000e+00 : f32
    %619 = vector.broadcast %cst_185 : f32 to vector<2x32xf32>
    %620 = arith.subf %618, %619 : vector<2x32xf32>
    %621 = vector.extract_strided_slice %613 {offsets = [0, 96], sizes = [2, 32], strides = [1, 1]} : vector<2x128xf32> to vector<2x32xf32>
    %622 = arith.mulf %615, %602 : vector<2x32xf32>
    %623 = arith.mulf %614, %620 : vector<2x32xf32>
    %624 = arith.addf %622, %623 : vector<2x32xf32>
    %625 = math.tanh %624 : vector<2x32xf32>
    %626 = arith.mulf %621, %625 : vector<2x32xf32>
    %c10_186 = arith.constant 10 : index
    %c0_187 = arith.constant 0 : index
    %627 = vector.load %arg15[%c10_186, %c0_187] : memref<16x32xf32, #tpu.memory_space<vmem>>, vector<2x32xf32>
    tpu.vector_store %arg15[%c10_186, %c0_187], %626 {strides = array<i32>} : memref<16x32xf32, #tpu.memory_space<vmem>>, vector<2x32xf32>,
    %628 = vector.extract_strided_slice %491 {offsets = [12, 0], sizes = [2, 128], strides = [1, 1]} : vector<16x128xf32> to vector<2x128xf32>
    %cst_188 = arith.constant dense<0.000000e+00> : vector<2x128xf32>
    %629 = tpu.matmul %626, %493, %cst_188 {dimension_numbers = #tpu.dot_dimension_numbers<[1], [0], [0], [1], [0, 0, 1, 1], [], []>} : vector<2x32xf32>, vector<32x128xf32>, vector<2x128xf32> -> vector<2x128xf32>
    %630 = arith.addf %628, %629 : vector<2x128xf32>
    %631 = arith.negf %630 : vector<2x128xf32>
    %632 = math.exp %631 : vector<2x128xf32>
    %cst_189 = arith.constant 1.000000e+00 : f32
    %633 = vector.broadcast %cst_189 : f32 to vector<2x128xf32>
    %634 = arith.addf %633, %632 : vector<2x128xf32>
    %635 = arith.divf %633, %634 : vector<2x128xf32>
    %636 = vector.extract_strided_slice %635 {offsets = [0, 0], sizes = [2, 32], strides = [1, 1]} : vector<2x128xf32> to vector<2x32xf32>
    %637 = vector.extract_strided_slice %635 {offsets = [0, 32], sizes = [2, 32], strides = [1, 1]} : vector<2x128xf32> to vector<2x32xf32>
    %638 = vector.extract_strided_slice %635 {offsets = [0, 64], sizes = [2, 32], strides = [1, 1]} : vector<2x128xf32> to vector<2x32xf32>
    %cst_190 = arith.constant 2.000000e+00 : f32
    %639 = vector.broadcast %cst_190 : f32 to vector<2x32xf32>
    %640 = arith.mulf %639, %638 : vector<2x32xf32>
    %cst_191 = arith.constant 1.000000e+00 : f32
    %641 = vector.broadcast %cst_191 : f32 to vector<2x32xf32>
    %642 = arith.subf %640, %641 : vector<2x32xf32>
    %643 = vector.extract_strided_slice %635 {offsets = [0, 96], sizes = [2, 32], strides = [1, 1]} : vector<2x128xf32> to vector<2x32xf32>
    %644 = arith.mulf %637, %624 : vector<2x32xf32>
    %645 = arith.mulf %636, %642 : vector<2x32xf32>
    %646 = arith.addf %644, %645 : vector<2x32xf32>
    %647 = math.tanh %646 : vector<2x32xf32>
    %648 = arith.mulf %643, %647 : vector<2x32xf32>
    %c12_192 = arith.constant 12 : index
    %c0_193 = arith.constant 0 : index
    %649 = vector.load %arg15[%c12_192, %c0_193] : memref<16x32xf32, #tpu.memory_space<vmem>>, vector<2x32xf32>
    tpu.vector_store %arg15[%c12_192, %c0_193], %648 {strides = array<i32>} : memref<16x32xf32, #tpu.memory_space<vmem>>, vector<2x32xf32>,
    %650 = vector.extract_strided_slice %491 {offsets = [14, 0], sizes = [2, 128], strides = [1, 1]} : vector<16x128xf32> to vector<2x128xf32>
    %cst_194 = arith.constant dense<0.000000e+00> : vector<2x128xf32>
    %651 = tpu.matmul %648, %493, %cst_194 {dimension_numbers = #tpu.dot_dimension_numbers<[1], [0], [0], [1], [0, 0, 1, 1], [], []>} : vector<2x32xf32>, vector<32x128xf32>, vector<2x128xf32> -> vector<2x128xf32>
    %652 = arith.addf %650, %651 : vector<2x128xf32>
    %653 = arith.negf %652 : vector<2x128xf32>
    %654 = math.exp %653 : vector<2x128xf32>
    %cst_195 = arith.constant 1.000000e+00 : f32
    %655 = vector.broadcast %cst_195 : f32 to vector<2x128xf32>
    %656 = arith.addf %655, %654 : vector<2x128xf32>
    %657 = arith.divf %655, %656 : vector<2x128xf32>
    %658 = vector.extract_strided_slice %657 {offsets = [0, 0], sizes = [2, 32], strides = [1, 1]} : vector<2x128xf32> to vector<2x32xf32>
    %659 = vector.extract_strided_slice %657 {offsets = [0, 32], sizes = [2, 32], strides = [1, 1]} : vector<2x128xf32> to vector<2x32xf32>
    %660 = vector.extract_strided_slice %657 {offsets = [0, 64], sizes = [2, 32], strides = [1, 1]} : vector<2x128xf32> to vector<2x32xf32>
    %cst_196 = arith.constant 2.000000e+00 : f32
    %661 = vector.broadcast %cst_196 : f32 to vector<2x32xf32>
    %662 = arith.mulf %661, %660 : vector<2x32xf32>
    %cst_197 = arith.constant 1.000000e+00 : f32
    %663 = vector.broadcast %cst_197 : f32 to vector<2x32xf32>
    %664 = arith.subf %662, %663 : vector<2x32xf32>
    %665 = vector.extract_strided_slice %657 {offsets = [0, 96], sizes = [2, 32], strides = [1, 1]} : vector<2x128xf32> to vector<2x32xf32>
    %666 = arith.mulf %659, %646 : vector<2x32xf32>
    %667 = arith.mulf %658, %664 : vector<2x32xf32>
    %668 = arith.addf %666, %667 : vector<2x32xf32>
    %669 = math.tanh %668 : vector<2x32xf32>
    %670 = arith.mulf %665, %669 : vector<2x32xf32>
    %c14_198 = arith.constant 14 : index
    %c0_199 = arith.constant 0 : index
    %671 = vector.load %arg15[%c14_198, %c0_199] : memref<16x32xf32, #tpu.memory_space<vmem>>, vector<2x32xf32>
    tpu.vector_store %arg15[%c14_198, %c0_199], %670 {strides = array<i32>} : memref<16x32xf32, #tpu.memory_space<vmem>>, vector<2x32xf32>,
    %c0_200 = arith.constant 0 : index
    %c0_201 = arith.constant 0 : index
    %672 = vector.load %arg15[%c0_200, %c0_201] : memref<16x32xf32, #tpu.memory_space<vmem>>, vector<16x32xf32>
    %c2_202 = arith.constant 2 : index
    %c0_203 = arith.constant 0 : index
    %c0_204 = arith.constant 0 : index
    %673 = vector.load %arg5[%c2_202, %c0_203, %c0_204] : memref<3x32x128xf32, #tpu.memory_space<vmem>>, vector<1x32x128xf32>
    %674 = vector.shape_cast %673 : vector<1x32x128xf32> to vector<32x128xf32>
    %cst_205 = arith.constant dense<0.000000e+00> : vector<16x128xf32>
    %675 = tpu.matmul %672, %674, %cst_205 {dimension_numbers = #tpu.dot_dimension_numbers<[1], [0], [0], [1], [0, 0, 1, 1], [], []>} : vector<16x32xf32>, vector<32x128xf32>, vector<16x128xf32> -> vector<16x128xf32>
    %c3_206 = arith.constant 3 : index
    %c0_207 = arith.constant 0 : index
    %c0_208 = arith.constant 0 : index
    %676 = vector.load %arg7[%c3_206, %c0_207, %c0_208] : memref<4x1x128xf32, #tpu.memory_space<vmem>>, vector<1x1x128xf32>
    %677 = vector.shape_cast %676 : vector<1x1x128xf32> to vector<1x128xf32>
    %678 = vector.broadcast %677 : vector<1x128xf32> to vector<16x128xf32>
    %679 = arith.addf %675, %678 : vector<16x128xf32>
    %c3_209 = arith.constant 3 : index
    %c0_210 = arith.constant 0 : index
    %c0_211 = arith.constant 0 : index
    %680 = vector.load %arg6[%c3_209, %c0_210, %c0_211] : memref<4x32x128xf32, #tpu.memory_space<vmem>>, vector<1x32x128xf32>
    %681 = vector.shape_cast %680 : vector<1x32x128xf32> to vector<32x128xf32>
    %cst_212 = arith.constant 0.000000e+00 : f32
    %682 = vector.broadcast %cst_212 : f32 to vector<2x32xf32>
    %cst_213 = arith.constant 0.000000e+00 : f32
    %683 = vector.broadcast %cst_213 : f32 to vector<2x32xf32>
    %684 = vector.extract_strided_slice %679 {offsets = [0, 0], sizes = [2, 128], strides = [1, 1]} : vector<16x128xf32> to vector<2x128xf32>
    %cst_214 = arith.constant dense<0.000000e+00> : vector<2x128xf32>
    %685 = tpu.matmul %682, %681, %cst_214 {dimension_numbers = #tpu.dot_dimension_numbers<[1], [0], [0], [1], [0, 0, 1, 1], [], []>} : vector<2x32xf32>, vector<32x128xf32>, vector<2x128xf32> -> vector<2x128xf32>
    %686 = arith.addf %684, %685 : vector<2x128xf32>
    %687 = arith.negf %686 : vector<2x128xf32>
    %688 = math.exp %687 : vector<2x128xf32>
    %cst_215 = arith.constant 1.000000e+00 : f32
    %689 = vector.broadcast %cst_215 : f32 to vector<2x128xf32>
    %690 = arith.addf %689, %688 : vector<2x128xf32>
    %691 = arith.divf %689, %690 : vector<2x128xf32>
    %692 = vector.extract_strided_slice %691 {offsets = [0, 0], sizes = [2, 32], strides = [1, 1]} : vector<2x128xf32> to vector<2x32xf32>
    %693 = vector.extract_strided_slice %691 {offsets = [0, 32], sizes = [2, 32], strides = [1, 1]} : vector<2x128xf32> to vector<2x32xf32>
    %694 = vector.extract_strided_slice %691 {offsets = [0, 64], sizes = [2, 32], strides = [1, 1]} : vector<2x128xf32> to vector<2x32xf32>
    %cst_216 = arith.constant 2.000000e+00 : f32
    %695 = vector.broadcast %cst_216 : f32 to vector<2x32xf32>
    %696 = arith.mulf %695, %694 : vector<2x32xf32>
    %cst_217 = arith.constant 1.000000e+00 : f32
    %697 = vector.broadcast %cst_217 : f32 to vector<2x32xf32>
    %698 = arith.subf %696, %697 : vector<2x32xf32>
    %699 = vector.extract_strided_slice %691 {offsets = [0, 96], sizes = [2, 32], strides = [1, 1]} : vector<2x128xf32> to vector<2x32xf32>
    %700 = arith.mulf %693, %683 : vector<2x32xf32>
    %701 = arith.mulf %692, %698 : vector<2x32xf32>
    %702 = arith.addf %700, %701 : vector<2x32xf32>
    %703 = math.tanh %702 : vector<2x32xf32>
    %704 = arith.mulf %699, %703 : vector<2x32xf32>
    %705 = vector.extract_strided_slice %704 {offsets = [0, 0], sizes = [1, 32], strides = [1, 1]} : vector<2x32xf32> to vector<1x32xf32>
    %c0_218 = arith.constant 0 : index
    %c0_219 = arith.constant 0 : index
    %706 = vector.load %arg15[%c0_218, %c0_219] : memref<16x32xf32, #tpu.memory_space<vmem>>, vector<1x32xf32>
    tpu.vector_store %arg15[%c0_218, %c0_219], %705 {strides = array<i32>} : memref<16x32xf32, #tpu.memory_space<vmem>>, vector<1x32xf32>,
    %707 = vector.extract_strided_slice %704 {offsets = [1, 0], sizes = [1, 32], strides = [1, 1]} : vector<2x32xf32> to vector<1x32xf32>
    %c8_220 = arith.constant 8 : index
    %c0_221 = arith.constant 0 : index
    %708 = vector.load %arg15[%c8_220, %c0_221] : memref<16x32xf32, #tpu.memory_space<vmem>>, vector<1x32xf32>
    tpu.vector_store %arg15[%c8_220, %c0_221], %707 {strides = array<i32>} : memref<16x32xf32, #tpu.memory_space<vmem>>, vector<1x32xf32>,
    %709 = vector.extract_strided_slice %679 {offsets = [2, 0], sizes = [2, 128], strides = [1, 1]} : vector<16x128xf32> to vector<2x128xf32>
    %cst_222 = arith.constant dense<0.000000e+00> : vector<2x128xf32>
    %710 = tpu.matmul %704, %681, %cst_222 {dimension_numbers = #tpu.dot_dimension_numbers<[1], [0], [0], [1], [0, 0, 1, 1], [], []>} : vector<2x32xf32>, vector<32x128xf32>, vector<2x128xf32> -> vector<2x128xf32>
    %711 = arith.addf %709, %710 : vector<2x128xf32>
    %712 = arith.negf %711 : vector<2x128xf32>
    %713 = math.exp %712 : vector<2x128xf32>
    %cst_223 = arith.constant 1.000000e+00 : f32
    %714 = vector.broadcast %cst_223 : f32 to vector<2x128xf32>
    %715 = arith.addf %714, %713 : vector<2x128xf32>
    %716 = arith.divf %714, %715 : vector<2x128xf32>
    %717 = vector.extract_strided_slice %716 {offsets = [0, 0], sizes = [2, 32], strides = [1, 1]} : vector<2x128xf32> to vector<2x32xf32>
    %718 = vector.extract_strided_slice %716 {offsets = [0, 32], sizes = [2, 32], strides = [1, 1]} : vector<2x128xf32> to vector<2x32xf32>
    %719 = vector.extract_strided_slice %716 {offsets = [0, 64], sizes = [2, 32], strides = [1, 1]} : vector<2x128xf32> to vector<2x32xf32>
    %cst_224 = arith.constant 2.000000e+00 : f32
    %720 = vector.broadcast %cst_224 : f32 to vector<2x32xf32>
    %721 = arith.mulf %720, %719 : vector<2x32xf32>
    %cst_225 = arith.constant 1.000000e+00 : f32
    %722 = vector.broadcast %cst_225 : f32 to vector<2x32xf32>
    %723 = arith.subf %721, %722 : vector<2x32xf32>
    %724 = vector.extract_strided_slice %716 {offsets = [0, 96], sizes = [2, 32], strides = [1, 1]} : vector<2x128xf32> to vector<2x32xf32>
    %725 = arith.mulf %718, %702 : vector<2x32xf32>
    %726 = arith.mulf %717, %723 : vector<2x32xf32>
    %727 = arith.addf %725, %726 : vector<2x32xf32>
    %728 = math.tanh %727 : vector<2x32xf32>
    %729 = arith.mulf %724, %728 : vector<2x32xf32>
    %730 = vector.extract_strided_slice %729 {offsets = [0, 0], sizes = [1, 32], strides = [1, 1]} : vector<2x32xf32> to vector<1x32xf32>
    %c1_226 = arith.constant 1 : index
    %c0_227 = arith.constant 0 : index
    %731 = vector.load %arg15[%c1_226, %c0_227] : memref<16x32xf32, #tpu.memory_space<vmem>>, vector<1x32xf32>
    tpu.vector_store %arg15[%c1_226, %c0_227], %730 {strides = array<i32>} : memref<16x32xf32, #tpu.memory_space<vmem>>, vector<1x32xf32>,
    %732 = vector.extract_strided_slice %729 {offsets = [1, 0], sizes = [1, 32], strides = [1, 1]} : vector<2x32xf32> to vector<1x32xf32>
    %c9 = arith.constant 9 : index
    %c0_228 = arith.constant 0 : index
    %733 = vector.load %arg15[%c9, %c0_228] : memref<16x32xf32, #tpu.memory_space<vmem>>, vector<1x32xf32>
    tpu.vector_store %arg15[%c9, %c0_228], %732 {strides = array<i32>} : memref<16x32xf32, #tpu.memory_space<vmem>>, vector<1x32xf32>,
    %734 = vector.extract_strided_slice %679 {offsets = [4, 0], sizes = [2, 128], strides = [1, 1]} : vector<16x128xf32> to vector<2x128xf32>
    %cst_229 = arith.constant dense<0.000000e+00> : vector<2x128xf32>
    %735 = tpu.matmul %729, %681, %cst_229 {dimension_numbers = #tpu.dot_dimension_numbers<[1], [0], [0], [1], [0, 0, 1, 1], [], []>} : vector<2x32xf32>, vector<32x128xf32>, vector<2x128xf32> -> vector<2x128xf32>
    %736 = arith.addf %734, %735 : vector<2x128xf32>
    %737 = arith.negf %736 : vector<2x128xf32>
    %738 = math.exp %737 : vector<2x128xf32>
    %cst_230 = arith.constant 1.000000e+00 : f32
    %739 = vector.broadcast %cst_230 : f32 to vector<2x128xf32>
    %740 = arith.addf %739, %738 : vector<2x128xf32>
    %741 = arith.divf %739, %740 : vector<2x128xf32>
    %742 = vector.extract_strided_slice %741 {offsets = [0, 0], sizes = [2, 32], strides = [1, 1]} : vector<2x128xf32> to vector<2x32xf32>
    %743 = vector.extract_strided_slice %741 {offsets = [0, 32], sizes = [2, 32], strides = [1, 1]} : vector<2x128xf32> to vector<2x32xf32>
    %744 = vector.extract_strided_slice %741 {offsets = [0, 64], sizes = [2, 32], strides = [1, 1]} : vector<2x128xf32> to vector<2x32xf32>
    %cst_231 = arith.constant 2.000000e+00 : f32
    %745 = vector.broadcast %cst_231 : f32 to vector<2x32xf32>
    %746 = arith.mulf %745, %744 : vector<2x32xf32>
    %cst_232 = arith.constant 1.000000e+00 : f32
    %747 = vector.broadcast %cst_232 : f32 to vector<2x32xf32>
    %748 = arith.subf %746, %747 : vector<2x32xf32>
    %749 = vector.extract_strided_slice %741 {offsets = [0, 96], sizes = [2, 32], strides = [1, 1]} : vector<2x128xf32> to vector<2x32xf32>
    %750 = arith.mulf %743, %727 : vector<2x32xf32>
    %751 = arith.mulf %742, %748 : vector<2x32xf32>
    %752 = arith.addf %750, %751 : vector<2x32xf32>
    %753 = math.tanh %752 : vector<2x32xf32>
    %754 = arith.mulf %749, %753 : vector<2x32xf32>
    %755 = vector.extract_strided_slice %754 {offsets = [0, 0], sizes = [1, 32], strides = [1, 1]} : vector<2x32xf32> to vector<1x32xf32>
    %c2_233 = arith.constant 2 : index
    %c0_234 = arith.constant 0 : index
    %756 = vector.load %arg15[%c2_233, %c0_234] : memref<16x32xf32, #tpu.memory_space<vmem>>, vector<1x32xf32>
    tpu.vector_store %arg15[%c2_233, %c0_234], %755 {strides = array<i32>} : memref<16x32xf32, #tpu.memory_space<vmem>>, vector<1x32xf32>,
    %757 = vector.extract_strided_slice %754 {offsets = [1, 0], sizes = [1, 32], strides = [1, 1]} : vector<2x32xf32> to vector<1x32xf32>
    %c10_235 = arith.constant 10 : index
    %c0_236 = arith.constant 0 : index
    %758 = vector.load %arg15[%c10_235, %c0_236] : memref<16x32xf32, #tpu.memory_space<vmem>>, vector<1x32xf32>
    tpu.vector_store %arg15[%c10_235, %c0_236], %757 {strides = array<i32>} : memref<16x32xf32, #tpu.memory_space<vmem>>, vector<1x32xf32>,
    %759 = vector.extract_strided_slice %679 {offsets = [6, 0], sizes = [2, 128], strides = [1, 1]} : vector<16x128xf32> to vector<2x128xf32>
    %cst_237 = arith.constant dense<0.000000e+00> : vector<2x128xf32>
    %760 = tpu.matmul %754, %681, %cst_237 {dimension_numbers = #tpu.dot_dimension_numbers<[1], [0], [0], [1], [0, 0, 1, 1], [], []>} : vector<2x32xf32>, vector<32x128xf32>, vector<2x128xf32> -> vector<2x128xf32>
    %761 = arith.addf %759, %760 : vector<2x128xf32>
    %762 = arith.negf %761 : vector<2x128xf32>
    %763 = math.exp %762 : vector<2x128xf32>
    %cst_238 = arith.constant 1.000000e+00 : f32
    %764 = vector.broadcast %cst_238 : f32 to vector<2x128xf32>
    %765 = arith.addf %764, %763 : vector<2x128xf32>
    %766 = arith.divf %764, %765 : vector<2x128xf32>
    %767 = vector.extract_strided_slice %766 {offsets = [0, 0], sizes = [2, 32], strides = [1, 1]} : vector<2x128xf32> to vector<2x32xf32>
    %768 = vector.extract_strided_slice %766 {offsets = [0, 32], sizes = [2, 32], strides = [1, 1]} : vector<2x128xf32> to vector<2x32xf32>
    %769 = vector.extract_strided_slice %766 {offsets = [0, 64], sizes = [2, 32], strides = [1, 1]} : vector<2x128xf32> to vector<2x32xf32>
    %cst_239 = arith.constant 2.000000e+00 : f32
    %770 = vector.broadcast %cst_239 : f32 to vector<2x32xf32>
    %771 = arith.mulf %770, %769 : vector<2x32xf32>
    %cst_240 = arith.constant 1.000000e+00 : f32
    %772 = vector.broadcast %cst_240 : f32 to vector<2x32xf32>
    %773 = arith.subf %771, %772 : vector<2x32xf32>
    %774 = vector.extract_strided_slice %766 {offsets = [0, 96], sizes = [2, 32], strides = [1, 1]} : vector<2x128xf32> to vector<2x32xf32>
    %775 = arith.mulf %768, %752 : vector<2x32xf32>
    %776 = arith.mulf %767, %773 : vector<2x32xf32>
    %777 = arith.addf %775, %776 : vector<2x32xf32>
    %778 = math.tanh %777 : vector<2x32xf32>
    %779 = arith.mulf %774, %778 : vector<2x32xf32>
    %780 = vector.extract_strided_slice %779 {offsets = [0, 0], sizes = [1, 32], strides = [1, 1]} : vector<2x32xf32> to vector<1x32xf32>
    %c3_241 = arith.constant 3 : index
    %c0_242 = arith.constant 0 : index
    %781 = vector.load %arg15[%c3_241, %c0_242] : memref<16x32xf32, #tpu.memory_space<vmem>>, vector<1x32xf32>
    tpu.vector_store %arg15[%c3_241, %c0_242], %780 {strides = array<i32>} : memref<16x32xf32, #tpu.memory_space<vmem>>, vector<1x32xf32>,
    %782 = vector.extract_strided_slice %779 {offsets = [1, 0], sizes = [1, 32], strides = [1, 1]} : vector<2x32xf32> to vector<1x32xf32>
    %c11 = arith.constant 11 : index
    %c0_243 = arith.constant 0 : index
    %783 = vector.load %arg15[%c11, %c0_243] : memref<16x32xf32, #tpu.memory_space<vmem>>, vector<1x32xf32>
    tpu.vector_store %arg15[%c11, %c0_243], %782 {strides = array<i32>} : memref<16x32xf32, #tpu.memory_space<vmem>>, vector<1x32xf32>,
    %784 = vector.extract_strided_slice %679 {offsets = [8, 0], sizes = [2, 128], strides = [1, 1]} : vector<16x128xf32> to vector<2x128xf32>
    %cst_244 = arith.constant dense<0.000000e+00> : vector<2x128xf32>
    %785 = tpu.matmul %779, %681, %cst_244 {dimension_numbers = #tpu.dot_dimension_numbers<[1], [0], [0], [1], [0, 0, 1, 1], [], []>} : vector<2x32xf32>, vector<32x128xf32>, vector<2x128xf32> -> vector<2x128xf32>
    %786 = arith.addf %784, %785 : vector<2x128xf32>
    %787 = arith.negf %786 : vector<2x128xf32>
    %788 = math.exp %787 : vector<2x128xf32>
    %cst_245 = arith.constant 1.000000e+00 : f32
    %789 = vector.broadcast %cst_245 : f32 to vector<2x128xf32>
    %790 = arith.addf %789, %788 : vector<2x128xf32>
    %791 = arith.divf %789, %790 : vector<2x128xf32>
    %792 = vector.extract_strided_slice %791 {offsets = [0, 0], sizes = [2, 32], strides = [1, 1]} : vector<2x128xf32> to vector<2x32xf32>
    %793 = vector.extract_strided_slice %791 {offsets = [0, 32], sizes = [2, 32], strides = [1, 1]} : vector<2x128xf32> to vector<2x32xf32>
    %794 = vector.extract_strided_slice %791 {offsets = [0, 64], sizes = [2, 32], strides = [1, 1]} : vector<2x128xf32> to vector<2x32xf32>
    %cst_246 = arith.constant 2.000000e+00 : f32
    %795 = vector.broadcast %cst_246 : f32 to vector<2x32xf32>
    %796 = arith.mulf %795, %794 : vector<2x32xf32>
    %cst_247 = arith.constant 1.000000e+00 : f32
    %797 = vector.broadcast %cst_247 : f32 to vector<2x32xf32>
    %798 = arith.subf %796, %797 : vector<2x32xf32>
    %799 = vector.extract_strided_slice %791 {offsets = [0, 96], sizes = [2, 32], strides = [1, 1]} : vector<2x128xf32> to vector<2x32xf32>
    %800 = arith.mulf %793, %777 : vector<2x32xf32>
    %801 = arith.mulf %792, %798 : vector<2x32xf32>
    %802 = arith.addf %800, %801 : vector<2x32xf32>
    %803 = math.tanh %802 : vector<2x32xf32>
    %804 = arith.mulf %799, %803 : vector<2x32xf32>
    %805 = vector.extract_strided_slice %804 {offsets = [0, 0], sizes = [1, 32], strides = [1, 1]} : vector<2x32xf32> to vector<1x32xf32>
    %c4_248 = arith.constant 4 : index
    %c0_249 = arith.constant 0 : index
    %806 = vector.load %arg15[%c4_248, %c0_249] : memref<16x32xf32, #tpu.memory_space<vmem>>, vector<1x32xf32>
    tpu.vector_store %arg15[%c4_248, %c0_249], %805 {strides = array<i32>} : memref<16x32xf32, #tpu.memory_space<vmem>>, vector<1x32xf32>,
    %807 = vector.extract_strided_slice %804 {offsets = [1, 0], sizes = [1, 32], strides = [1, 1]} : vector<2x32xf32> to vector<1x32xf32>
    %c12_250 = arith.constant 12 : index
    %c0_251 = arith.constant 0 : index
    %808 = vector.load %arg15[%c12_250, %c0_251] : memref<16x32xf32, #tpu.memory_space<vmem>>, vector<1x32xf32>
    tpu.vector_store %arg15[%c12_250, %c0_251], %807 {strides = array<i32>} : memref<16x32xf32, #tpu.memory_space<vmem>>, vector<1x32xf32>,
    %809 = vector.extract_strided_slice %679 {offsets = [10, 0], sizes = [2, 128], strides = [1, 1]} : vector<16x128xf32> to vector<2x128xf32>
    %cst_252 = arith.constant dense<0.000000e+00> : vector<2x128xf32>
    %810 = tpu.matmul %804, %681, %cst_252 {dimension_numbers = #tpu.dot_dimension_numbers<[1], [0], [0], [1], [0, 0, 1, 1], [], []>} : vector<2x32xf32>, vector<32x128xf32>, vector<2x128xf32> -> vector<2x128xf32>
    %811 = arith.addf %809, %810 : vector<2x128xf32>
    %812 = arith.negf %811 : vector<2x128xf32>
    %813 = math.exp %812 : vector<2x128xf32>
    %cst_253 = arith.constant 1.000000e+00 : f32
    %814 = vector.broadcast %cst_253 : f32 to vector<2x128xf32>
    %815 = arith.addf %814, %813 : vector<2x128xf32>
    %816 = arith.divf %814, %815 : vector<2x128xf32>
    %817 = vector.extract_strided_slice %816 {offsets = [0, 0], sizes = [2, 32], strides = [1, 1]} : vector<2x128xf32> to vector<2x32xf32>
    %818 = vector.extract_strided_slice %816 {offsets = [0, 32], sizes = [2, 32], strides = [1, 1]} : vector<2x128xf32> to vector<2x32xf32>
    %819 = vector.extract_strided_slice %816 {offsets = [0, 64], sizes = [2, 32], strides = [1, 1]} : vector<2x128xf32> to vector<2x32xf32>
    %cst_254 = arith.constant 2.000000e+00 : f32
    %820 = vector.broadcast %cst_254 : f32 to vector<2x32xf32>
    %821 = arith.mulf %820, %819 : vector<2x32xf32>
    %cst_255 = arith.constant 1.000000e+00 : f32
    %822 = vector.broadcast %cst_255 : f32 to vector<2x32xf32>
    %823 = arith.subf %821, %822 : vector<2x32xf32>
    %824 = vector.extract_strided_slice %816 {offsets = [0, 96], sizes = [2, 32], strides = [1, 1]} : vector<2x128xf32> to vector<2x32xf32>
    %825 = arith.mulf %818, %802 : vector<2x32xf32>
    %826 = arith.mulf %817, %823 : vector<2x32xf32>
    %827 = arith.addf %825, %826 : vector<2x32xf32>
    %828 = math.tanh %827 : vector<2x32xf32>
    %829 = arith.mulf %824, %828 : vector<2x32xf32>
    %830 = vector.extract_strided_slice %829 {offsets = [0, 0], sizes = [1, 32], strides = [1, 1]} : vector<2x32xf32> to vector<1x32xf32>
    %c5_256 = arith.constant 5 : index
    %c0_257 = arith.constant 0 : index
    %831 = vector.load %arg15[%c5_256, %c0_257] : memref<16x32xf32, #tpu.memory_space<vmem>>, vector<1x32xf32>
    tpu.vector_store %arg15[%c5_256, %c0_257], %830 {strides = array<i32>} : memref<16x32xf32, #tpu.memory_space<vmem>>, vector<1x32xf32>,
    %832 = vector.extract_strided_slice %829 {offsets = [1, 0], sizes = [1, 32], strides = [1, 1]} : vector<2x32xf32> to vector<1x32xf32>
    %c13 = arith.constant 13 : index
    %c0_258 = arith.constant 0 : index
    %833 = vector.load %arg15[%c13, %c0_258] : memref<16x32xf32, #tpu.memory_space<vmem>>, vector<1x32xf32>
    tpu.vector_store %arg15[%c13, %c0_258], %832 {strides = array<i32>} : memref<16x32xf32, #tpu.memory_space<vmem>>, vector<1x32xf32>,
    %834 = vector.extract_strided_slice %679 {offsets = [12, 0], sizes = [2, 128], strides = [1, 1]} : vector<16x128xf32> to vector<2x128xf32>
    %cst_259 = arith.constant dense<0.000000e+00> : vector<2x128xf32>
    %835 = tpu.matmul %829, %681, %cst_259 {dimension_numbers = #tpu.dot_dimension_numbers<[1], [0], [0], [1], [0, 0, 1, 1], [], []>} : vector<2x32xf32>, vector<32x128xf32>, vector<2x128xf32> -> vector<2x128xf32>
    %836 = arith.addf %834, %835 : vector<2x128xf32>
    %837 = arith.negf %836 : vector<2x128xf32>
    %838 = math.exp %837 : vector<2x128xf32>
    %cst_260 = arith.constant 1.000000e+00 : f32
    %839 = vector.broadcast %cst_260 : f32 to vector<2x128xf32>
    %840 = arith.addf %839, %838 : vector<2x128xf32>
    %841 = arith.divf %839, %840 : vector<2x128xf32>
    %842 = vector.extract_strided_slice %841 {offsets = [0, 0], sizes = [2, 32], strides = [1, 1]} : vector<2x128xf32> to vector<2x32xf32>
    %843 = vector.extract_strided_slice %841 {offsets = [0, 32], sizes = [2, 32], strides = [1, 1]} : vector<2x128xf32> to vector<2x32xf32>
    %844 = vector.extract_strided_slice %841 {offsets = [0, 64], sizes = [2, 32], strides = [1, 1]} : vector<2x128xf32> to vector<2x32xf32>
    %cst_261 = arith.constant 2.000000e+00 : f32
    %845 = vector.broadcast %cst_261 : f32 to vector<2x32xf32>
    %846 = arith.mulf %845, %844 : vector<2x32xf32>
    %cst_262 = arith.constant 1.000000e+00 : f32
    %847 = vector.broadcast %cst_262 : f32 to vector<2x32xf32>
    %848 = arith.subf %846, %847 : vector<2x32xf32>
    %849 = vector.extract_strided_slice %841 {offsets = [0, 96], sizes = [2, 32], strides = [1, 1]} : vector<2x128xf32> to vector<2x32xf32>
    %850 = arith.mulf %843, %827 : vector<2x32xf32>
    %851 = arith.mulf %842, %848 : vector<2x32xf32>
    %852 = arith.addf %850, %851 : vector<2x32xf32>
    %853 = math.tanh %852 : vector<2x32xf32>
    %854 = arith.mulf %849, %853 : vector<2x32xf32>
    %855 = vector.extract_strided_slice %854 {offsets = [0, 0], sizes = [1, 32], strides = [1, 1]} : vector<2x32xf32> to vector<1x32xf32>
    %c6_263 = arith.constant 6 : index
    %c0_264 = arith.constant 0 : index
    %856 = vector.load %arg15[%c6_263, %c0_264] : memref<16x32xf32, #tpu.memory_space<vmem>>, vector<1x32xf32>
    tpu.vector_store %arg15[%c6_263, %c0_264], %855 {strides = array<i32>} : memref<16x32xf32, #tpu.memory_space<vmem>>, vector<1x32xf32>,
    %857 = vector.extract_strided_slice %854 {offsets = [1, 0], sizes = [1, 32], strides = [1, 1]} : vector<2x32xf32> to vector<1x32xf32>
    %c14_265 = arith.constant 14 : index
    %c0_266 = arith.constant 0 : index
    %858 = vector.load %arg15[%c14_265, %c0_266] : memref<16x32xf32, #tpu.memory_space<vmem>>, vector<1x32xf32>
    tpu.vector_store %arg15[%c14_265, %c0_266], %857 {strides = array<i32>} : memref<16x32xf32, #tpu.memory_space<vmem>>, vector<1x32xf32>,
    %859 = vector.extract_strided_slice %679 {offsets = [14, 0], sizes = [2, 128], strides = [1, 1]} : vector<16x128xf32> to vector<2x128xf32>
    %cst_267 = arith.constant dense<0.000000e+00> : vector<2x128xf32>
    %860 = tpu.matmul %854, %681, %cst_267 {dimension_numbers = #tpu.dot_dimension_numbers<[1], [0], [0], [1], [0, 0, 1, 1], [], []>} : vector<2x32xf32>, vector<32x128xf32>, vector<2x128xf32> -> vector<2x128xf32>
    %861 = arith.addf %859, %860 : vector<2x128xf32>
    %862 = arith.negf %861 : vector<2x128xf32>
    %863 = math.exp %862 : vector<2x128xf32>
    %cst_268 = arith.constant 1.000000e+00 : f32
    %864 = vector.broadcast %cst_268 : f32 to vector<2x128xf32>
    %865 = arith.addf %864, %863 : vector<2x128xf32>
    %866 = arith.divf %864, %865 : vector<2x128xf32>
    %867 = vector.extract_strided_slice %866 {offsets = [0, 0], sizes = [2, 32], strides = [1, 1]} : vector<2x128xf32> to vector<2x32xf32>
    %868 = vector.extract_strided_slice %866 {offsets = [0, 32], sizes = [2, 32], strides = [1, 1]} : vector<2x128xf32> to vector<2x32xf32>
    %869 = vector.extract_strided_slice %866 {offsets = [0, 64], sizes = [2, 32], strides = [1, 1]} : vector<2x128xf32> to vector<2x32xf32>
    %cst_269 = arith.constant 2.000000e+00 : f32
    %870 = vector.broadcast %cst_269 : f32 to vector<2x32xf32>
    %871 = arith.mulf %870, %869 : vector<2x32xf32>
    %cst_270 = arith.constant 1.000000e+00 : f32
    %872 = vector.broadcast %cst_270 : f32 to vector<2x32xf32>
    %873 = arith.subf %871, %872 : vector<2x32xf32>
    %874 = vector.extract_strided_slice %866 {offsets = [0, 96], sizes = [2, 32], strides = [1, 1]} : vector<2x128xf32> to vector<2x32xf32>
    %875 = arith.mulf %868, %852 : vector<2x32xf32>
    %876 = arith.mulf %867, %873 : vector<2x32xf32>
    %877 = arith.addf %875, %876 : vector<2x32xf32>
    %878 = math.tanh %877 : vector<2x32xf32>
    %879 = arith.mulf %874, %878 : vector<2x32xf32>
    %880 = vector.extract_strided_slice %879 {offsets = [0, 0], sizes = [1, 32], strides = [1, 1]} : vector<2x32xf32> to vector<1x32xf32>
    %c7_271 = arith.constant 7 : index
    %c0_272 = arith.constant 0 : index
    %881 = vector.load %arg15[%c7_271, %c0_272] : memref<16x32xf32, #tpu.memory_space<vmem>>, vector<1x32xf32>
    tpu.vector_store %arg15[%c7_271, %c0_272], %880 {strides = array<i32>} : memref<16x32xf32, #tpu.memory_space<vmem>>, vector<1x32xf32>,
    %882 = vector.extract_strided_slice %879 {offsets = [1, 0], sizes = [1, 32], strides = [1, 1]} : vector<2x32xf32> to vector<1x32xf32>
    %c15 = arith.constant 15 : index
    %c0_273 = arith.constant 0 : index
    %883 = vector.load %arg15[%c15, %c0_273] : memref<16x32xf32, #tpu.memory_space<vmem>>, vector<1x32xf32>
    tpu.vector_store %arg15[%c15, %c0_273], %882 {strides = array<i32>} : memref<16x32xf32, #tpu.memory_space<vmem>>, vector<1x32xf32>,
    %c0_274 = arith.constant 0 : index
    %c0_275 = arith.constant 0 : index
    %884 = vector.load %arg15[%c0_274, %c0_275] : memref<16x32xf32, #tpu.memory_space<vmem>>, vector<16x32xf32>
    %c0_i32_276 = arith.constant 0 : i32
    %885 = tpu.memref_slice %arg19[%c0_i32_276] : memref<3x!tpu.dma_semaphore, #tpu.memory_space<semaphore_mem>> -> memref<1x!tpu.dma_semaphore, #tpu.memory_space<semaphore_mem>>
    %886 = tpu.memref_squeeze %885 : memref<1x!tpu.dma_semaphore, #tpu.memory_space<semaphore_mem>> -> memref<!tpu.dma_semaphore, #tpu.memory_space<semaphore_mem>>
    tpu.wait_dma2 semaphore(%886 : memref<!tpu.dma_semaphore, #tpu.memory_space<semaphore_mem>>) src(%arg8 : memref<32x1024xbf16, #tpu.memory_space<any>>) dst(%arg16 : memref<32x1024xbf16, #tpu.memory_space<vmem>>)
    %887 = arith.truncf %884 : vector<16x32xf32> to vector<16x32xbf16>
    %c0_277 = arith.constant 0 : index
    %c0_278 = arith.constant 0 : index
    %888 = vector.load %arg16[%c0_277, %c0_278] : memref<32x1024xbf16, #tpu.memory_space<vmem>>, vector<32x1024xbf16>
    %cst_279 = arith.constant dense<0.000000e+00> : vector<16x1024xf32>
    %889 = tpu.matmul %887, %888, %cst_279 {dimension_numbers = #tpu.dot_dimension_numbers<[1], [0], [0], [1], [0, 0, 1, 1], [], []>} : vector<16x32xbf16>, vector<32x1024xbf16>, vector<16x1024xf32> -> vector<16x1024xf32>
    %c0_280 = arith.constant 0 : index
    %c0_281 = arith.constant 0 : index
    %890 = vector.load %arg11[%c0_280, %c0_281] : memref<1x1024xf32, #tpu.memory_space<vmem>>, vector<1x1024xf32>
    %891 = vector.broadcast %890 : vector<1x1024xf32> to vector<16x1024xf32>
    %892 = arith.addf %889, %891 : vector<16x1024xf32>
    %cst_282 = arith.constant 0.000000e+00 : f32
    %893 = vector.broadcast %cst_282 : f32 to vector<16x1024xf32>
    %894 = arith.maximumf %892, %893 : vector<16x1024xf32>
    %c1_i32_283 = arith.constant 1 : i32
    %895 = tpu.memref_slice %arg19[%c1_i32_283] : memref<3x!tpu.dma_semaphore, #tpu.memory_space<semaphore_mem>> -> memref<1x!tpu.dma_semaphore, #tpu.memory_space<semaphore_mem>>
    %896 = tpu.memref_squeeze %895 : memref<1x!tpu.dma_semaphore, #tpu.memory_space<semaphore_mem>> -> memref<!tpu.dma_semaphore, #tpu.memory_space<semaphore_mem>>
    tpu.wait_dma2 semaphore(%896 : memref<!tpu.dma_semaphore, #tpu.memory_space<semaphore_mem>>) src(%arg9 : memref<1024x512xbf16, #tpu.memory_space<any>>) dst(%arg17 : memref<1024x512xbf16, #tpu.memory_space<vmem>>)
    %897 = arith.truncf %894 : vector<16x1024xf32> to vector<16x1024xbf16>
    %c0_284 = arith.constant 0 : index
    %c0_285 = arith.constant 0 : index
    %898 = vector.load %arg17[%c0_284, %c0_285] : memref<1024x512xbf16, #tpu.memory_space<vmem>>, vector<1024x512xbf16>
    %cst_286 = arith.constant dense<0.000000e+00> : vector<16x512xf32>
    %899 = tpu.matmul %897, %898, %cst_286 {dimension_numbers = #tpu.dot_dimension_numbers<[1], [0], [0], [1], [0, 0, 1, 1], [], []>} : vector<16x1024xbf16>, vector<1024x512xbf16>, vector<16x512xf32> -> vector<16x512xf32>
    %c0_287 = arith.constant 0 : index
    %c0_288 = arith.constant 0 : index
    %900 = vector.load %arg12[%c0_287, %c0_288] : memref<1x512xf32, #tpu.memory_space<vmem>>, vector<1x512xf32>
    %901 = vector.broadcast %900 : vector<1x512xf32> to vector<16x512xf32>
    %902 = arith.addf %899, %901 : vector<16x512xf32>
    %cst_289 = arith.constant 0.000000e+00 : f32
    %903 = vector.broadcast %cst_289 : f32 to vector<16x512xf32>
    %904 = arith.maximumf %902, %903 : vector<16x512xf32>
    %c2_i32_290 = arith.constant 2 : i32
    %905 = tpu.memref_slice %arg19[%c2_i32_290] : memref<3x!tpu.dma_semaphore, #tpu.memory_space<semaphore_mem>> -> memref<1x!tpu.dma_semaphore, #tpu.memory_space<semaphore_mem>>
    %906 = tpu.memref_squeeze %905 : memref<1x!tpu.dma_semaphore, #tpu.memory_space<semaphore_mem>> -> memref<!tpu.dma_semaphore, #tpu.memory_space<semaphore_mem>>
    tpu.wait_dma2 semaphore(%906 : memref<!tpu.dma_semaphore, #tpu.memory_space<semaphore_mem>>) src(%arg10 : memref<512x256xbf16, #tpu.memory_space<any>>) dst(%arg18 : memref<512x256xbf16, #tpu.memory_space<vmem>>)
    %907 = arith.truncf %904 : vector<16x512xf32> to vector<16x512xbf16>
    %c0_291 = arith.constant 0 : index
    %c0_292 = arith.constant 0 : index
    %908 = vector.load %arg18[%c0_291, %c0_292] : memref<512x256xbf16, #tpu.memory_space<vmem>>, vector<512x256xbf16>
    %cst_293 = arith.constant dense<0.000000e+00> : vector<16x256xf32>
    %909 = tpu.matmul %907, %908, %cst_293 {dimension_numbers = #tpu.dot_dimension_numbers<[1], [0], [0], [1], [0, 0, 1, 1], [], []>} : vector<16x512xbf16>, vector<512x256xbf16>, vector<16x256xf32> -> vector<16x256xf32>
    %c0_294 = arith.constant 0 : index
    %c0_295 = arith.constant 0 : index
    %910 = vector.load %arg13[%c0_294, %c0_295] : memref<1x256xf32, #tpu.memory_space<vmem>>, vector<1x256xf32>
    %911 = vector.broadcast %910 : vector<1x256xf32> to vector<16x256xf32>
    %912 = arith.addf %909, %911 : vector<16x256xf32>
    %913 = vector.extract_strided_slice %912 {offsets = [0, 0], sizes = [8, 256], strides = [1, 1]} : vector<16x256xf32> to vector<8x256xf32>
    %c0_296 = arith.constant 0 : index
    %c0_297 = arith.constant 0 : index
    %c0_298 = arith.constant 0 : index
    %914 = vector.load %arg14[%c0_296, %c0_297, %c0_298] : memref<2x8x256xf32, #tpu.memory_space<vmem>>, vector<1x8x256xf32>
    %915 = vector.shape_cast %914 : vector<1x8x256xf32> to vector<8x256xf32>
    %916 = vector.shape_cast %913 : vector<8x256xf32> to vector<1x8x256xf32>
    tpu.vector_store %arg14[%c0_296, %c0_297, %c0_298], %916 {strides = array<i32>} : memref<2x8x256xf32, #tpu.memory_space<vmem>>, vector<1x8x256xf32>,
    %917 = vector.extract_strided_slice %912 {offsets = [8, 0], sizes = [8, 256], strides = [1, 1]} : vector<16x256xf32> to vector<8x256xf32>
    %c1_299 = arith.constant 1 : index
    %c0_300 = arith.constant 0 : index
    %c0_301 = arith.constant 0 : index
    %918 = vector.load %arg14[%c1_299, %c0_300, %c0_301] : memref<2x8x256xf32, #tpu.memory_space<vmem>>, vector<1x8x256xf32>
    %919 = vector.shape_cast %918 : vector<1x8x256xf32> to vector<8x256xf32>
    %920 = vector.shape_cast %917 : vector<8x256xf32> to vector<1x8x256xf32>
    tpu.vector_store %arg14[%c1_299, %c0_300, %c0_301], %920 {strides = array<i32>} : memref<2x8x256xf32, #tpu.memory_space<vmem>>, vector<1x8x256xf32>,
    return
  }
}

</mosaic_0001>

<bundles_post_ra>
// kernel: quantum_brain_forward.1
= control target key start
LH: loop header
LB: loop body
LE: loop exit
PB: predicated region body
PF: predicated region fallthrough
CT: control target
= control target key end

     0   :  { %19 = vsyncpa [#allocation8], 0  ;;  %s10209_s0 = inlined_call_operand.hbm [shape: f32[2,8,8], index: 0, kind: input, shape index: {}]   ;;  %s10210_s1 = inlined_call_operand.vmem [shape: f32[8,8], index: 1, kind: input, shape index: {}]   ;;  %s10211_s2 = inlined_call_operand.vmem [shape: f32[1,8], index: 2, kind: input, shape index: {}]   ;;  %s10212_s3 = inlined_call_operand.hbm [shape: f32[8], index: 3, kind: input, shape index: {}]   ;;  %s10213_s4 = inlined_call_operand.vmem [shape: f32[1,128], index: 4, kind: input, shape index: {}]   ;;  %s10214_s5 = inlined_call_operand.hbm [shape: f32[3,32,128], index: 5, kind: input, shape index: {}]   ;;  %s10215_s6 = inlined_call_operand.hbm [shape: f32[4,32,128], index: 6, kind: input, shape index: {}]   ;;  %s10216_s7 = inlined_call_operand.hbm [shape: f32[4,1,128], index: 7, kind: input, shape index: {}]   ;;  %s10217_s8 = inlined_call_operand.hbm [shape: bf16[32,1024], index: 8, kind: input, shape index: {}]   ;;  %s10218_s9 = inlined_call_operand.hbm [shape: bf16[1024,512], index: 9, kind: input, shape index: {}]   ;;  %s10219_s10 = inlined_call_operand.hbm [shape: bf16[512,256], index: 10, kind: input, shape index: {}]   ;;  %s10220_s11 = inlined_call_operand.hbm [shape: f32[1,1024], index: 11, kind: input, shape index: {}]   ;;  %s10221_s12 = inlined_call_operand.hbm [shape: f32[1,512], index: 12, kind: input, shape index: {}]   ;;  %s10222_s13 = inlined_call_operand.vmem [shape: f32[1,256], index: 13, kind: input, shape index: {}]   ;;  %s10223_s14 = inlined_call_operand.hbm [shape: f32[2,8,256], index: 14, kind: output, shape index: {}]  }
   0x1   :  { %20 = vsyncpa [#allocation10], 0 }
   0x2   :  { %21 = vsyncpa [#allocation13], 0 }
   0x3   :  { %22 = vsyncpa [#allocation16], 0 }
   0x4   :  { %23 = vsyncpa [#allocation19], 0 }
   0x5   :  { %24 = vsyncpa [#allocation9], 0  ;;  %s9165_s29 = smov [#allocation12]   ;;  %s9166_s15 = smov [#allocation15]  }
   0x6   :  { %s56_s30 = sshll.u32 %s9165_s29, 4  ;;  %s80_s16 = sshll.u32 %s9166_s15, 4  ;;  %s57_s30 = int_to_ptr.vmem [resolvable:$true] %s56_s30  ;;  %s81_s16 = int_to_ptr.vmem [resolvable:$true] %s80_s16 }
   0x7   :  { %s8947_s17 = scalar_lea.vmem %s57_s30, 1536  ;;  %p8952_p1 = scmp.lt.s32.totalorder %s57_s30, %s57_s30 }
   0x8   :  { %p8948_p0 = scmp.ne.s32.totalorder %s57_s30, %s8947_s17  ;;  %p8953_p2 = scmp.lt.s32.totalorder %s8947_s17, %s8947_s17 }
   0xa   :  { %p8954_p3 = por %p8953_p2, %p8952_p1 }
   0xc   :  { %p8955_p4 = pnand %p8954_p3, %p8948_p0 }
   0xe   :  { %8958 = shalt.err (!%p8955_p4)
}
   0xf   :  { %s9167_s18 = smov 128   ;;  %s9168_s19 = smov 8  }
  0x10   :  { %62 = dma.hbm_to_vmem [thread:$0]  %s10214_s5, 1536, %s57_s30, [#allocation13], %s9167_s18, %s9167_s18, %s9168_s19  }
  0x11   :  { %s8967_s22 = scalar_lea.vmem %s81_s16, 64  ;;  %p8972_p6 = scmp.lt.s32.totalorder %s81_s16, %s81_s16 }
  0x12   :  { %p8968_p5 = scmp.ne.s32.totalorder %s81_s16, %s8967_s22  ;;  %p8973_p7 = scmp.lt.s32.totalorder %s8967_s22, %s8967_s22 }
  0x14   :  { %p8974_p8 = por %p8973_p7, %p8972_p6 }
  0x16   :  { %p8975_p9 = pnand %p8974_p8, %p8968_p5 }
  0x18   :  { %8978 = shalt.err (!%p8975_p9)
}
  0x19   :  { %s9169_s23 = smov 16   ;;  %s9170_s24 = smov 1  }
  0x1a   :  { %86 = dma.hbm_to_vmem [thread:$0]  %s10216_s7, 64, %s81_s16, [#allocation16], %s9169_s23, %s9169_s23, %s9170_s24  }
  0x1b   :  { %s9171_s27 = smov [#allocation7]   ;;  %s9172_s29 = smov [#allocation14]  }
  0x1c   :  { %s30_s28 = sshll.u32 %s9171_s27, 4  ;;  %s68_s5 = sshll.u32 %s9172_s29, 4  ;;  %s31_s28 = int_to_ptr.vmem [resolvable:$true] %s30_s28  ;;  %s69_s5 = int_to_ptr.vmem [resolvable:$true] %s68_s5 }
  0x1d   :  { %s8987_s30 = scalar_lea.vmem %s31_s28, 256  ;;  %p8992_p11 = scmp.lt.s32.totalorder %s31_s28, %s31_s28 }
  0x1e   :  { %p8988_p10 = scmp.ne.s32.totalorder %s31_s28, %s8987_s30  ;;  %p8993_p12 = scmp.lt.s32.totalorder %s8987_s30, %s8987_s30 }
  0x20   :  { %p8994_p13 = por %p8993_p12, %p8992_p11 }
  0x22   :  { %p8995_p0 = pnand %p8994_p13, %p8988_p10 }
  0x24   :  { %8998 = shalt.err (!%p8995_p0)
}
  0x25   :  { %36 = dma.hbm_to_vmem [thread:$0]  %s10209_s0, 256, %s31_s28, [#allocation8], %s9167_s18, %s9167_s18, %s9168_s19  }
  0x26   :  { %s9173_s7 = smov [#allocation11]   ;;  %s9015_s21 = scalar_lea.vmem %s69_s5, 2048 }
  0x27   :  { %48 = dma.hbm_to_smem %s10212_s3, 16, %s9173_s7, [#allocation10]  }
  0x28   :  { %p9016_p1 = scmp.ne.s32.totalorder %s69_s5, %s9015_s21  ;;  %p9020_p2 = scmp.lt.s32.totalorder %s69_s5, %s69_s5 }
  0x29   :  { %p9021_p3 = scmp.lt.s32.totalorder %s9015_s21, %s9015_s21 }
  0x2b   :  { %p9022_p4 = por %p9021_p3, %p9020_p2 }
  0x2d   :  { %p9023_p5 = pnand %p9022_p4, %p9016_p1 }
  0x2f   :  { %9026 = shalt.err (!%p9023_p5)
}
  0x30   :  { %74 = dma.hbm_to_vmem [thread:$0]  %s10215_s6, 2048, %s69_s5, [#allocation13], %s9167_s18, %s9167_s18, %s9168_s19  }
  0x31   :  { %s9174_s0 = smov [#allocation17]   ;;  %s9175_s26 = smov [#allocation18]  }
  0x32   :  { %s93_s25 = sshll.u32 %s9174_s0, 4  ;;  %s103_s3 = sshll.u32 %s9175_s26, 4  ;;  %s94_s25 = int_to_ptr.vmem [resolvable:$true] %s93_s25  ;;  %s104_s3 = int_to_ptr.vmem [resolvable:$true] %s103_s3 }
  0x33   :  { %s9035_s27 = scalar_lea.vmem %s94_s25, 128  ;;  %p9040_p7 = scmp.lt.s32.totalorder %s94_s25, %s94_s25 }
  0x34   :  { %p9036_p6 = scmp.ne.s32.totalorder %s94_s25, %s9035_s27  ;;  %p9041_p8 = scmp.lt.s32.totalorder %s9035_s27, %s9035_s27 }
  0x36   :  { %p9042_p9 = por %p9041_p8, %p9040_p7 }
  0x38   :  { %p9043_p10 = pnand %p9042_p9, %p9036_p6 }
  0x3a   :  { %9046 = shalt.err (!%p9043_p10)
}
  0x3b   :  { %96 = dma.hbm_to_vmem [thread:$0]  %s10220_s11, 128, %s94_s25, [#allocation16]  }
  0x3c   :  { %s9055_s30 = scalar_lea.vmem %s104_s3, 64  ;;  %p9060_p12 = scmp.lt.s32.totalorder %s104_s3, %s104_s3 }
  0x3d   :  { %p9056_p11 = scmp.ne.s32.totalorder %s104_s3, %s9055_s30  ;;  %p9061_p13 = scmp.lt.s32.totalorder %s9055_s30, %s9055_s30 }
  0x3f   :  { %p9062_p0 = por %p9061_p13, %p9060_p12 }
  0x41   :  { %p9063_p1 = pnand %p9062_p0, %p9056_p11 }
  0x43   :  { %9066 = shalt.err (!%p9063_p1)
}
  0x44   :  { %106 = dma.hbm_to_vmem [thread:$0]  %s10221_s12, 64, %s104_s3, [#allocation19]  }
  0x45   :  { %9147 = dma.done.wait [#allocation8], 256  }
  0x46   :  { %9148 = vsyncadd [#allocation8], 4294967040 }
  0x47   :  { %9149 = dma.done.wait [#allocation10], 16  }
  0x48   :  { %9150 = vsyncadd [#allocation10], 4294967280 }
  0x49   :  { %9151 = dma.done.wait [#allocation13], 3584  }
  0x4a   :  { %9152 = vsyncadd [#allocation13], 4294963712 }
  0x4b   :  { %9153 = dma.done.wait [#allocation16], 192  }
  0x4c   :  { %9154 = vsyncadd [#allocation16], 4294967104 }
  0x4d   :  { %9155 = dma.done.wait [#allocation19], 64  }
  0x4e   :  { %9156 = vsyncadd [#allocation19], 4294967232 }
  0x4f   :  { %130 = sfence }
  0x50   :  { %v175_v0 = vld [vmem:[#allocation7] sm:$0xff]  ;;  %v7217_v1 = vld [vmem:[%s10211_s2] ss:$0 sm:$0xff]  ;;  %vm186_vm0 = vcmask 64512   ;;  %v176_v2 = vld [vmem:[#allocation7 + $0x8] sm:$0xff]  ;;  %v9176_v7 = vmov 0.0   ;;  %v196_v9 = vlaneseq }
  0x51   :  { %v184_v3 = vmul.f32 %v7217_v1, %v175_v0  ;;  %v185_v4 = vmul.f32 %v7217_v1, %v176_v2  ;;  %7846 = vmatprep.subr.mxu0 %v9176_v7  ;;  %v193_v8 = vld [vmem:[%s10210_s1] sm:$0xff]  ;;  %7851 = vmatprep.subr.mxu1 %v9176_v7  ;;  %vm9177_vm1 = vmmov 0   ;;  %vm206_vm2 = vcmask 1041409   ;;  %s167_s1 = sld [smem:[#allocation11]]  ;;  %v9333_v49 = vld [vmem:[#allocation14 + $0x18] sm:$0xff]  ;;  %v9335_v50 = vld [vmem:[#allocation14 + $0x10] sm:$0xff] }
  0x52   :  { %7847 = vmatpush3.xpose.msk.msra.mxu0 %vm186_vm0, %v193_v8  ;;  %7848 = vmatprep.mubr.msk.f32.mxu0 %vm9177_vm1, %v9176_v7  ;;  %v197_v10 = vand.u32 127, %v196_v9  ;;  %v9311_v11 = vshrl.u32 %v196_v9, 7  ;;  %s7213_s2 = sld [smem:[#allocation11 + $0x4]]  ;;  %v9340_v51 = vld [vmem:[#allocation14 + $0x8] sm:$0xff]  ;;  %v9346_v52 = vld [vmem:[#allocation14] sm:$0xff]  ;;  %vm536_vm3 = vcmask 1040384  }
  0x53   :  { %v187_v5 = vsel %vm186_vm0, %v184_v3, 0.0  ;;  %v190_v6 = vsel %vm186_vm0, %v185_v4, 0.0  ;;  %7862 = vmatprep.subr.mxu0 %v9176_v7  ;;  %7859 = vmatprep.mubr.msk.f32.mxu1 %vm9177_vm1, %v9176_v7  ;;  %s7210_s15 = sld [smem:[#allocation11 + $0x1]]  ;;  %s9181_s0 = smov 32   ;;  %vm695_vm4 = vcmask 254976   ;;  %vm584_vm5 = vcmask 261120  }
  0x54   :  { %188 = vadd.xlane.f32.xlu0 %v187_v5  ;;  %v200_v13 = vsub.s32 %v197_v10, %v9311_v11  ;;  %s7211_s17 = sld [smem:[#allocation11 + $0x2]]  ;;  %v9320_v27 = vsub.s32 0, %v9311_v11  ;;  %v9323_v36 = vsub.s32 1, %v9311_v11  ;;  %7852 = vmatpush3.msra.mxu1 %v9333_v49  ;;  %vm1776_vm6 = vcmask 257026   ;;  %s9182_s25 = smov [#allocation3]  }
  0x55   :  { %s7214_s7 = sld [smem:[#allocation11 + $0x5]]  ;;  %7853 = vmatprep.subr.mxu1 %v9176_v7  ;;  %vm2002_vm7 = vcmask 261126   ;;  %vm1889_vm8 = vcmask 259076   ;;  %vm3624_vm9 = vcmask 253952   ;;  %vm3626_vm10 = vcmask 254977   ;;  %s139_s26 = sshll.u32 %s9182_s25, 4  ;;  %s140_s26 = int_to_ptr.vmem [resolvable:$true] %s139_s26 }
  0x56   :  { %s7215_s16 = sld [smem:[#allocation11 + $0x6]]  ;;  %7854 = vmatpush3.msra.mxu1 %v9335_v50  ;;  %vm3736_vm11 = vcmask 256002   ;;  %vm3738_vm12 = vcmask 257027   ;;  %vm3966_vm13 = vcmask 260102   ;;  %vm3968_vm14 = vcmask 261127   ;;  %s9183_s3 = smov [#allocation4]  }
  0x57   :  { %v300_v23 = vstv %s167_s1  ;;  %7855 = vmatprep.subr.mxu1 %v9176_v7  ;;  %s7212_s20 = sld [smem:[#allocation11 + $0x3]]  ;;  %vm3851_vm15 = vcmask 258052   ;;  %s151_s27 = sshll.u32 %s9183_s3, 4  ;;  %s152_s27 = int_to_ptr.vmem [resolvable:$true] %s151_s27 }
  0x58   :  { %191 = vadd.xlane.f32.xlu0 %v190_v6  ;;  %v302_v28 = vstv %s7213_s2  ;;  %7856 = vmatpush3.msra.mxu1 %v9340_v51  ;;  %s7216_s21 = sld [smem:[#allocation11 + $0x7]]  ;;  %s9075_s28 = scalar_lea.vmem %s140_s26, 2048 }
  0x59   :  { %v304_v25 = vstv %s7210_s15  ;;  %7857 = vmatprep.subr.mxu1 %v9176_v7  ;;  %p9076_p2 = scmp.ne.s32.totalorder %s140_s26, %s9075_s28  ;;  %p9080_p3 = scmp.lt.s32.totalorder %s140_s26, %s140_s26 }
  0x5a   :  { %v308_v26 = vstv %s7211_s17  ;;  %7858 = vmatpush3.msra.mxu1 %v9346_v52  ;;  %p9081_p4 = scmp.lt.s32.totalorder %s9075_s28, %s9075_s28 }
  0x5b   :  { %v306_v31 = vstv %s7214_s7  ;;  %7860 = vmatmul.mubr.f32.vlgmr.msra.gmra.mxu1 %v9176_v7  ;;  %7873 = vmatprep.subr.mxu1 %v9176_v7 }
  0x5c   :  { %v310_v32 = vstv %s7215_s16  ;;  %7874 = vmatpush3.msra.mxu1 %v9333_v49  ;;  %7881 = vmatprep.mubr.msk.f32.mxu1 %vm9177_vm1, %v9176_v7  ;;  %p9082_p5 = por %p9081_p4, %p9080_p3 }
  0x5d   :  { %7875 = vmatprep.subr.mxu1 %v9176_v7 }
  0x5e   :  { %7876 = vmatpush3.msra.mxu1 %v9335_v50  ;;  %p9083_p6 = pnand %p9082_p5, %p9076_p2 }
  0x5f   :  { %7877 = vmatprep.subr.mxu1 %v9176_v7 }
  0x60   :  { %7878 = vmatpush3.msra.mxu1 %v9340_v51 }
  0x61   :  { %7879 = vmatprep.subr.mxu1 %v9176_v7 }
  0x62   :  { %7880 = vmatpush3.msra.mxu1 %v9346_v52 }
  0x63   :  { %7895 = vmatprep.subr.mxu1 %v9176_v7 }
  0xdd   :  { %v189_v12 = vpop.xlane.xlu0 %188 }
  0xde   :  { %v201_v15 = vrot.slane %v189_v12, %v200_v13 }
  0xe0   :  { %v296_v20 = vmul.f32 %v201_v15, %v193_v8 }
  0xe1   :  { %v192_v14 = vpop.xlane.xlu0 %191 }
  0xe2   :  { %v205_v16 = vrot.slane %v192_v14, %v200_v13  ;;  %v297_v21 = vsel %vm186_vm0, %v296_v20, 0.0  ;;  %v9178_v14 = vmov 1966171168   ;;  %v338_v20 = vstv %s7216_s21 }
  0xe4   :  { %v207_v17 = vsel %vm206_vm2, %v205_v16, %v201_v15  ;;  %v355_v18 = vmul.f32 %v205_v16, %v193_v8  ;;  %v391_v15 = vunpack.c.l.s4 %v9178_v14  ;;  %v9179_v16 = vmov 1983009808  }
  0xe5   :  { %7849 = vmatmul.mubr.msk.f32.vlgmr.msra.gmra.mxu0 %vm186_vm0, %v207_v17  ;;  %v553_v17 = vunpack.c.l.s4 %v9179_v16 }
  0xe6   :  { %v356_v19 = vsel %vm186_vm0, %v355_v18, 0.0  ;;  %7870 = vmatprep.mubr.msk.f32.mxu0 %vm9177_vm1, %v9176_v7  ;;  %7863 = vmatpush3.msra.mxu0 %v9333_v49  ;;  %v336_v18 = vstv %s7212_s20 }
  0xe7   :  { %357 = vadd.xlane.f32.xlu1 %v356_v19  ;;  %7864 = vmatprep.subr.mxu0 %v9176_v7  ;;  %v392_v19 = vunpack.c.0.s8 %v391_v15 }
  0xe8   :  { %7865 = vmatpush3.msra.mxu0 %v9335_v50 }
  0xe9   :  { %7866 = vmatprep.subr.mxu0 %v9176_v7 }
  0xea   :  { %7867 = vmatpush3.msra.mxu0 %v9340_v51 }
  0xeb   :  { %298 = vadd.xlane.f32.xlu1 %v297_v21  ;;  %7868 = vmatprep.subr.mxu0 %v9176_v7 }
  0xec   :  { %7869 = vmatpush3.msra.mxu0 %v9346_v52 }
  0xed   :  { %7884 = vmatprep.subr.mxu0 %v9176_v7 }
 0x11b   :  { %v654_v12 = vpop.f32.mrf.mxu1 }
 0x11d   :  { %v7861_v13 = vpop.f32.mrf.mxu1 }
 0x170   :  { %v358_v22 = vpop.xlane.xlu1 %357 }
 0x171   :  { %v359_v29 = vmul.f32 %v358_v22, %v300_v23  ;;  %v554_v22 = vunpack.c.0.s8 %v553_v17 }
 0x173   :  { %v360_v40 = vadd.f32 %v359_v29, %v302_v28 }
 0x174   :  { %v299_v24 = vpop.xlane.xlu1 %298 }
 0x175   :  { %v301_v33 = vmul.f32 %v300_v23, %v299_v24 }
 0x177   :  { %v303_v41 = vadd.f32 %v302_v28, %v301_v33  ;;  %v395_v28 = vsub.s32 %v392_v19, %v9311_v11 }
 0x1a5   :  { %v279_v30 = vpop.f32.mrf.mxu0 }
 0x1a6   :  { %v305_v34 = vmul.f32 %v304_v25, %v279_v30  ;;  %v309_v35 = vmul.f32 %v308_v26, %v279_v30  ;;  %v7220_v25 = vld [vmem:[%s10213_s4] ss:$0 sm:$0xff]  ;;  %s9180_s4 = smov 64  }
 0x1a7   :  { %v7850_v37 = vpop.f32.mrf.mxu0 }
 0x1a8   :  { %v307_v38 = vadd.f32 %v306_v31, %v305_v34  ;;  %v9325_v39 = vadd.f32 %v310_v32, %v309_v35  ;;  %v9379_v31 = vsub.s32 %v554_v22, %v9311_v11  ;;  %v7221_v34 = vld [vmem:[#allocation15] ss:$0 sm:$0xff] }
 0x1aa   :  { %v364_v42 = vrot.slane %v307_v38, %v9323_v36  ;;  %v315_v43 = vrot.slane %v307_v38, %v9320_v27  ;;  %v380_v44 = vrot.slane %v9325_v39, %v9323_v36  ;;  %v331_v5 = vrot.slane %v9325_v39, %v9320_v27 }
 0x1ac   :  { %v365_v45 = vmul.f32 %v364_v42, %v360_v40  ;;  %v316_v46 = vmul.f32 %v315_v43, %v303_v41  ;;  %v9382_v43 = vrot.slane %v7221_v34, %v9379_v31 }
 0x1ae   :  { %v366_v47 = vsel %vm186_vm0, %v365_v45, -inf  ;;  %v317_v48 = vsel %vm186_vm0, %v316_v46, -inf  ;;  %v566_v17 = vcombine.high %v9382_v43, %v9382_v43 }
 0x1af   :  { %367 = vmax.xlane.f32.xlu0 %v366_v47  ;;  %318 = vmax.xlane.f32.xlu1 %v317_v48  ;;  %v551_v47 = vcombine.high %v7221_v34, %v7221_v34 }
 0x238   :  { %v368_v53 = vpop.xlane.xlu0 %367  ;;  %v319_v54 = vpop.xlane.xlu1 %318 }
 0x239   :  { %v369_v55 = vsub.f32 %v365_v45, %v368_v53  ;;  %v320_v56 = vsub.f32 %v316_v46, %v319_v54 }
 0x23b   :  { %v370_v57 = vmul.f32 1.442695, %v369_v55  ;;  %v321_v58 = vmul.f32 1.442695, %v320_v56 }
 0x23d   :  { %8259 = vpow2.f32 %v370_v57 }
 0x23e   :  { %8261 = vpow2.f32 %v321_v58 }
 0x24a   :  { %v8260_v59 = vpop.eup %8259 }
 0x24b   :  { %v8262_v60 = vpop.eup %8261  ;;  %v372_v61 = vsel %vm186_vm0, %v8260_v59, 0.0 }
 0x24c   :  { %373 = vadd.xlane.f32.xlu0 %v372_v61  ;;  %v323_v62 = vsel %vm186_vm0, %v8262_v60, 0.0 }
 0x24d   :  { %324 = vadd.xlane.f32.xlu1 %v323_v62 }
 0x2d5   :  { %v374_v63 = vpop.xlane.xlu0 %373 }
 0x2d6   :  { %8263 = vrcp.f32 %v374_v63  ;;  %v325_v0 = vpop.xlane.xlu1 %324 }
 0x2d7   :  { %8265 = vrcp.f32 %v325_v0 }
 0x2e3   :  { %v8264_v1 = vpop.eup %8263 }
 0x2e4   :  { %v8266_v2 = vpop.eup %8265  ;;  %v376_v3 = vmul.f32 %v8264_v1, %v8260_v59 }
 0x2e5   :  { %v327_v4 = vmul.f32 %v8266_v2, %v8262_v60 }
 0x2e6   :  { %v381_v6 = vmul.f32 %v380_v44, %v376_v3 }
 0x2e7   :  { %v332_v8 = vmul.f32 %v331_v5, %v327_v4 }
 0x2e8   :  { %v382_v9 = vsel %vm186_vm0, %v381_v6, 0.0 }
 0x2e9   :  { %383 = vadd.xlane.f32.xlu0 %v382_v9  ;;  %v333_v10 = vsel %vm186_vm0, %v332_v8, 0.0  ;;  %vm3853_vm0 = vcmask 259077  }
 0x2ea   :  { %334 = vadd.xlane.f32.xlu1 %v333_v10 }
 0x372   :  { %v384_v21 = vpop.xlane.xlu0 %383 }
 0x373   :  { %v385_v23 = vmul.f32 %v384_v21, %v336_v18  ;;  %v335_v24 = vpop.xlane.xlu1 %334 }
 0x374   :  { %v337_v26 = vmul.f32 %v336_v18, %v335_v24  ;;  %v9405_v18 = vrot.slane %v551_v47, %v9379_v31 }
 0x375   :  { %v386_v29 = vadd.f32 %v385_v23, %v338_v20 }
 0x376   :  { %v339_v30 = vadd.f32 %v338_v20, %v337_v26  ;;  %v9414_v26 = vcombine.high %v9405_v18, %v9405_v18 }
 0x377   :  { %v387_v32 = vmul.f32 %v7220_v25, %v386_v29 }
 0x378   :  { %v347_v33 = vmul.f32 %v7220_v25, %v339_v30 }
 0x379   :  { %v447_v35 = vcombine.high %v387_v32, %v387_v32  ;;  %v454_v37 = vrot.slane %v387_v32, %v395_v28 }
 0x37a   :  { %v389_v38 = vcombine.high %v347_v33, %v347_v33  ;;  %v396_v39 = vrot.slane %v347_v33, %v395_v28 }
 0x37b   :  { %v461_v40 = vrot.slane %v447_v35, %v395_v28  ;;  %v462_v41 = vcombine.high %v454_v37, %v454_v37  ;;  %v470_v42 = vrot.slane %v454_v37, %v395_v28 }
 0x37c   :  { %v403_v44 = vrot.slane %v389_v38, %v395_v28  ;;  %v404_v45 = vcombine.high %v396_v39, %v396_v39  ;;  %v412_v46 = vrot.slane %v396_v39, %v395_v28 }
 0x37d   :  { %v463_v48 = vcombine.high %v461_v40, %v461_v40  ;;  %v499_v53 = vrot.slane %v470_v42, %v9320_v27  ;;  %v484_v54 = vrot.slane %v462_v41, %v395_v28  ;;  %v492_v55 = vcombine.high %v470_v42, %v470_v42 }
 0x37e   :  { %v426_v56 = vrot.slane %v404_v45, %v395_v28  ;;  %v434_v57 = vcombine.high %v412_v46, %v412_v46  ;;  %v419_v58 = vrot.slane %v403_v44, %v395_v28  ;;  %v477_v59 = vrot.slane %v461_v40, %v395_v28 }
 0x37f   :  { %v537_v60 = vsel %vm536_vm3, %v412_v46, %v499_v53  ;;  %v503_v61 = vrot.slane %v484_v54, %v9320_v27  ;;  %v507_v62 = vrot.slane %v492_v55, %v9320_v27  ;;  %v494_v63 = vcombine.high %v484_v54, %v484_v54 }
 0x380   :  { %v572_v0 = vadd.f32 %v9382_v43, %v537_v60  ;;  %v436_v1 = vcombine.high %v426_v56, %v426_v56  ;;  %v515_v2 = vrot.slane %v477_v59, %v9320_v27  ;;  %v405_v3 = vcombine.high %v403_v44, %v403_v44 }
 0x381   :  { %v538_v4 = vsel %vm536_vm3, %v426_v56, %v503_v61  ;;  %v9392_v5 = vsel %vm536_vm3, %v434_v57, %v507_v62  ;;  %v511_v6 = vrot.slane %v494_v63, %v9320_v27  ;;  %v491_v8 = vrot.slane %v463_v48, %v395_v28 }
 0x382   :  { %v658_v9 = vadd.f32 %v654_v12, %v572_v0  ;;  %v9396_v10 = vsel %vm536_vm3, %v419_v58, %v515_v2  ;;  %v433_v14 = vrot.slane %v405_v3, %v395_v28  ;;  %v493_v19 = vcombine.high %v477_v59, %v477_v59 }
 0x383   :  { %v9399_v13 = vsel %vm536_vm3, %v436_v1, %v511_v6  ;;  %v519_v15 = vrot.slane %v491_v8, %v9320_v27  ;;  %v495_v12 = vcombine.high %v491_v8, %v491_v8  ;;  %v435_v22 = vcombine.high %v419_v58, %v419_v58 }
 0x384   :  { %v7222_v16 = vmul.f32 -1.442695, %v658_v9  ;;  %v523_v23 = vrot.slane %v493_v19, %v9320_v27  ;;  %v437_v24 = vcombine.high %v433_v14, %v433_v14  ;;  %v573_v53 = vadd.f32 %v566_v17, %v538_v4 }
 0x385   :  { %v542_v20 = vsel %vm536_vm3, %v433_v14, %v519_v15  ;;  %v527_v25 = vrot.slane %v495_v12, %v9320_v27  ;;  %v574_v15 = vadd.f32 %v9405_v18, %v9392_v5 }
 0x386   :  { %8267 = vpow2.f32 %v7222_v16  ;;  %v9408_v21 = vadd.f32 %v566_v17, %v542_v20  ;;  %v9417_v28 = vsel %vm536_vm3, %v435_v22, %v523_v23 }
 0x387   :  { %v544_v29 = vsel %vm536_vm3, %v437_v24, %v527_v25 }
 0x388   :  { %v9421_v30 = vadd.f32 %v9414_v26, %v544_v29 }
 0x393   :  { %v8268_v32 = vpop.eup %8267 }
 0x394   :  { %v662_v33 = vadd.f32 1.0, %v8268_v32 }
 0x396   :  { %8269 = vrcp.f32 %v662_v33 }
 0x3a3   :  { %v8270_v34 = vpop.eup %8269 }
 0x3a4   :  { %v665_v35 = vmul.f32 2.0, %v8270_v34  ;;  %v667_v40 = vmul.f32 0.0, %v8270_v34 }
 0x3a6   :  { %v7223_v37 = vadd.f32 -1.0, %v665_v35 }
 0x3a8   :  { %669 = vrot.lane.b32.xlu0 %v7223_v37, %s9180_s4 }
 0x41a   :  { %v670_v38 = vpop.permute.xlu0 %669 }
 0x41b   :  { %v672_v39 = vmul.f32 %v8270_v34, %v670_v38 }
 0x41d   :  { %674 = vrot.lane.b32.xlu1 %v672_v39, %s9181_s0 }
 0x48f   :  { %v675_v41 = vpop.permute.xlu1 %674 }
 0x490   :  { %v677_v42 = vadd.f32 %v675_v41, %v667_v40  ;;  %v575_v41 = vadd.f32 %v9414_v26, %v9399_v13 }
 0x492   :  { %8271 = vtanh.f32 %v677_v42 }
 0x49f   :  { %v8272_v44 = vpop.eup %8271 }
 0x4a0   :  { %680 = vrot.lane.b32.xlu1 %v8272_v44, %s9180_s4 }
 0x512   :  { %v681_v45 = vpop.permute.xlu1 %680 }
 0x513   :  { %v683_v46 = vmul.f32 %v8270_v34, %v681_v45 }
 0x515   :  { %v691_v47 = vrot.slane %v683_v46, %v9379_v31 }
 0x517   :  { %692 = vrot.lane.b32.xlu1 %v691_v47, %s9181_s0 }
 0x589   :  { %v693_v48 = vpop.permute.xlu1 %692 }
 0x58a   :  { %696 = vst.msk [vmem:[#allocation2] sm:$0x3] %vm695_vm4, %v693_v48  ;;  %7871 = vmatmul.mubr.msk.f32.vlgmr.msra.gmra.mxu0 %vm584_vm5, %v693_v48 }
 0x58b   :  { %7885 = vmatpush3.msra.mxu0 %v9333_v49  ;;  %7892 = vmatprep.mubr.msk.f32.mxu0 %vm9177_vm1, %v9176_v7 }
 0x58c   :  { %7886 = vmatprep.subr.mxu0 %v9176_v7 }
 0x58d   :  { %7887 = vmatpush3.msra.mxu0 %v9335_v50 }
 0x58e   :  { %7888 = vmatprep.subr.mxu0 %v9176_v7 }
 0x58f   :  { %7889 = vmatpush3.msra.mxu0 %v9340_v51 }
 0x590   :  { %7890 = vmatprep.subr.mxu0 %v9176_v7 }
 0x591   :  { %7891 = vmatpush3.msra.mxu0 %v9346_v52 }
 0x592   :  { %7906 = vmatprep.subr.mxu0 %v9176_v7 }
 0x64a   :  { %v765_v54 = vpop.f32.mrf.mxu0 }
 0x64b   :  { %v769_v55 = vadd.f32 %v765_v54, %v573_v53 }
 0x64c   :  { %v7872_v56 = vpop.f32.mrf.mxu0 }
 0x64d   :  { %v7225_v57 = vmul.f32 -1.442695, %v769_v55 }
 0x64f   :  { %8273 = vpow2.f32 %v7225_v57 }
 0x65c   :  { %v8274_v58 = vpop.eup %8273 }
 0x65d   :  { %v773_v59 = vadd.f32 1.0, %v8274_v58 }
 0x65f   :  { %8275 = vrcp.f32 %v773_v59 }
 0x66c   :  { %v8276_v60 = vpop.eup %8275 }
 0x66d   :  { %v776_v61 = vmul.f32 2.0, %v8276_v60  ;;  %v778_v1 = vmul.f32 %v8276_v60, %v677_v42 }
 0x66f   :  { %v7226_v62 = vadd.f32 -1.0, %v776_v61 }
 0x671   :  { %780 = vrot.lane.b32.xlu0 %v7226_v62, %s9180_s4 }
 0x6e3   :  { %v781_v63 = vpop.permute.xlu0 %780 }
 0x6e4   :  { %v783_v0 = vmul.f32 %v8276_v60, %v781_v63 }
 0x6e6   :  { %785 = vrot.lane.b32.xlu1 %v783_v0, %s9181_s0  ;;  %v576_v0 = vadd.f32 %v9382_v43, %v9396_v10 }
 0x758   :  { %v786_v2 = vpop.permute.xlu1 %785 }
 0x759   :  { %v788_v3 = vadd.f32 %v786_v2, %v778_v1 }
 0x75b   :  { %8277 = vtanh.f32 %v788_v3 }
 0x768   :  { %v8278_v4 = vpop.eup %8277 }
 0x769   :  { %791 = vrot.lane.b32.xlu0 %v8278_v4, %s9180_s4 }
 0x7db   :  { %v792_v6 = vpop.permute.xlu0 %791 }
 0x7dc   :  { %v794_v8 = vmul.f32 %v8276_v60, %v792_v6 }
 0x7de   :  { %v802_v9 = vrot.slane %v794_v8, %v9379_v31 }
 0x7e0   :  { %803 = vrot.lane.b32.xlu1 %v802_v9, %s9181_s0 }
 0x852   :  { %v804_v14 = vpop.permute.xlu1 %803 }
 0x853   :  { %806 = vst.msk [vmem:[#allocation2 + $0x2] sm:$0x3] %vm695_vm4, %v804_v14  ;;  %7882 = vmatmul.mubr.msk.f32.vlgmr.msra.gmra.mxu1 %vm584_vm5, %v804_v14 }
 0x854   :  { %7896 = vmatpush3.msra.mxu1 %v9333_v49  ;;  %7903 = vmatprep.mubr.msk.f32.mxu1 %vm9177_vm1, %v9176_v7 }
 0x855   :  { %7897 = vmatprep.subr.mxu1 %v9176_v7 }
 0x856   :  { %7898 = vmatpush3.msra.mxu1 %v9335_v50 }
 0x857   :  { %7899 = vmatprep.subr.mxu1 %v9176_v7 }
 0x858   :  { %7900 = vmatpush3.msra.mxu1 %v9340_v51 }
 0x859   :  { %7901 = vmatprep.subr.mxu1 %v9176_v7 }
 0x85a   :  { %7902 = vmatpush3.msra.mxu1 %v9346_v52 }
 0x85b   :  { %7917 = vmatprep.subr.mxu1 %v9176_v7 }
 0x913   :  { %v875_v16 = vpop.f32.mrf.mxu1 }
 0x914   :  { %v879_v17 = vadd.f32 %v875_v16, %v574_v15 }
 0x915   :  { %v7883_v19 = vpop.f32.mrf.mxu1 }
 0x916   :  { %v7228_v20 = vmul.f32 -1.442695, %v879_v17 }
 0x918   :  { %8279 = vpow2.f32 %v7228_v20 }
 0x925   :  { %v8280_v12 = vpop.eup %8279 }
 0x926   :  { %v883_v22 = vadd.f32 1.0, %v8280_v12 }
 0x928   :  { %8281 = vrcp.f32 %v883_v22 }
 0x935   :  { %v8282_v23 = vpop.eup %8281 }
 0x936   :  { %v886_v24 = vmul.f32 2.0, %v8282_v23  ;;  %v888_v33 = vmul.f32 %v8282_v23, %v788_v3 }
 0x938   :  { %v7229_v25 = vadd.f32 -1.0, %v886_v24 }
 0x93a   :  { %890 = vrot.lane.b32.xlu0 %v7229_v25, %s9180_s4 }
 0x9ac   :  { %v891_v29 = vpop.permute.xlu0 %890 }
 0x9ad   :  { %v893_v32 = vmul.f32 %v8282_v23, %v891_v29 }
 0x9af   :  { %895 = vrot.lane.b32.xlu1 %v893_v32, %s9181_s0 }
 0xa21   :  { %v896_v34 = vpop.permute.xlu1 %895 }
 0xa22   :  { %v898_v5 = vadd.f32 %v896_v34, %v888_v33 }
 0xa24   :  { %8283 = vtanh.f32 %v898_v5 }
 0xa31   :  { %v8284_v35 = vpop.eup %8283 }
 0xa32   :  { %901 = vrot.lane.b32.xlu0 %v8284_v35, %s9180_s4 }
 0xaa4   :  { %v902_v37 = vpop.permute.xlu0 %901 }
 0xaa5   :  { %v904_v38 = vmul.f32 %v8282_v23, %v902_v37 }
 0xaa7   :  { %v912_v39 = vrot.slane %v904_v38, %v9379_v31 }
 0xaa9   :  { %913 = vrot.lane.b32.xlu1 %v912_v39, %s9181_s0 }
 0xb1b   :  { %v914_v40 = vpop.permute.xlu1 %913 }
 0xb1c   :  { %916 = vst.msk [vmem:[#allocation2 + $0x4] sm:$0x3] %vm695_vm4, %v914_v40  ;;  %7893 = vmatmul.mubr.msk.f32.vlgmr.msra.gmra.mxu0 %vm584_vm5, %v914_v40 }
 0xb1d   :  { %7907 = vmatpush3.msra.mxu0 %v9333_v49  ;;  %7914 = vmatprep.mubr.msk.f32.mxu0 %vm9177_vm1, %v9176_v7 }
 0xb1e   :  { %7908 = vmatprep.subr.mxu0 %v9176_v7 }
 0xb1f   :  { %7909 = vmatpush3.msra.mxu0 %v9335_v50 }
 0xb20   :  { %7910 = vmatprep.subr.mxu0 %v9176_v7 }
 0xb21   :  { %7911 = vmatpush3.msra.mxu0 %v9340_v51 }
 0xb22   :  { %7912 = vmatprep.subr.mxu0 %v9176_v7 }
 0xb23   :  { %7913 = vmatpush3.msra.mxu0 %v9346_v52 }
 0xb24   :  { %7928 = vmatprep.subr.mxu0 %v9176_v7 }
 0xbdc   :  { %v985_v42 = vpop.f32.mrf.mxu0 }
 0xbdd   :  { %v989_v44 = vadd.f32 %v985_v42, %v575_v41 }
 0xbde   :  { %v7894_v45 = vpop.f32.mrf.mxu0 }
 0xbdf   :  { %v7231_v46 = vmul.f32 -1.442695, %v989_v44 }
 0xbe1   :  { %8285 = vpow2.f32 %v7231_v46  ;;  %v578_v46 = vadd.f32 %v9405_v18, %v9417_v28 }
 0xbee   :  { %v8286_v47 = vpop.eup %8285 }
 0xbef   :  { %v993_v48 = vadd.f32 1.0, %v8286_v47 }
 0xbf1   :  { %8287 = vrcp.f32 %v993_v48 }
 0xbfe   :  { %v8288_v53 = vpop.eup %8287 }
 0xbff   :  { %v996_v54 = vmul.f32 2.0, %v8288_v53  ;;  %v998_v58 = vmul.f32 %v8288_v53, %v898_v5 }
 0xc01   :  { %v7232_v55 = vadd.f32 -1.0, %v996_v54 }
 0xc03   :  { %1000 = vrot.lane.b32.xlu0 %v7232_v55, %s9180_s4 }
 0xc75   :  { %v1001_v56 = vpop.permute.xlu0 %1000 }
 0xc76   :  { %v1003_v57 = vmul.f32 %v8288_v53, %v1001_v56 }
 0xc78   :  { %1005 = vrot.lane.b32.xlu1 %v1003_v57, %s9181_s0 }
 0xcea   :  { %v1006_v59 = vpop.permute.xlu1 %1005 }
 0xceb   :  { %v1008_v13 = vadd.f32 %v1006_v59, %v998_v58 }
 0xced   :  { %8289 = vtanh.f32 %v1008_v13 }
 0xcfa   :  { %v8290_v26 = vpop.eup %8289 }
 0xcfb   :  { %1011 = vrot.lane.b32.xlu0 %v8290_v26, %s9180_s4 }
 0xd6d   :  { %v1012_v60 = vpop.permute.xlu0 %1011 }
 0xd6e   :  { %v1014_v61 = vmul.f32 %v8288_v53, %v1012_v60 }
 0xd70   :  { %v1022_v62 = vrot.slane %v1014_v61, %v9379_v31 }
 0xd72   :  { %1023 = vrot.lane.b32.xlu1 %v1022_v62, %s9181_s0 }
 0xde4   :  { %v1024_v63 = vpop.permute.xlu1 %1023 }
 0xde5   :  { %1026 = vst.msk [vmem:[#allocation2 + $0x6] sm:$0x3] %vm695_vm4, %v1024_v63  ;;  %7904 = vmatmul.mubr.msk.f32.vlgmr.msra.gmra.mxu1 %vm584_vm5, %v1024_v63 }
 0xde6   :  { %7918 = vmatpush3.msra.mxu1 %v9333_v49  ;;  %7925 = vmatprep.mubr.msk.f32.mxu1 %vm9177_vm1, %v9176_v7 }
 0xde7   :  { %7919 = vmatprep.subr.mxu1 %v9176_v7 }
 0xde8   :  { %7920 = vmatpush3.msra.mxu1 %v9335_v50 }
 0xde9   :  { %7921 = vmatprep.subr.mxu1 %v9176_v7 }
 0xdea   :  { %7922 = vmatpush3.msra.mxu1 %v9340_v51 }
 0xdeb   :  { %7923 = vmatprep.subr.mxu1 %v9176_v7 }
 0xdec   :  { %7924 = vmatpush3.msra.mxu1 %v9346_v52  ;;  %v1467_v45 = vld [vmem:[#allocation2] sm:$0xff] }
 0xea5   :  { %v1095_v1 = vpop.f32.mrf.mxu1 }
 0xea6   :  { %v1099_v2 = vadd.f32 %v1095_v1, %v576_v0 }
 0xea7   :  { %v7905_v3 = vpop.f32.mrf.mxu1 }
 0xea8   :  { %v7234_v4 = vmul.f32 -1.442695, %v1099_v2 }
 0xeaa   :  { %8291 = vpow2.f32 %v7234_v4 }
 0xeb7   :  { %v8292_v6 = vpop.eup %8291 }
 0xeb8   :  { %v1103_v8 = vadd.f32 1.0, %v8292_v6 }
 0xeba   :  { %8293 = vrcp.f32 %v1103_v8 }
 0xec7   :  { %v8294_v9 = vpop.eup %8293 }
 0xec8   :  { %v1106_v14 = vmul.f32 2.0, %v8294_v9  ;;  %v1108_v19 = vmul.f32 %v8294_v9, %v1008_v13 }
 0xeca   :  { %v7235_v15 = vadd.f32 -1.0, %v1106_v14 }
 0xecc   :  { %1110 = vrot.lane.b32.xlu0 %v7235_v15, %s9180_s4 }
 0xf3e   :  { %v1111_v16 = vpop.permute.xlu0 %1110 }
 0xf3f   :  { %v1113_v17 = vmul.f32 %v8294_v9, %v1111_v16 }
 0xf41   :  { %1115 = vrot.lane.b32.xlu1 %v1113_v17, %s9181_s0 }
 0xfb3   :  { %v1116_v20 = vpop.permute.xlu1 %1115 }
 0xfb4   :  { %v1118_v43 = vadd.f32 %v1116_v20, %v1108_v19 }
 0xfb6   :  { %8295 = vtanh.f32 %v1118_v43 }
 0xfc3   :  { %v8296_v10 = vpop.eup %8295 }
 0xfc4   :  { %1121 = vrot.lane.b32.xlu0 %v8296_v10, %s9180_s4 }
0x1036   :  { %v1122_v12 = vpop.permute.xlu0 %1121 }
0x1037   :  { %v1124_v22 = vmul.f32 %v8294_v9, %v1122_v12  ;;  %v1472_v12 = vld [vmem:[#allocation12 + $0x18] sm:$0xff] }
0x1038   :  { %7939 = vmatprep.subr.mxu1 %v1472_v12 }
0x1039   :  { %v1132_v23 = vrot.slane %v1124_v22, %v9379_v31  ;;  %v1471_v22 = vld [vmem:[#allocation12 + $0x10] sm:$0xff] }
0x103b   :  { %1133 = vrot.lane.b32.xlu1 %v1132_v23, %s9181_s0  ;;  %v9537_v23 = vld [vmem:[#allocation14 + $0x38] sm:$0xff] }
0x10ad   :  { %v1134_v24 = vpop.permute.xlu1 %1133 }
0x10ae   :  { %1136 = vst.msk [vmem:[#allocation2 + $0x8] sm:$0x3] %vm695_vm4, %v1134_v24  ;;  %7915 = vmatmul.mubr.msk.f32.vlgmr.msra.gmra.mxu0 %vm584_vm5, %v1134_v24  ;;  %v1470_v24 = vld [vmem:[#allocation12 + $0x8] sm:$0xff] }
0x10af   :  { %7929 = vmatpush3.msra.mxu0 %v9333_v49  ;;  %7936 = vmatprep.mubr.msk.f32.mxu0 %vm9177_vm1, %v9176_v7 }
0x10b0   :  { %7930 = vmatprep.subr.mxu0 %v9176_v7 }
0x10b1   :  { %7931 = vmatpush3.msra.mxu0 %v9335_v50 }
0x10b2   :  { %7932 = vmatprep.subr.mxu0 %v9176_v7 }
0x10b3   :  { %7933 = vmatpush3.msra.mxu0 %v9340_v51 }
0x10b4   :  { %7934 = vmatprep.subr.mxu0 %v9176_v7 }
0x10b5   :  { %7935 = vmatpush3.msra.mxu0 %v9346_v52 }
0x10b6   :  { %7950 = vmatprep.subr.mxu0 %v9176_v7 }
0x116e   :  { %v1205_v25 = vpop.f32.mrf.mxu0 }
0x116f   :  { %v1209_v49 = vadd.f32 %v1205_v25, %v9408_v21  ;;  %v9539_v25 = vld [vmem:[#allocation14 + $0x30] sm:$0xff] }
0x1170   :  { %v7916_v29 = vpop.f32.mrf.mxu0 }
0x1171   :  { %v7237_v32 = vmul.f32 -1.442695, %v1209_v49  ;;  %v1469_v29 = vld [vmem:[#allocation12] sm:$0xff] }
0x1173   :  { %8297 = vpow2.f32 %v7237_v32 }
0x1180   :  { %v8298_v33 = vpop.eup %8297 }
0x1181   :  { %v1213_v34 = vadd.f32 1.0, %v8298_v33  ;;  %v9543_v33 = vld [vmem:[#allocation14 + $0x28] sm:$0xff] }
0x1183   :  { %8299 = vrcp.f32 %v1213_v34 }
0x1190   :  { %v8300_v50 = vpop.eup %8299 }
0x1191   :  { %v1216_v5 = vmul.f32 2.0, %v8300_v50  ;;  %v1218_v52 = vmul.f32 %v8300_v50, %v1118_v43 }
0x1193   :  { %v7238_v35 = vadd.f32 -1.0, %v1216_v5 }
0x1195   :  { %1220 = vrot.lane.b32.xlu0 %v7238_v35, %s9180_s4 }
0x1207   :  { %v1221_v51 = vpop.permute.xlu0 %1220 }
0x1208   :  { %v1223_v37 = vmul.f32 %v8300_v50, %v1221_v51 }
0x120a   :  { %1225 = vrot.lane.b32.xlu1 %v1223_v37, %s9181_s0  ;;  %v7245_v37 = vld [vmem:[#allocation15 + $0x1] ss:$0 sm:$0xff] }
0x127c   :  { %v1226_v38 = vpop.permute.xlu1 %1225 }
0x127d   :  { %v1228_v39 = vadd.f32 %v1226_v38, %v1218_v52 }
0x127f   :  { %8301 = vtanh.f32 %v1228_v39 }
0x128c   :  { %v8302_v21 = vpop.eup %8301 }
0x128d   :  { %1231 = vrot.lane.b32.xlu0 %v8302_v21, %s9180_s4 }
0x12ff   :  { %v1232_v40 = vpop.permute.xlu0 %1231 }
0x1300   :  { %v1234_v41 = vmul.f32 %v8300_v50, %v1232_v40  ;;  %v9548_v50 = vld [vmem:[#allocation14 + $0x20] sm:$0xff] }
0x1302   :  { %v1242_v42 = vrot.slane %v1234_v41, %v9379_v31 }
0x1304   :  { %1243 = vrot.lane.b32.xlu1 %v1242_v42, %s9181_s0 }
0x1376   :  { %v1244_v44 = vpop.permute.xlu1 %1243 }
0x1377   :  { %1246 = vst.msk [vmem:[#allocation2 + $0xa] sm:$0x3] %vm695_vm4, %v1244_v44  ;;  %7926 = vmatmul.mubr.msk.f32.vlgmr.msra.gmra.mxu1 %vm584_vm5, %v1244_v44 }
0x1378   :  { %7947 = vmatprep.mubr.msk.f32.mxu1 %vm584_vm5, %v1467_v45  ;;  %7940 = vmatpush3.msra.mxu1 %v1472_v12 }
0x1379   :  { %7941 = vmatprep.subr.mxu1 %v1471_v22 }
0x137a   :  { %7942 = vmatpush3.msra.mxu1 %v1471_v22 }
0x137b   :  { %7943 = vmatprep.subr.mxu1 %v1470_v24 }
0x137c   :  { %7944 = vmatpush3.msra.mxu1 %v1470_v24 }
0x137d   :  { %7945 = vmatprep.subr.mxu1 %v1469_v29 }
0x137e   :  { %7946 = vmatpush3.msra.mxu1 %v1469_v29 }
0x137f   :  { %7961 = vmatprep.subr.mxu1 %v9176_v7 }
0x1437   :  { %v1315_v47 = vpop.f32.mrf.mxu1 }
0x1438   :  { %v1319_v48 = vadd.f32 %v1315_v47, %v578_v46 }
0x1439   :  { %v7927_v53 = vpop.f32.mrf.mxu1 }
0x143a   :  { %v7240_v54 = vmul.f32 -1.442695, %v1319_v48 }
0x143c   :  { %8303 = vpow2.f32 %v7240_v54 }
0x1449   :  { %v8304_v55 = vpop.eup %8303 }
0x144a   :  { %v1323_v56 = vadd.f32 1.0, %v8304_v55 }
0x144c   :  { %8305 = vrcp.f32 %v1323_v56 }
0x1459   :  { %v8306_v57 = vpop.eup %8305 }
0x145a   :  { %v1326_v58 = vmul.f32 2.0, %v8306_v57  ;;  %v1328_v60 = vmul.f32 %v8306_v57, %v1228_v39 }
0x145c   :  { %v7241_v59 = vadd.f32 -1.0, %v1326_v58 }
0x145e   :  { %1330 = vrot.lane.b32.xlu0 %v7241_v59, %s9180_s4 }
0x14d0   :  { %v1331_v13 = vpop.permute.xlu0 %1330 }
0x14d1   :  { %v1333_v26 = vmul.f32 %v8306_v57, %v1331_v13 }
0x14d3   :  { %1335 = vrot.lane.b32.xlu1 %v1333_v26, %s9181_s0 }
0x1545   :  { %v1336_v61 = vpop.permute.xlu1 %1335 }
0x1546   :  { %v1338_v18 = vadd.f32 %v1336_v61, %v1328_v60 }
0x1548   :  { %8307 = vtanh.f32 %v1338_v18 }
0x1555   :  { %v8308_v28 = vpop.eup %8307 }
0x1556   :  { %1341 = vrot.lane.b32.xlu0 %v8308_v28, %s9180_s4 }
0x15c8   :  { %v1342_v62 = vpop.permute.xlu0 %1341 }
0x15c9   :  { %v1344_v63 = vmul.f32 %v8306_v57, %v1342_v62 }
0x15cb   :  { %v1352_v0 = vrot.slane %v1344_v63, %v9379_v31 }
0x15cd   :  { %1353 = vrot.lane.b32.xlu1 %v1352_v0, %s9181_s0 }
0x163f   :  { %v1354_v1 = vpop.permute.xlu1 %1353 }
0x1640   :  { %1356 = vst.msk [vmem:[#allocation2 + $0xc] sm:$0x3] %vm695_vm4, %v1354_v1  ;;  %7937 = vmatmul.mubr.msk.f32.vlgmr.msra.gmra.mxu0 %vm584_vm5, %v1354_v1 }
0x1641   :  { %7958 = vmatprep.mubr.msk.f32.mxu0 %vm9177_vm1, %v9176_v7  ;;  %7951 = vmatpush3.msra.mxu0 %v9537_v23 }
0x1642   :  { %7952 = vmatprep.subr.mxu0 %v9176_v7 }
0x1643   :  { %7953 = vmatpush3.msra.mxu0 %v9539_v25 }
0x1644   :  { %7954 = vmatprep.subr.mxu0 %v9176_v7 }
0x1645   :  { %7955 = vmatpush3.msra.mxu0 %v9543_v33 }
0x1646   :  { %7956 = vmatprep.subr.mxu0 %v9176_v7 }
0x1647   :  { %7957 = vmatpush3.msra.mxu0 %v9548_v50 }
0x1648   :  { %7959 = vmatmul.mubr.f32.vlgmr.msra.gmra.mxu0 %v9176_v7  ;;  %7972 = vmatprep.subr.mxu0 %v9176_v7 }
0x1649   :  { %7973 = vmatpush3.msra.mxu0 %v9537_v23  ;;  %7980 = vmatprep.mubr.msk.f32.mxu0 %vm9177_vm1, %v9176_v7 }
0x164a   :  { %7974 = vmatprep.subr.mxu0 %v9176_v7 }
0x164b   :  { %7975 = vmatpush3.msra.mxu0 %v9539_v25 }
0x164c   :  { %7976 = vmatprep.subr.mxu0 %v9176_v7 }
0x164d   :  { %7977 = vmatpush3.msra.mxu0 %v9543_v33 }
0x164e   :  { %7978 = vmatprep.subr.mxu0 %v9176_v7 }
0x164f   :  { %7979 = vmatpush3.msra.mxu0 %v9548_v50 }
0x1650   :  { %7994 = vmatprep.subr.mxu0 %v9176_v7 }
0x1700   :  { %v1425_v2 = vpop.f32.mrf.mxu0 }
0x1701   :  { %v1429_v3 = vadd.f32 %v1425_v2, %v9421_v30 }
0x1702   :  { %v7938_v4 = vpop.f32.mrf.mxu0 }
0x1703   :  { %v7243_v6 = vmul.f32 -1.442695, %v1429_v3 }
0x1705   :  { %8309 = vpow2.f32 %v7243_v6 }
0x1708   :  { %v1633_v35 = vpop.f32.mrf.mxu0 }
0x170a   :  { %v7960_v51 = vpop.f32.mrf.mxu0 }
0x1712   :  { %v8310_v8 = vpop.eup %8309 }
0x1713   :  { %v1433_v9 = vadd.f32 1.0, %v8310_v8 }
0x1715   :  { %8311 = vrcp.f32 %v1433_v9 }
0x1722   :  { %v8312_v14 = vpop.eup %8311 }
0x1723   :  { %v1436_v15 = vmul.f32 2.0, %v8312_v14  ;;  %v1438_v20 = vmul.f32 %v8312_v14, %v1338_v18 }
0x1725   :  { %v7244_v16 = vadd.f32 -1.0, %v1436_v15 }
0x1727   :  { %1440 = vrot.lane.b32.xlu0 %v7244_v16, %s9180_s4 }
0x1799   :  { %v1441_v17 = vpop.permute.xlu0 %1440 }
0x179a   :  { %v1443_v19 = vmul.f32 %v8312_v14, %v1441_v17 }
0x179c   :  { %1445 = vrot.lane.b32.xlu1 %v1443_v19, %s9181_s0 }
0x180e   :  { %v1446_v43 = vpop.permute.xlu1 %1445 }
0x180f   :  { %v1448_v10 = vadd.f32 %v1446_v43, %v1438_v20 }
0x1811   :  { %8313 = vtanh.f32 %v1448_v10 }
0x181e   :  { %v8314_v30 = vpop.eup %8313 }
0x181f   :  { %1451 = vrot.lane.b32.xlu0 %v8314_v30, %s9180_s4 }
0x1891   :  { %v1452_v49 = vpop.permute.xlu0 %1451 }
0x1892   :  { %v1454_v32 = vmul.f32 %v8312_v14, %v1452_v49 }
0x1894   :  { %v1462_v34 = vrot.slane %v1454_v32, %v9379_v31 }
0x1896   :  { %1463 = vrot.lane.b32.xlu1 %v1462_v34, %s9181_s0 }
0x1908   :  { %v1464_v31 = vpop.permute.xlu1 %1463 }
0x1909   :  { %1466 = vst.msk [vmem:[#allocation2 + $0xe] sm:$0x3] %vm695_vm4, %v1464_v31 }
0x1910   :  { %v1468_v5 = vld [vmem:[#allocation2 + $0x8] sm:$0xff] }
0x1911   :  { %7948 = vmatmul.mubr.msk.f32.vlgmr.msra.gmra.mxu1 %vm584_vm5, %v1468_v5 }
0x1912   :  { %7962 = vmatpush3.msra.mxu1 %v9537_v23  ;;  %7969 = vmatprep.mubr.msk.f32.mxu1 %vm9177_vm1, %v9176_v7 }
0x1913   :  { %7963 = vmatprep.subr.mxu1 %v9176_v7 }
0x1914   :  { %7964 = vmatpush3.msra.mxu1 %v9539_v25 }
0x1915   :  { %7965 = vmatprep.subr.mxu1 %v9176_v7 }
0x1916   :  { %7966 = vmatpush3.msra.mxu1 %v9543_v33 }
0x1917   :  { %7967 = vmatprep.subr.mxu1 %v9176_v7 }
0x1918   :  { %7968 = vmatpush3.msra.mxu1 %v9548_v50 }
0x1919   :  { %7983 = vmatprep.subr.mxu1 %v9176_v7 }
0x19d1   :  { %v7949_v52 = vpop.f32.mrf.mxu1 }
0x19d2   :  { %v9579_v38 = vadd.f32 %v7949_v52, %v7245_v37 }
0x19d3   :  { %v1553_v39 = vpop.f32.mrf.mxu1 }
0x19d4   :  { %v9581_v21 = vadd.f32 %v7245_v37, %v1553_v39 }
0x19d6   :  { %v1637_v40 = vadd.f32 %v1633_v35, %v9581_v21 }
0x19d8   :  { %v7248_v41 = vmul.f32 -1.442695, %v1637_v40 }
0x19da   :  { %8315 = vpow2.f32 %v7248_v41 }
0x19e7   :  { %v8316_v42 = vpop.eup %8315 }
0x19e8   :  { %v1641_v44 = vadd.f32 1.0, %v8316_v42 }
0x19ea   :  { %8317 = vrcp.f32 %v1641_v44 }
0x19f7   :  { %v8318_v45 = vpop.eup %8317 }
0x19f8   :  { %v1644_v46 = vmul.f32 2.0, %v8318_v45  ;;  %v1646_v54 = vmul.f32 0.0, %v8318_v45 }
0x19fa   :  { %v7249_v47 = vadd.f32 -1.0, %v1644_v46 }
0x19fc   :  { %1648 = vrot.lane.b32.xlu0 %v7249_v47, %s9180_s4 }
0x1a6e   :  { %v1649_v48 = vpop.permute.xlu0 %1648 }
0x1a6f   :  { %v1651_v53 = vmul.f32 %v8318_v45, %v1649_v48 }
0x1a71   :  { %1653 = vrot.lane.b32.xlu1 %v1651_v53, %s9181_s0 }
0x1ae3   :  { %v1654_v55 = vpop.permute.xlu1 %1653 }
0x1ae4   :  { %v1656_v56 = vadd.f32 %v1654_v55, %v1646_v54 }
0x1ae6   :  { %8319 = vtanh.f32 %v1656_v56  ;;  %v1753_v6 = vrot.slane %v1656_v56, 6 }
0x1af3   :  { %v8320_v57 = vpop.eup %8319 }
0x1af4   :  { %1659 = vrot.lane.b32.xlu0 %v8320_v57, %s9180_s4 }
0x1b66   :  { %v1660_v58 = vpop.permute.xlu0 %1659 }
0x1b67   :  { %v1662_v59 = vmul.f32 %v8318_v45, %v1660_v58 }
0x1b69   :  { %1664 = vrot.lane.b32.xlu1 %v1662_v59, %s9181_s0 }
0x1bdb   :  { %v1665_v13 = vpop.permute.xlu1 %1664 }
0x1bdc   :  { %1667 = vst.msk [vmem:[#allocation2] sm:$0x3] %vm695_vm4, %v1665_v13  ;;  %7970 = vmatmul.mubr.msk.f32.vlgmr.msra.gmra.mxu1 %vm584_vm5, %v1665_v13 }
0x1bdd   :  { %7984 = vmatpush3.msra.mxu1 %v9537_v23  ;;  %7991 = vmatprep.mubr.msk.f32.mxu1 %vm9177_vm1, %v9176_v7 }
0x1bde   :  { %7985 = vmatprep.subr.mxu1 %v9176_v7 }
0x1bdf   :  { %7986 = vmatpush3.msra.mxu1 %v9539_v25 }
0x1be0   :  { %7987 = vmatprep.subr.mxu1 %v9176_v7 }
0x1be1   :  { %7988 = vmatpush3.msra.mxu1 %v9543_v33 }
0x1be2   :  { %7989 = vmatprep.subr.mxu1 %v9176_v7 }
0x1be3   :  { %7990 = vmatpush3.msra.mxu1 %v9548_v50 }
0x1be4   :  { %8005 = vmatprep.subr.mxu1 %v9176_v7 }
0x1c9c   :  { %v1736_v26 = vpop.f32.mrf.mxu1 }
0x1c9d   :  { %v1741_v60 = vrot.slane %v1736_v26, 6 }
0x1c9e   :  { %v7971_v61 = vpop.f32.mrf.mxu1 }
0x1c9f   :  { %v1743_v18 = vadd.f32 %v1741_v60, %v9581_v21 }
0x1ca1   :  { %v7251_v28 = vmul.f32 -1.442695, %v1743_v18 }
0x1ca3   :  { %8321 = vpow2.f32 %v7251_v28 }
0x1cb0   :  { %v8322_v62 = vpop.eup %8321 }
0x1cb1   :  { %v1747_v63 = vadd.f32 1.0, %v8322_v62 }
0x1cb3   :  { %8323 = vrcp.f32 %v1747_v63 }
0x1cc0   :  { %v8324_v0 = vpop.eup %8323 }
0x1cc1   :  { %v1750_v1 = vmul.f32 2.0, %v8324_v0  ;;  %v1755_v8 = vmul.f32 %v8324_v0, %v1753_v6 }
0x1cc3   :  { %v7252_v2 = vadd.f32 -1.0, %v1750_v1 }
0x1cc5   :  { %1757 = vrot.lane.b32.xlu0 %v7252_v2, %s9180_s4 }
0x1d37   :  { %v1758_v3 = vpop.permute.xlu0 %1757 }
0x1d38   :  { %v1760_v4 = vmul.f32 %v8324_v0, %v1758_v3 }
0x1d3a   :  { %1762 = vrot.lane.b32.xlu1 %v1760_v4, %s9181_s0 }
0x1dac   :  { %v1763_v9 = vpop.permute.xlu1 %1762 }
0x1dad   :  { %v1765_v14 = vadd.f32 %v1763_v9, %v1755_v8 }
0x1daf   :  { %8325 = vtanh.f32 %v1765_v14  ;;  %v1866_v35 = vrot.slane %v1765_v14, 6 }
0x1dbc   :  { %v8326_v15 = vpop.eup %8325 }
0x1dbd   :  { %1768 = vrot.lane.b32.xlu0 %v8326_v15, %s9180_s4 }
0x1e2f   :  { %v1769_v16 = vpop.permute.xlu0 %1768 }
0x1e30   :  { %v9604_v17 = vmul.f32 %v8324_v0, %v1769_v16 }
0x1e32   :  { %v1778_v19 = vrot.slane %v9604_v17, 2 }
0x1e34   :  { %1779 = vrot.lane.b32.xlu1 %v1778_v19, %s9181_s0 }
0x1ea6   :  { %v1780_v20 = vpop.permute.xlu1 %1779 }
0x1ea7   :  { %7981 = vmatmul.mubr.msk.f32.vlgmr.msra.gmra.mxu0 %vm584_vm5, %v1780_v20 }
0x1ea8   :  { %7995 = vmatpush3.msra.mxu0 %v9537_v23  ;;  %8002 = vmatprep.mubr.msk.f32.mxu0 %vm9177_vm1, %v9176_v7 }
0x1ea9   :  { %7996 = vmatprep.subr.mxu0 %v9176_v7 }
0x1eaa   :  { %7997 = vmatpush3.msra.mxu0 %v9539_v25 }
0x1eab   :  { %7998 = vmatprep.subr.mxu0 %v9176_v7 }
0x1eac   :  { %7999 = vmatpush3.msra.mxu0 %v9543_v33 }
0x1ead   :  { %8000 = vmatprep.subr.mxu0 %v9176_v7 }
0x1eae   :  { %8001 = vmatpush3.msra.mxu0 %v9548_v50 }
0x1eaf   :  { %8016 = vmatprep.subr.mxu0 %v9176_v7 }
0x1f67   :  { %v1849_v43 = vpop.f32.mrf.mxu0 }
0x1f68   :  { %v1854_v10 = vrot.slane %v1849_v43, 4 }
0x1f69   :  { %v7982_v30 = vpop.f32.mrf.mxu0 }
0x1f6a   :  { %v1856_v12 = vadd.f32 %v1854_v10, %v9581_v21 }
0x1f6c   :  { %v7254_v22 = vmul.f32 -1.442695, %v1856_v12 }
0x1f6e   :  { %8327 = vpow2.f32 %v7254_v22 }
0x1f7b   :  { %v8328_v24 = vpop.eup %8327 }
0x1f7c   :  { %v1860_v49 = vadd.f32 1.0, %v8328_v24 }
0x1f7e   :  { %8329 = vrcp.f32 %v1860_v49 }
0x1f8b   :  { %v8330_v29 = vpop.eup %8329 }
0x1f8c   :  { %v1863_v32 = vmul.f32 2.0, %v8330_v29  ;;  %v1868_v51 = vmul.f32 %v8330_v29, %v1866_v35 }
0x1f8e   :  { %v7255_v34 = vadd.f32 -1.0, %v1863_v32 }
0x1f90   :  { %1870 = vrot.lane.b32.xlu0 %v7255_v34, %s9180_s4 }
0x2002   :  { %v1871_v31 = vpop.permute.xlu0 %1870 }
0x2003   :  { %v1873_v5 = vmul.f32 %v8330_v29, %v1871_v31 }
0x2005   :  { %1875 = vrot.lane.b32.xlu1 %v1873_v5, %s9181_s0 }
0x2077   :  { %v1876_v37 = vpop.permute.xlu1 %1875 }
0x2078   :  { %v1878_v52 = vadd.f32 %v1876_v37, %v1868_v51 }
0x207a   :  { %8331 = vtanh.f32 %v1878_v52  ;;  %v1979_v26 = vrot.slane %v1878_v52, 6 }
0x2087   :  { %v8332_v39 = vpop.eup %8331 }
0x2088   :  { %1881 = vrot.lane.b32.xlu0 %v8332_v39, %s9180_s4 }
0x20fa   :  { %v1882_v40 = vpop.permute.xlu0 %1881 }
0x20fb   :  { %v9623_v41 = vmul.f32 %v8330_v29, %v1882_v40 }
0x20fd   :  { %v1891_v42 = vrot.slane %v9623_v41, 4 }
0x20ff   :  { %1892 = vrot.lane.b32.xlu1 %v1891_v42, %s9181_s0 }
0x2171   :  { %v1893_v44 = vpop.permute.xlu1 %1892 }
0x2172   :  { %7992 = vmatmul.mubr.msk.f32.vlgmr.msra.gmra.mxu1 %vm584_vm5, %v1893_v44 }
0x2173   :  { %8006 = vmatpush3.msra.mxu1 %v9537_v23  ;;  %8013 = vmatprep.mubr.msk.f32.mxu1 %vm9177_vm1, %v9176_v7 }
0x2174   :  { %8007 = vmatprep.subr.mxu1 %v9176_v7 }
0x2175   :  { %8008 = vmatpush3.msra.mxu1 %v9539_v25 }
0x2176   :  { %8009 = vmatprep.subr.mxu1 %v9176_v7 }
0x2177   :  { %8010 = vmatpush3.msra.mxu1 %v9543_v33 }
0x2178   :  { %8011 = vmatprep.subr.mxu1 %v9176_v7 }
0x2179   :  { %8012 = vmatpush3.msra.mxu1 %v9548_v50 }
0x217a   :  { %8027 = vmatprep.subr.mxu1 %v9176_v7 }
0x2232   :  { %v1962_v45 = vpop.f32.mrf.mxu1 }
0x2233   :  { %v1967_v46 = vrot.slane %v1962_v45, 2 }
0x2234   :  { %v7993_v47 = vpop.f32.mrf.mxu1 }
0x2235   :  { %v1969_v48 = vadd.f32 %v1967_v46, %v9581_v21 }
0x2237   :  { %v7257_v53 = vmul.f32 -1.442695, %v1969_v48 }
0x2239   :  { %8333 = vpow2.f32 %v7257_v53 }
0x2246   :  { %v8334_v54 = vpop.eup %8333 }
0x2247   :  { %v1973_v55 = vadd.f32 1.0, %v8334_v54 }
0x2249   :  { %8335 = vrcp.f32 %v1973_v55 }
0x2256   :  { %v8336_v56 = vpop.eup %8335 }
0x2257   :  { %v1976_v57 = vmul.f32 2.0, %v8336_v56  ;;  %v1981_v60 = vmul.f32 %v8336_v56, %v1979_v26 }
0x2259   :  { %v7258_v58 = vadd.f32 -1.0, %v1976_v57 }
0x225b   :  { %1983 = vrot.lane.b32.xlu0 %v7258_v58, %s9180_s4 }
0x22cd   :  { %v1984_v59 = vpop.permute.xlu0 %1983 }
0x22ce   :  { %v1986_v13 = vmul.f32 %v8336_v56, %v1984_v59 }
0x22d0   :  { %1988 = vrot.lane.b32.xlu1 %v1986_v13, %s9181_s0 }
0x2342   :  { %v1989_v61 = vpop.permute.xlu1 %1988 }
0x2343   :  { %v1991_v18 = vadd.f32 %v1989_v61, %v1981_v60 }
0x2345   :  { %8337 = vtanh.f32 %v1991_v18  ;;  %v2089_v20 = vrot.slane %v1991_v18, 6 }
0x2352   :  { %v8338_v21 = vpop.eup %8337 }
0x2353   :  { %1994 = vrot.lane.b32.xlu0 %v8338_v21, %s9180_s4 }
0x23c5   :  { %v1995_v28 = vpop.permute.xlu0 %1994 }
0x23c6   :  { %v9642_v62 = vmul.f32 %v8336_v56, %v1995_v28 }
0x23c8   :  { %v2004_v63 = vrot.slane %v9642_v62, 6 }
0x23ca   :  { %2005 = vrot.lane.b32.xlu1 %v2004_v63, %s9181_s0 }
0x243c   :  { %v2006_v0 = vpop.permute.xlu1 %2005 }
0x243d   :  { %8003 = vmatmul.mubr.msk.f32.vlgmr.msra.gmra.mxu0 %vm584_vm5, %v2006_v0 }
0x243e   :  { %8017 = vmatpush3.msra.mxu0 %v9537_v23  ;;  %8024 = vmatprep.mubr.msk.f32.mxu0 %vm9177_vm1, %v9176_v7 }
0x243f   :  { %8018 = vmatprep.subr.mxu0 %v9176_v7 }
0x2440   :  { %8019 = vmatpush3.msra.mxu0 %v9539_v25 }
0x2441   :  { %8020 = vmatprep.subr.mxu0 %v9176_v7 }
0x2442   :  { %8021 = vmatpush3.msra.mxu0 %v9543_v33 }
0x2443   :  { %8022 = vmatprep.subr.mxu0 %v9176_v7 }
0x2444   :  { %8023 = vmatpush3.msra.mxu0 %v9548_v50 }
0x24fd   :  { %v2075_v1 = vpop.f32.mrf.mxu0 }
0x24fe   :  { %v2079_v2 = vadd.f32 %v2075_v1, %v9579_v38 }
0x24ff   :  { %v8004_v3 = vpop.f32.mrf.mxu0 }
0x2500   :  { %v7260_v4 = vmul.f32 -1.442695, %v2079_v2 }
0x2502   :  { %8339 = vpow2.f32 %v7260_v4 }
0x250f   :  { %v8340_v6 = vpop.eup %8339 }
0x2510   :  { %v2083_v8 = vadd.f32 1.0, %v8340_v6 }
0x2512   :  { %8341 = vrcp.f32 %v2083_v8 }
0x251f   :  { %v8342_v9 = vpop.eup %8341 }
0x2520   :  { %v2086_v14 = vmul.f32 2.0, %v8342_v9  ;;  %v2091_v43 = vmul.f32 %v8342_v9, %v2089_v20 }
0x2522   :  { %v7261_v15 = vadd.f32 -1.0, %v2086_v14 }
0x2524   :  { %2093 = vrot.lane.b32.xlu0 %v7261_v15, %s9180_s4 }
0x2596   :  { %v2094_v16 = vpop.permute.xlu0 %2093 }
0x2597   :  { %v2096_v19 = vmul.f32 %v8342_v9, %v2094_v16 }
0x2599   :  { %2098 = vrot.lane.b32.xlu1 %v2096_v19, %s9181_s0 }
0x260b   :  { %v2099_v10 = vpop.permute.xlu1 %2098 }
0x260c   :  { %v2101_v30 = vadd.f32 %v2099_v10, %v2091_v43 }
0x260e   :  { %8343 = vtanh.f32 %v2101_v30 }
0x261b   :  { %v8344_v12 = vpop.eup %8343 }
0x261c   :  { %2104 = vrot.lane.b32.xlu0 %v8344_v12, %s9180_s4 }
0x268e   :  { %v2105_v22 = vpop.permute.xlu0 %2104 }
0x268f   :  { %v2107_v24 = vmul.f32 %v8342_v9, %v2105_v22 }
0x2691   :  { %2109 = vrot.lane.b32.xlu1 %v2107_v24, %s9181_s0 }
0x2703   :  { %v2110_v49 = vpop.permute.xlu1 %2109 }
0x2704   :  { %2112 = vst.msk [vmem:[#allocation2 + $0x8] sm:$0x3] %vm695_vm4, %v2110_v49  ;;  %8014 = vmatmul.mubr.msk.f32.vlgmr.msra.gmra.mxu1 %vm584_vm5, %v2110_v49 }
0x2705   :  { %8028 = vmatpush3.msra.mxu1 %v9537_v23  ;;  %8035 = vmatprep.mubr.msk.f32.mxu1 %vm9177_vm1, %v9176_v7 }
0x2706   :  { %8029 = vmatprep.subr.mxu1 %v9176_v7 }
0x2707   :  { %8030 = vmatpush3.msra.mxu1 %v9539_v25 }
0x2708   :  { %8031 = vmatprep.subr.mxu1 %v9176_v7 }
0x2709   :  { %8032 = vmatpush3.msra.mxu1 %v9543_v33 }
0x270a   :  { %8033 = vmatprep.subr.mxu1 %v9176_v7 }
0x270b   :  { %8034 = vmatpush3.msra.mxu1 %v9548_v50  ;;  %v2198_v50 = vrot.slane %v2101_v30, 6 }
0x270c   :  { %8049 = vmatprep.subr.mxu1 %v9176_v7 }
0x27c4   :  { %v2181_v29 = vpop.f32.mrf.mxu1 }
0x27c5   :  { %v2186_v32 = vrot.slane %v2181_v29, 6 }
0x27c6   :  { %v8015_v23 = vpop.f32.mrf.mxu1 }
0x27c7   :  { %v2188_v34 = vadd.f32 %v2186_v32, %v9579_v38 }
0x27c9   :  { %v7263_v31 = vmul.f32 -1.442695, %v2188_v34  ;;  %v2452_v34 = vld [vmem:[#allocation12 + $0x38] sm:$0xff] }
0x27ca   :  { %8038 = vmatprep.subr.mxu0 %v2452_v34 }
0x27cb   :  { %8345 = vpow2.f32 %v7263_v31  ;;  %v2451_v31 = vld [vmem:[#allocation12 + $0x30] sm:$0xff] }
0x27d8   :  { %v8346_v5 = vpop.eup %8345 }
0x27d9   :  { %v2192_v35 = vadd.f32 1.0, %v8346_v5  ;;  %v9706_v5 = vld [vmem:[#allocation14 + $0x58] sm:$0xff] }
0x27db   :  { %8347 = vrcp.f32 %v2192_v35  ;;  %v2450_v35 = vld [vmem:[#allocation12 + $0x28] sm:$0xff] }
0x27e8   :  { %v8348_v25 = vpop.eup %8347 }
0x27e9   :  { %v2195_v51 = vmul.f32 2.0, %v8348_v25  ;;  %v2200_v39 = vmul.f32 %v8348_v25, %v2198_v50 }
0x27eb   :  { %v7264_v37 = vadd.f32 -1.0, %v2195_v51  ;;  %v2449_v51 = vld [vmem:[#allocation12 + $0x20] sm:$0xff] }
0x27ed   :  { %2202 = vrot.lane.b32.xlu0 %v7264_v37, %s9180_s4 }
0x285f   :  { %v2203_v33 = vpop.permute.xlu0 %2202 }
0x2860   :  { %v2205_v52 = vmul.f32 %v8348_v25, %v2203_v33 }
0x2862   :  { %2207 = vrot.lane.b32.xlu1 %v2205_v52, %s9181_s0  ;;  %v9716_v52 = vld [vmem:[#allocation14 + $0x40] sm:$0xff] }
0x28d4   :  { %v2208_v40 = vpop.permute.xlu1 %2207 }
0x28d5   :  { %v2210_v42 = vadd.f32 %v2208_v40, %v2200_v39 }
0x28d7   :  { %8349 = vtanh.f32 %v2210_v42  ;;  %v2310_v21 = vrot.slane %v2210_v42, 6 }
0x28e4   :  { %v8350_v44 = vpop.eup %8349 }
0x28e5   :  { %2213 = vrot.lane.b32.xlu0 %v8350_v44, %s9180_s4 }
0x2957   :  { %v2214_v45 = vpop.permute.xlu0 %2213 }
0x2958   :  { %v9677_v46 = vmul.f32 %v8348_v25, %v2214_v45  ;;  %v9708_v25 = vld [vmem:[#allocation14 + $0x50] sm:$0xff] }
0x295a   :  { %v2222_v47 = vrot.slane %v9677_v46, 2 }
0x295c   :  { %2223 = vrot.lane.b32.xlu1 %v2222_v47, %s9181_s0  ;;  %v7271_v47 = vld [vmem:[#allocation15 + $0x2] ss:$0 sm:$0xff] }
0x29ce   :  { %v2224_v48 = vpop.permute.xlu1 %2223 }
0x29cf   :  { %8025 = vmatmul.mubr.msk.f32.vlgmr.msra.gmra.mxu0 %vm584_vm5, %v2224_v48 }
0x29d0   :  { %8039 = vmatpush3.msra.mxu0 %v2452_v34 }
0x29d1   :  { %8040 = vmatprep.subr.mxu0 %v2451_v31 }
0x29d2   :  { %8041 = vmatpush3.msra.mxu0 %v2451_v31 }
0x29d3   :  { %8042 = vmatprep.subr.mxu0 %v2450_v35 }
0x29d4   :  { %8043 = vmatpush3.msra.mxu0 %v2450_v35 }
0x29d5   :  { %8044 = vmatprep.subr.mxu0 %v2449_v51 }
0x29d6   :  { %8045 = vmatpush3.msra.mxu0 %v2449_v51 }
0x29d7   :  { %8060 = vmatprep.subr.mxu0 %v9176_v7 }
0x2a8f   :  { %v2293_v53 = vpop.f32.mrf.mxu0 }
0x2a90   :  { %v2298_v54 = vrot.slane %v2293_v53, 4 }
0x2a91   :  { %v8026_v55 = vpop.f32.mrf.mxu0 }
0x2a92   :  { %v2300_v56 = vadd.f32 %v2298_v54, %v9579_v38 }
0x2a94   :  { %v7266_v57 = vmul.f32 -1.442695, %v2300_v56 }
0x2a96   :  { %8351 = vpow2.f32 %v7266_v57 }
0x2aa3   :  { %v8352_v58 = vpop.eup %8351 }
0x2aa4   :  { %v2304_v59 = vadd.f32 1.0, %v8352_v58 }
0x2aa6   :  { %8353 = vrcp.f32 %v2304_v59 }
0x2ab3   :  { %v8354_v13 = vpop.eup %8353 }
0x2ab4   :  { %v2307_v26 = vmul.f32 2.0, %v8354_v13  ;;  %v2312_v28 = vmul.f32 %v8354_v13, %v2310_v21 }
0x2ab6   :  { %v7267_v60 = vadd.f32 -1.0, %v2307_v26 }
0x2ab8   :  { %2314 = vrot.lane.b32.xlu0 %v7267_v60, %s9180_s4 }
0x2b2a   :  { %v2315_v61 = vpop.permute.xlu0 %2314 }
0x2b2b   :  { %v2317_v18 = vmul.f32 %v8354_v13, %v2315_v61 }
0x2b2d   :  { %2319 = vrot.lane.b32.xlu1 %v2317_v18, %s9181_s0 }
0x2b9f   :  { %v2320_v63 = vpop.permute.xlu1 %2319 }
0x2ba0   :  { %v2322_v0 = vadd.f32 %v2320_v63, %v2312_v28 }
0x2ba2   :  { %8355 = vtanh.f32 %v2322_v0 }
0x2baf   :  { %v8356_v1 = vpop.eup %8355 }
0x2bb0   :  { %2325 = vrot.lane.b32.xlu0 %v8356_v1, %s9180_s4 }
0x2c22   :  { %v2326_v2 = vpop.permute.xlu0 %2325 }
0x2c23   :  { %v2328_v3 = vmul.f32 %v8354_v13, %v2326_v2 }
0x2c25   :  { %v2334_v4 = vrot.slane %v2328_v3, 4 }
0x2c27   :  { %2335 = vrot.lane.b32.xlu1 %v2334_v4, %s9181_s0 }
0x2c99   :  { %v2336_v6 = vpop.permute.xlu1 %2335 }
0x2c9a   :  { %8036 = vmatmul.mubr.msk.f32.vlgmr.msra.gmra.mxu1 %vm584_vm5, %v2336_v6 }
0x2c9b   :  { %8057 = vmatprep.mubr.msk.f32.mxu1 %vm9177_vm1, %v9176_v7  ;;  %8050 = vmatpush3.msra.mxu1 %v9706_v5 }
0x2c9c   :  { %8051 = vmatprep.subr.mxu1 %v9176_v7 }
0x2c9d   :  { %8052 = vmatpush3.msra.mxu1 %v9708_v25 }
0x2c9e   :  { %8053 = vmatprep.subr.mxu1 %v9176_v7 }
0x2d5a   :  { %v2405_v8 = vpop.f32.mrf.mxu1 }
0x2d5b   :  { %v2410_v9 = vrot.slane %v2405_v8, 2 }
0x2d5c   :  { %v8037_v14 = vpop.f32.mrf.mxu1 }
0x2d5d   :  { %v2412_v15 = vadd.f32 %v2410_v9, %v9579_v38  ;;  %v2422_v38 = vrot.slane %v2322_v0, 6 }
0x2d5f   :  { %v7269_v16 = vmul.f32 -1.442695, %v2412_v15 }
0x2d61   :  { %8357 = vpow2.f32 %v7269_v16 }
0x2d6e   :  { %v8358_v19 = vpop.eup %8357 }
0x2d6f   :  { %v2416_v20 = vadd.f32 1.0, %v8358_v19 }
0x2d71   :  { %8359 = vrcp.f32 %v2416_v20 }
0x2d7e   :  { %v8360_v43 = vpop.eup %8359 }
0x2d7f   :  { %v2419_v10 = vmul.f32 2.0, %v8360_v43  ;;  %v2424_v24 = vmul.f32 %v8360_v43, %v2422_v38 }
0x2d81   :  { %v7270_v30 = vadd.f32 -1.0, %v2419_v10 }
0x2d83   :  { %2426 = vrot.lane.b32.xlu0 %v7270_v30, %s9180_s4 }
0x2df5   :  { %v2427_v12 = vpop.permute.xlu0 %2426 }
0x2df6   :  { %v2429_v22 = vmul.f32 %v8360_v43, %v2427_v12 }
0x2df8   :  { %2431 = vrot.lane.b32.xlu1 %v2429_v22, %s9181_s0 }
0x2dfc   :  { %1773 = vrot.lane.b32.xlu1 %v9604_v17, %s9181_s0 }
0x2e00   :  { %1999 = vrot.lane.b32.xlu1 %v9642_v62, %s9181_s0 }
0x2e04   :  { %2330 = vrot.lane.b32.xlu1 %v2328_v3, %s9181_s0 }
0x2e6a   :  { %v2432_v49 = vpop.permute.xlu1 %2431 }
0x2e6b   :  { %v2434_v29 = vadd.f32 %v2432_v49, %v2424_v24 }
0x2e6d   :  { %8361 = vtanh.f32 %v2434_v29 }
0x2e6e   :  { %v1774_v32 = vpop.permute.xlu1 %1773 }
0x2e6f   :  { %1777 = vst.msk [vmem:[#allocation2] sm:$0xc] %vm1776_vm6, %v1774_v32 }
0x2e72   :  { %v2000_v23 = vpop.permute.xlu1 %1999 }
0x2e73   :  { %2003 = vst.msk [vmem:[#allocation2] sm:$0xc0] %vm2002_vm7, %v2000_v23 }
0x2e76   :  { %v2331_v17 = vpop.permute.xlu1 %2330 }
0x2e77   :  { %2333 = vst.msk [vmem:[#allocation2 + $0x8] sm:$0x30] %vm1889_vm8, %v2331_v17 }
0x2e7a   :  { %v8362_v62 = vpop.eup %8361 }
0x2e7b   :  { %2437 = vrot.lane.b32.xlu0 %v8362_v62, %s9180_s4 }
0x2e7f   :  { %1886 = vrot.lane.b32.xlu0 %v9623_v41, %s9181_s0  ;;  %v9712_v41 = vld [vmem:[#allocation14 + $0x48] sm:$0xff] }
0x2e80   :  { %8054 = vmatpush3.msra.mxu1 %v9712_v41 }
0x2e81   :  { %8055 = vmatprep.subr.mxu1 %v9176_v7 }
0x2e82   :  { %8056 = vmatpush3.msra.mxu1 %v9716_v52 }
0x2e83   :  { %2218 = vrot.lane.b32.xlu0 %v9677_v46, %s9181_s0  ;;  %8058 = vmatmul.mubr.f32.vlgmr.msra.gmra.mxu1 %v9176_v7 }
0x2e84   :  { %8071 = vmatprep.subr.mxu1 %v9176_v7  ;;  %8079 = vmatprep.mubr.msk.f32.mxu1 %vm9177_vm1, %v9176_v7 }
0x2e85   :  { %8072 = vmatpush3.msra.mxu1 %v9706_v5 }
0x2e86   :  { %8073 = vmatprep.subr.mxu1 %v9176_v7 }
0x2e87   :  { %8074 = vmatpush3.msra.mxu1 %v9708_v25 }
0x2e88   :  { %8075 = vmatprep.subr.mxu1 %v9176_v7 }
0x2e89   :  { %8076 = vmatpush3.msra.mxu1 %v9712_v41 }
0x2e8a   :  { %8077 = vmatprep.subr.mxu1 %v9176_v7 }
0x2e8b   :  { %8078 = vmatpush3.msra.mxu1 %v9716_v52 }
0x2e8c   :  { %8093 = vmatprep.subr.mxu1 %v9176_v7 }
0x2eed   :  { %v2438_v37 = vpop.permute.xlu0 %2437 }
0x2eee   :  { %v2440_v33 = vmul.f32 %v8360_v43, %v2438_v37 }
0x2ef0   :  { %2442 = vrot.lane.b32.xlu0 %v2440_v33, %s9181_s0 }
0x2ef1   :  { %v1887_v50 = vpop.permute.xlu0 %1886 }
0x2ef2   :  { %1890 = vst.msk [vmem:[#allocation2] sm:$0x30] %vm1889_vm8, %v1887_v50 }
0x2ef5   :  { %v2219_v39 = vpop.permute.xlu0 %2218 }
0x2ef6   :  { %2221 = vst.msk [vmem:[#allocation2 + $0x8] sm:$0xc] %vm1776_vm6, %v2219_v39 }
0x2ef9   :  { %v2446_v40 = vld [vmem:[#allocation2] sm:$0xff] }
0x2efa   :  { %8046 = vmatprep.mubr.msk.f32.mxu0 %vm584_vm5, %v2446_v40 }
0x2f43   :  { %v2613_v45 = vpop.f32.mrf.mxu1 }
0x2f45   :  { %v8059_v46 = vpop.f32.mrf.mxu1 }
0x2f62   :  { %v2443_v42 = vpop.permute.xlu0 %2442 }
0x2f63   :  { %2445 = vst.msk [vmem:[#allocation2 + $0x8] sm:$0xc0] %vm2002_vm7, %v2443_v42 }
0x2f6a   :  { %v2447_v44 = vld [vmem:[#allocation2 + $0x8] sm:$0xff] }
0x2f6b   :  { %8047 = vmatmul.mubr.msk.f32.vlgmr.msra.gmra.mxu0 %vm584_vm5, %v2447_v44 }
0x2f6c   :  { %8061 = vmatpush3.msra.mxu0 %v9706_v5  ;;  %8068 = vmatprep.mubr.msk.f32.mxu0 %vm9177_vm1, %v9176_v7 }
0x2f6d   :  { %8062 = vmatprep.subr.mxu0 %v9176_v7 }
0x2f6e   :  { %8063 = vmatpush3.msra.mxu0 %v9708_v25 }
0x2f6f   :  { %8064 = vmatprep.subr.mxu0 %v9176_v7 }
0x2f70   :  { %8065 = vmatpush3.msra.mxu0 %v9712_v41 }
0x2f71   :  { %8066 = vmatprep.subr.mxu0 %v9176_v7 }
0x2f72   :  { %8067 = vmatpush3.msra.mxu0 %v9716_v52 }
0x2f73   :  { %8082 = vmatprep.subr.mxu0 %v9176_v7 }
0x302b   :  { %v8048_v48 = vpop.f32.mrf.mxu0 }
0x302c   :  { %v9750_v53 = vadd.f32 %v8048_v48, %v7271_v47 }
0x302d   :  { %v2533_v54 = vpop.f32.mrf.mxu0 }
0x302e   :  { %v9752_v55 = vadd.f32 %v7271_v47, %v2533_v54 }
0x3030   :  { %v2617_v56 = vadd.f32 %v2613_v45, %v9752_v55 }
0x3032   :  { %v7274_v57 = vmul.f32 -1.442695, %v2617_v56 }
0x3034   :  { %8363 = vpow2.f32 %v7274_v57 }
0x3041   :  { %v8364_v58 = vpop.eup %8363 }
0x3042   :  { %v2621_v59 = vadd.f32 1.0, %v8364_v58 }
0x3044   :  { %8365 = vrcp.f32 %v2621_v59 }
0x3051   :  { %v8366_v13 = vpop.eup %8365 }
0x3052   :  { %v2624_v26 = vmul.f32 2.0, %v8366_v13  ;;  %v2626_v21 = vmul.f32 0.0, %v8366_v13 }
0x3054   :  { %v7275_v60 = vadd.f32 -1.0, %v2624_v26 }
0x3056   :  { %2628 = vrot.lane.b32.xlu1 %v7275_v60, %s9180_s4 }
0x30c8   :  { %v2629_v61 = vpop.permute.xlu1 %2628 }
0x30c9   :  { %v2631_v18 = vmul.f32 %v8366_v13, %v2629_v61 }
0x30cb   :  { %2633 = vrot.lane.b32.xlu0 %v2631_v18, %s9181_s0 }
0x313d   :  { %v2634_v28 = vpop.permute.xlu0 %2633 }
0x313e   :  { %v2636_v63 = vadd.f32 %v2634_v28, %v2626_v21 }
0x3140   :  { %8367 = vtanh.f32 %v2636_v63  ;;  %v2733_v12 = vrot.slane %v2636_v63, 6 }
0x314d   :  { %v8368_v0 = vpop.eup %8367 }
0x314e   :  { %2639 = vrot.lane.b32.xlu1 %v8368_v0, %s9180_s4 }
0x31c0   :  { %v2640_v1 = vpop.permute.xlu1 %2639 }
0x31c1   :  { %v2642_v2 = vmul.f32 %v8366_v13, %v2640_v1 }
0x31c3   :  { %2644 = vrot.lane.b32.xlu0 %v2642_v2, %s9181_s0 }
0x3235   :  { %v2645_v3 = vpop.permute.xlu0 %2644 }
0x3236   :  { %2647 = vst.msk [vmem:[#allocation2] sm:$0x3] %vm695_vm4, %v2645_v3  ;;  %8069 = vmatmul.mubr.msk.f32.vlgmr.msra.gmra.mxu0 %vm584_vm5, %v2645_v3 }
0x3237   :  { %8083 = vmatpush3.msra.mxu0 %v9706_v5  ;;  %8090 = vmatprep.mubr.msk.f32.mxu0 %vm9177_vm1, %v9176_v7 }
0x3238   :  { %8084 = vmatprep.subr.mxu0 %v9176_v7 }
0x3239   :  { %8085 = vmatpush3.msra.mxu0 %v9708_v25 }
0x323a   :  { %8086 = vmatprep.subr.mxu0 %v9176_v7 }
0x323b   :  { %8087 = vmatpush3.msra.mxu0 %v9712_v41 }
0x323c   :  { %8088 = vmatprep.subr.mxu0 %v9176_v7 }
0x323d   :  { %8089 = vmatpush3.msra.mxu0 %v9716_v52 }
0x323e   :  { %8104 = vmatprep.subr.mxu0 %v9176_v7 }
0x32f6   :  { %v2716_v4 = vpop.f32.mrf.mxu0 }
0x32f7   :  { %v2721_v6 = vrot.slane %v2716_v4, 6 }
0x32f8   :  { %v8070_v8 = vpop.f32.mrf.mxu0 }
0x32f9   :  { %v2723_v9 = vadd.f32 %v2721_v6, %v9752_v55 }
0x32fb   :  { %v7277_v14 = vmul.f32 -1.442695, %v2723_v9 }
0x32fd   :  { %8369 = vpow2.f32 %v7277_v14 }
0x330a   :  { %v8370_v15 = vpop.eup %8369 }
0x330b   :  { %v2727_v16 = vadd.f32 1.0, %v8370_v15 }
0x330d   :  { %8371 = vrcp.f32 %v2727_v16 }
0x331a   :  { %v8372_v19 = vpop.eup %8371 }
0x331b   :  { %v2730_v20 = vmul.f32 2.0, %v8372_v19  ;;  %v2735_v22 = vmul.f32 %v8372_v19, %v2733_v12 }
0x331d   :  { %v7278_v43 = vadd.f32 -1.0, %v2730_v20 }
0x331f   :  { %2737 = vrot.lane.b32.xlu1 %v7278_v43, %s9180_s4 }
0x3391   :  { %v2738_v10 = vpop.permute.xlu1 %2737 }
0x3392   :  { %v2740_v30 = vmul.f32 %v8372_v19, %v2738_v10 }
0x3394   :  { %2742 = vrot.lane.b32.xlu0 %v2740_v30, %s9181_s0 }
0x3406   :  { %v2743_v38 = vpop.permute.xlu0 %2742 }
0x3407   :  { %v2745_v24 = vadd.f32 %v2743_v38, %v2735_v22 }
0x3409   :  { %8373 = vtanh.f32 %v2745_v24  ;;  %v2845_v45 = vrot.slane %v2745_v24, 6 }
0x3416   :  { %v8374_v49 = vpop.eup %8373 }
0x3417   :  { %2748 = vrot.lane.b32.xlu1 %v8374_v49, %s9180_s4 }
0x3489   :  { %v2749_v29 = vpop.permute.xlu1 %2748 }
0x348a   :  { %v9775_v32 = vmul.f32 %v8372_v19, %v2749_v29 }
0x348c   :  { %v2757_v23 = vrot.slane %v9775_v32, 2 }
0x348e   :  { %2758 = vrot.lane.b32.xlu0 %v2757_v23, %s9181_s0 }
0x3500   :  { %v2759_v17 = vpop.permute.xlu0 %2758 }
0x3501   :  { %8080 = vmatmul.mubr.msk.f32.vlgmr.msra.gmra.mxu1 %vm584_vm5, %v2759_v17 }
0x3502   :  { %8094 = vmatpush3.msra.mxu1 %v9706_v5  ;;  %8101 = vmatprep.mubr.msk.f32.mxu1 %vm9177_vm1, %v9176_v7 }
0x3503   :  { %8095 = vmatprep.subr.mxu1 %v9176_v7 }
0x3504   :  { %8096 = vmatpush3.msra.mxu1 %v9708_v25 }
0x3505   :  { %8097 = vmatprep.subr.mxu1 %v9176_v7 }
0x3506   :  { %8098 = vmatpush3.msra.mxu1 %v9712_v41 }
0x3507   :  { %8099 = vmatprep.subr.mxu1 %v9176_v7 }
0x3508   :  { %8100 = vmatpush3.msra.mxu1 %v9716_v52 }
0x3509   :  { %8115 = vmatprep.subr.mxu1 %v9176_v7 }
0x35c1   :  { %v2828_v62 = vpop.f32.mrf.mxu1 }
0x35c2   :  { %v2833_v34 = vrot.slane %v2828_v62, 4 }
0x35c3   :  { %v8081_v31 = vpop.f32.mrf.mxu1 }
0x35c4   :  { %v2835_v35 = vadd.f32 %v2833_v34, %v9752_v55 }
0x35c6   :  { %v7280_v51 = vmul.f32 -1.442695, %v2835_v35 }
0x35c8   :  { %8375 = vpow2.f32 %v7280_v51 }
0x35d5   :  { %v8376_v37 = vpop.eup %8375 }
0x35d6   :  { %v2839_v33 = vadd.f32 1.0, %v8376_v37 }
0x35d8   :  { %8377 = vrcp.f32 %v2839_v33 }
0x35e5   :  { %v8378_v50 = vpop.eup %8377 }
0x35e6   :  { %v2842_v39 = vmul.f32 2.0, %v8378_v50  ;;  %v2847_v46 = vmul.f32 %v8378_v50, %v2845_v45 }
0x35e8   :  { %v7281_v40 = vadd.f32 -1.0, %v2842_v39 }
0x35ea   :  { %2849 = vrot.lane.b32.xlu1 %v7281_v40, %s9180_s4 }
0x365c   :  { %v2850_v42 = vpop.permute.xlu1 %2849 }
0x365d   :  { %v2852_v44 = vmul.f32 %v8378_v50, %v2850_v42 }
0x365f   :  { %2854 = vrot.lane.b32.xlu0 %v2852_v44, %s9181_s0 }
0x36d1   :  { %v2855_v47 = vpop.permute.xlu0 %2854 }
0x36d2   :  { %v2857_v48 = vadd.f32 %v2855_v47, %v2847_v46 }
0x36d4   :  { %8379 = vtanh.f32 %v2857_v48  ;;  %v2957_v4 = vrot.slane %v2857_v48, 6 }
0x36e1   :  { %v8380_v54 = vpop.eup %8379 }
0x36e2   :  { %2860 = vrot.lane.b32.xlu1 %v8380_v54, %s9180_s4 }
0x3754   :  { %v2861_v56 = vpop.permute.xlu1 %2860 }
0x3755   :  { %v9794_v57 = vmul.f32 %v8378_v50, %v2861_v56 }
0x3757   :  { %v2869_v58 = vrot.slane %v9794_v57, 4 }
0x3759   :  { %2870 = vrot.lane.b32.xlu0 %v2869_v58, %s9181_s0 }
0x37cb   :  { %v2871_v59 = vpop.permute.xlu0 %2870 }
0x37cc   :  { %8091 = vmatmul.mubr.msk.f32.vlgmr.msra.gmra.mxu0 %vm584_vm5, %v2871_v59 }
0x37cd   :  { %8105 = vmatpush3.msra.mxu0 %v9706_v5  ;;  %8112 = vmatprep.mubr.msk.f32.mxu0 %vm9177_vm1, %v9176_v7 }
0x37ce   :  { %8106 = vmatprep.subr.mxu0 %v9176_v7 }
0x37cf   :  { %8107 = vmatpush3.msra.mxu0 %v9708_v25 }
0x37d0   :  { %8108 = vmatprep.subr.mxu0 %v9176_v7 }
0x37d1   :  { %8109 = vmatpush3.msra.mxu0 %v9712_v41 }
0x37d2   :  { %8110 = vmatprep.subr.mxu0 %v9176_v7 }
0x37d3   :  { %8111 = vmatpush3.msra.mxu0 %v9716_v52 }
0x37d4   :  { %8126 = vmatprep.subr.mxu0 %v9176_v7 }
0x388c   :  { %v2940_v13 = vpop.f32.mrf.mxu0 }
0x388d   :  { %v2945_v26 = vrot.slane %v2940_v13, 2 }
0x388e   :  { %v8092_v60 = vpop.f32.mrf.mxu0 }
0x388f   :  { %v2947_v61 = vadd.f32 %v2945_v26, %v9752_v55 }
0x3891   :  { %v7283_v18 = vmul.f32 -1.442695, %v2947_v61 }
0x3893   :  { %8381 = vpow2.f32 %v7283_v18 }
0x38a0   :  { %v8382_v21 = vpop.eup %8381 }
0x38a1   :  { %v2951_v28 = vadd.f32 1.0, %v8382_v21 }
0x38a3   :  { %8383 = vrcp.f32 %v2951_v28 }
0x38b0   :  { %v8384_v63 = vpop.eup %8383 }
0x38b1   :  { %v2954_v0 = vmul.f32 2.0, %v8384_v63  ;;  %v2959_v6 = vmul.f32 %v8384_v63, %v2957_v4 }
0x38b3   :  { %v7284_v1 = vadd.f32 -1.0, %v2954_v0 }
0x38b5   :  { %2961 = vrot.lane.b32.xlu1 %v7284_v1, %s9180_s4 }
0x3927   :  { %v2962_v2 = vpop.permute.xlu1 %2961 }
0x3928   :  { %v2964_v3 = vmul.f32 %v8384_v63, %v2962_v2 }
0x392a   :  { %2966 = vrot.lane.b32.xlu0 %v2964_v3, %s9181_s0 }
0x399c   :  { %v2967_v8 = vpop.permute.xlu0 %2966 }
0x399d   :  { %v2969_v9 = vadd.f32 %v2967_v8, %v2959_v6 }
0x399f   :  { %8385 = vtanh.f32 %v2969_v9  ;;  %v3066_v17 = vrot.slane %v2969_v9, 6 }
0x39ac   :  { %v8386_v55 = vpop.eup %8385 }
0x39ad   :  { %2972 = vrot.lane.b32.xlu1 %v8386_v55, %s9180_s4 }
0x3a1f   :  { %v2973_v14 = vpop.permute.xlu1 %2972 }
0x3a20   :  { %v9813_v15 = vmul.f32 %v8384_v63, %v2973_v14 }
0x3a22   :  { %v2981_v16 = vrot.slane %v9813_v15, 6 }
0x3a24   :  { %2982 = vrot.lane.b32.xlu0 %v2981_v16, %s9181_s0 }
0x3a96   :  { %v2983_v19 = vpop.permute.xlu0 %2982 }
0x3a97   :  { %8102 = vmatmul.mubr.msk.f32.vlgmr.msra.gmra.mxu1 %vm584_vm5, %v2983_v19 }
0x3a98   :  { %8116 = vmatpush3.msra.mxu1 %v9706_v5  ;;  %8123 = vmatprep.mubr.msk.f32.mxu1 %vm9177_vm1, %v9176_v7 }
0x3a99   :  { %8117 = vmatprep.subr.mxu1 %v9176_v7 }
0x3a9a   :  { %8118 = vmatpush3.msra.mxu1 %v9708_v25 }
0x3a9b   :  { %8119 = vmatprep.subr.mxu1 %v9176_v7 }
0x3a9c   :  { %8120 = vmatpush3.msra.mxu1 %v9712_v41 }
0x3a9d   :  { %8121 = vmatprep.subr.mxu1 %v9176_v7 }
0x3a9e   :  { %8122 = vmatpush3.msra.mxu1 %v9716_v52 }
0x3b57   :  { %v3052_v20 = vpop.f32.mrf.mxu1 }
0x3b58   :  { %v3056_v43 = vadd.f32 %v3052_v20, %v9750_v53 }
0x3b59   :  { %v8103_v10 = vpop.f32.mrf.mxu1 }
0x3b5a   :  { %v7286_v30 = vmul.f32 -1.442695, %v3056_v43 }
0x3b5c   :  { %8387 = vpow2.f32 %v7286_v30 }
0x3b69   :  { %v8388_v12 = vpop.eup %8387 }
0x3b6a   :  { %v3060_v22 = vadd.f32 1.0, %v8388_v12 }
0x3b6c   :  { %8389 = vrcp.f32 %v3060_v22 }
0x3b79   :  { %v8390_v38 = vpop.eup %8389 }
0x3b7a   :  { %v3063_v24 = vmul.f32 2.0, %v8390_v38  ;;  %v3068_v62 = vmul.f32 %v8390_v38, %v3066_v17 }
0x3b7c   :  { %v7287_v49 = vadd.f32 -1.0, %v3063_v24 }
0x3b7e   :  { %3070 = vrot.lane.b32.xlu1 %v7287_v49, %s9180_s4 }
0x3bf0   :  { %v3071_v29 = vpop.permute.xlu1 %3070 }
0x3bf1   :  { %v3073_v23 = vmul.f32 %v8390_v38, %v3071_v29 }
0x3bf3   :  { %3075 = vrot.lane.b32.xlu0 %v3073_v23, %s9181_s0 }
0x3c65   :  { %v3076_v34 = vpop.permute.xlu0 %3075 }
0x3c66   :  { %v3078_v31 = vadd.f32 %v3076_v34, %v3068_v62 }
0x3c68   :  { %8391 = vtanh.f32 %v3078_v31 }
0x3c75   :  { %v8392_v35 = vpop.eup %8391 }
0x3c76   :  { %3081 = vrot.lane.b32.xlu1 %v8392_v35, %s9180_s4 }
0x3ce8   :  { %v3082_v51 = vpop.permute.xlu1 %3081 }
0x3ce9   :  { %v3084_v37 = vmul.f32 %v8390_v38, %v3082_v51 }
0x3ceb   :  { %3086 = vrot.lane.b32.xlu0 %v3084_v37, %s9181_s0 }
0x3d5d   :  { %v3087_v33 = vpop.permute.xlu0 %3086 }
0x3d5e   :  { %3089 = vst.msk [vmem:[#allocation2 + $0x8] sm:$0x3] %vm695_vm4, %v3087_v33  ;;  %8113 = vmatmul.mubr.msk.f32.vlgmr.msra.gmra.mxu0 %vm584_vm5, %v3087_v33 }
0x3d5f   :  { %8127 = vmatpush3.msra.mxu0 %v9706_v5  ;;  %8134 = vmatprep.mubr.msk.f32.mxu0 %vm9177_vm1, %v9176_v7 }
0x3d60   :  { %8128 = vmatprep.subr.mxu0 %v9176_v7 }
0x3d61   :  { %8129 = vmatpush3.msra.mxu0 %v9708_v25 }
0x3d62   :  { %8130 = vmatprep.subr.mxu0 %v9176_v7 }
0x3d63   :  { %8131 = vmatpush3.msra.mxu0 %v9712_v41 }
0x3d64   :  { %8132 = vmatprep.subr.mxu0 %v9176_v7 }
0x3d65   :  { %8133 = vmatpush3.msra.mxu0 %v9716_v52  ;;  %v3175_v52 = vrot.slane %v3078_v31, 6 }
0x3d66   :  { %8148 = vmatprep.subr.mxu0 %v9176_v7 }
0x3e1e   :  { %v3158_v50 = vpop.f32.mrf.mxu0 }
0x3e1f   :  { %v3163_v39 = vrot.slane %v3158_v50, 6 }
0x3e20   :  { %v8114_v5 = vpop.f32.mrf.mxu0 }
0x3e21   :  { %v3165_v40 = vadd.f32 %v3163_v39, %v9750_v53 }
0x3e23   :  { %v7289_v42 = vmul.f32 -1.442695, %v3165_v40 }
0x3e25   :  { %8393 = vpow2.f32 %v7289_v42  ;;  %v3428_v42 = vld [vmem:[#allocation12 + $0x50] sm:$0xff] }
0x3e32   :  { %v8394_v44 = vpop.eup %8393 }
0x3e33   :  { %v3169_v45 = vadd.f32 1.0, %v8394_v44  ;;  %v9877_v44 = vld [vmem:[#allocation14 + $0x78] sm:$0xff] }
0x3e35   :  { %8395 = vrcp.f32 %v3169_v45  ;;  %v9880_v45 = vld [vmem:[#allocation14 + $0x70] sm:$0xff] }
0x3e42   :  { %v8396_v25 = vpop.eup %8395 }
0x3e43   :  { %v3172_v46 = vmul.f32 2.0, %v8396_v25  ;;  %v3177_v54 = vmul.f32 %v8396_v25, %v3175_v52 }
0x3e45   :  { %v7290_v47 = vadd.f32 -1.0, %v3172_v46  ;;  %v9883_v46 = vld [vmem:[#allocation14 + $0x68] sm:$0xff] }
0x3e47   :  { %3179 = vrot.lane.b32.xlu1 %v7290_v47, %s9180_s4  ;;  %v9889_v47 = vld [vmem:[#allocation14 + $0x60] sm:$0xff] }
0x3eb9   :  { %v3180_v41 = vpop.permute.xlu1 %3179 }
0x3eba   :  { %v3182_v48 = vmul.f32 %v8396_v25, %v3180_v41 }
0x3ebc   :  { %3184 = vrot.lane.b32.xlu0 %v3182_v48, %s9181_s0 }
0x3f2e   :  { %v3185_v56 = vpop.permute.xlu0 %3184 }
0x3f2f   :  { %v3187_v58 = vadd.f32 %v3185_v56, %v3177_v54 }
0x3f31   :  { %8397 = vtanh.f32 %v3187_v58  ;;  %v3287_v55 = vrot.slane %v3187_v58, 6 }
0x3f3e   :  { %v8398_v59 = vpop.eup %8397 }
0x3f3f   :  { %3190 = vrot.lane.b32.xlu1 %v8398_v59, %s9180_s4 }
0x3fb1   :  { %v3191_v13 = vpop.permute.xlu1 %3190 }
0x3fb2   :  { %v9848_v26 = vmul.f32 %v8396_v25, %v3191_v13  ;;  %v3427_v25 = vld [vmem:[#allocation12 + $0x48] sm:$0xff] }
0x3fb4   :  { %v3199_v60 = vrot.slane %v9848_v26, 2 }
0x3fb6   :  { %3200 = vrot.lane.b32.xlu0 %v3199_v60, %s9181_s0  ;;  %v7297_v60 = vld [vmem:[#allocation15 + $0x3] ss:$0 sm:$0xff] }
0x4028   :  { %v3201_v61 = vpop.permute.xlu0 %3200 }
0x4029   :  { %8124 = vmatmul.mubr.msk.f32.vlgmr.msra.gmra.mxu1 %vm584_vm5, %v3201_v61 }
0x40e9   :  { %v3270_v18 = vpop.f32.mrf.mxu1 }
0x40ea   :  { %v3275_v21 = vrot.slane %v3270_v18, 4 }
0x40eb   :  { %v8125_v28 = vpop.f32.mrf.mxu1 }
0x40ec   :  { %v3277_v63 = vadd.f32 %v3275_v21, %v9750_v53 }
0x40ee   :  { %v7292_v0 = vmul.f32 -1.442695, %v3277_v63 }
0x40f0   :  { %8399 = vpow2.f32 %v7292_v0 }
0x40fd   :  { %v8400_v1 = vpop.eup %8399 }
0x40fe   :  { %v3281_v2 = vadd.f32 1.0, %v8400_v1 }
0x4100   :  { %8401 = vrcp.f32 %v3281_v2 }
0x410d   :  { %v8402_v3 = vpop.eup %8401 }
0x410e   :  { %v3284_v4 = vmul.f32 2.0, %v8402_v3  ;;  %v3289_v14 = vmul.f32 %v8402_v3, %v3287_v55 }
0x4110   :  { %v7293_v6 = vadd.f32 -1.0, %v3284_v4 }
0x4112   :  { %3291 = vrot.lane.b32.xlu1 %v7293_v6, %s9180_s4 }
0x4184   :  { %v3292_v8 = vpop.permute.xlu1 %3291 }
0x4185   :  { %v3294_v9 = vmul.f32 %v8402_v3, %v3292_v8 }
0x4187   :  { %3296 = vrot.lane.b32.xlu0 %v3294_v9, %s9181_s0 }
0x41f9   :  { %v3297_v16 = vpop.permute.xlu0 %3296 }
0x41fa   :  { %v3299_v19 = vadd.f32 %v3297_v16, %v3289_v14 }
0x41fc   :  { %8403 = vtanh.f32 %v3299_v19 }
0x4209   :  { %v8404_v20 = vpop.eup %8403 }
0x420a   :  { %3302 = vrot.lane.b32.xlu1 %v8404_v20, %s9180_s4 }
0x427c   :  { %v3303_v43 = vpop.permute.xlu1 %3302 }
0x427d   :  { %v3305_v10 = vmul.f32 %v8402_v3, %v3303_v43 }
0x427f   :  { %v3311_v30 = vrot.slane %v3305_v10, 4 }
0x4281   :  { %3312 = vrot.lane.b32.xlu0 %v3311_v30, %s9181_s0 }
0x42f3   :  { %v3313_v12 = vpop.permute.xlu0 %3312 }
0x42f4   :  { %8135 = vmatmul.mubr.msk.f32.vlgmr.msra.gmra.mxu0 %vm584_vm5, %v3313_v12 }
0x42f5   :  { %8156 = vmatprep.mubr.msk.f32.mxu0 %vm9177_vm1, %v9176_v7  ;;  %8149 = vmatpush3.msra.mxu0 %v9877_v44 }
0x42f6   :  { %8150 = vmatprep.subr.mxu0 %v9176_v7 }
0x42f7   :  { %8151 = vmatpush3.msra.mxu0 %v9880_v45 }
0x42f8   :  { %8152 = vmatprep.subr.mxu0 %v9176_v7 }
0x42f9   :  { %8153 = vmatpush3.msra.mxu0 %v9883_v46 }
0x42fa   :  { %8154 = vmatprep.subr.mxu0 %v9176_v7 }
0x42fb   :  { %8155 = vmatpush3.msra.mxu0 %v9889_v47 }
0x42fc   :  { %8157 = vmatmul.mubr.f32.vlgmr.msra.gmra.mxu0 %v9176_v7  ;;  %8170 = vmatprep.subr.mxu0 %v9176_v7 }
0x42fd   :  { %8171 = vmatpush3.msra.mxu0 %v9877_v44  ;;  %8178 = vmatprep.mubr.msk.f32.mxu0 %vm9177_vm1, %v9176_v7 }
0x42fe   :  { %8172 = vmatprep.subr.mxu0 %v9176_v7 }
0x42ff   :  { %8173 = vmatpush3.msra.mxu0 %v9880_v45 }
0x4300   :  { %8174 = vmatprep.subr.mxu0 %v9176_v7 }
0x4301   :  { %8175 = vmatpush3.msra.mxu0 %v9883_v46 }
0x4302   :  { %8176 = vmatprep.subr.mxu0 %v9176_v7 }
0x4303   :  { %8177 = vmatpush3.msra.mxu0 %v9889_v47 }
0x4304   :  { %8192 = vmatprep.subr.mxu0 %v9176_v7 }
0x43b4   :  { %v3382_v22 = vpop.f32.mrf.mxu0 }
0x43b5   :  { %v3387_v38 = vrot.slane %v3382_v22, 2 }
0x43b6   :  { %v8136_v24 = vpop.f32.mrf.mxu0 }
0x43b7   :  { %v3389_v49 = vadd.f32 %v3387_v38, %v9750_v53  ;;  %v3399_v53 = vrot.slane %v3299_v19, 6 }
0x43b9   :  { %v7295_v29 = vmul.f32 -1.442695, %v3389_v49 }
0x43bb   :  { %8405 = vpow2.f32 %v7295_v29 }
0x43bc   :  { %v3590_v13 = vpop.f32.mrf.mxu0 }
0x43c8   :  { %v8406_v23 = vpop.eup %8405 }
0x43c9   :  { %v3393_v17 = vadd.f32 1.0, %v8406_v23 }
0x43cb   :  { %8407 = vrcp.f32 %v3393_v17 }
0x43d8   :  { %v8408_v62 = vpop.eup %8407 }
0x43d9   :  { %v3396_v34 = vmul.f32 2.0, %v8408_v62  ;;  %v3401_v37 = vmul.f32 %v8408_v62, %v3399_v53 }
0x43db   :  { %v7296_v31 = vadd.f32 -1.0, %v3396_v34 }
0x43dd   :  { %3403 = vrot.lane.b32.xlu1 %v7296_v31, %s9180_s4 }
0x444f   :  { %v3404_v35 = vpop.permute.xlu1 %3403 }
0x4450   :  { %v3406_v51 = vmul.f32 %v8408_v62, %v3404_v35 }
0x4452   :  { %3408 = vrot.lane.b32.xlu0 %v3406_v51, %s9181_s0 }
0x4456   :  { %2753 = vrot.lane.b32.xlu0 %v9775_v32, %s9181_s0 }
0x445a   :  { %2977 = vrot.lane.b32.xlu0 %v9813_v15, %s9181_s0  ;;  %v3429_v15 = vld [vmem:[#allocation12 + $0x58] sm:$0xff] }
0x445b   :  { %8137 = vmatprep.subr.mxu1 %v3429_v15 }
0x445c   :  { %8138 = vmatpush3.msra.mxu1 %v3429_v15 }
0x445d   :  { %8139 = vmatprep.subr.mxu1 %v3428_v42 }
0x445e   :  { %3307 = vrot.lane.b32.xlu0 %v3305_v10, %s9181_s0  ;;  %8140 = vmatpush3.msra.mxu1 %v3428_v42 }
0x445f   :  { %8141 = vmatprep.subr.mxu1 %v3427_v25 }
0x4460   :  { %8142 = vmatpush3.msra.mxu1 %v3427_v25 }
0x44c4   :  { %v3409_v33 = vpop.permute.xlu0 %3408 }
0x44c5   :  { %v3411_v50 = vadd.f32 %v3409_v33, %v3401_v37 }
0x44c7   :  { %8409 = vtanh.f32 %v3411_v50 }
0x44c8   :  { %v2754_v39 = vpop.permute.xlu0 %2753 }
0x44c9   :  { %2756 = vst.msk [vmem:[#allocation2] sm:$0xc] %vm1776_vm6, %v2754_v39 }
0x44cc   :  { %v2978_v5 = vpop.permute.xlu0 %2977 }
0x44cd   :  { %2980 = vst.msk [vmem:[#allocation2] sm:$0xc0] %vm2002_vm7, %v2978_v5 }
0x44d0   :  { %v3308_v40 = vpop.permute.xlu0 %3307 }
0x44d1   :  { %3310 = vst.msk [vmem:[#allocation2 + $0x8] sm:$0x30] %vm1889_vm8, %v3308_v40 }
0x44d4   :  { %v8410_v32 = vpop.eup %8409 }
0x44d5   :  { %3414 = vrot.lane.b32.xlu1 %v8410_v32, %s9180_s4 }
0x44d9   :  { %2865 = vrot.lane.b32.xlu1 %v9794_v57, %s9181_s0  ;;  %v3426_v57 = vld [vmem:[#allocation12 + $0x40] sm:$0xff] }
0x44da   :  { %8143 = vmatprep.subr.mxu1 %v3426_v57 }
0x44db   :  { %8144 = vmatpush3.msra.mxu1 %v3426_v57 }
0x44dc   :  { %8159 = vmatprep.subr.mxu1 %v9176_v7 }
0x44dd   :  { %3195 = vrot.lane.b32.xlu1 %v9848_v26, %s9181_s0  ;;  %v8158_v26 = vpop.f32.mrf.mxu0 }
0x4547   :  { %v3415_v41 = vpop.permute.xlu1 %3414 }
0x4548   :  { %v3417_v48 = vmul.f32 %v8408_v62, %v3415_v41 }
0x454a   :  { %3419 = vrot.lane.b32.xlu1 %v3417_v48, %s9181_s0 }
0x454b   :  { %v2866_v52 = vpop.permute.xlu1 %2865 }
0x454c   :  { %2868 = vst.msk [vmem:[#allocation2] sm:$0x30] %vm1889_vm8, %v2866_v52 }
0x454f   :  { %v3196_v54 = vpop.permute.xlu1 %3195 }
0x4550   :  { %3198 = vst.msk [vmem:[#allocation2 + $0x8] sm:$0xc] %vm1776_vm6, %v3196_v54 }
0x4553   :  { %v3423_v56 = vld [vmem:[#allocation2] sm:$0xff] }
0x4554   :  { %8145 = vmatprep.mubr.msk.f32.mxu1 %vm584_vm5, %v3423_v56 }
0x45bc   :  { %v3420_v58 = vpop.permute.xlu1 %3419 }
0x45bd   :  { %3422 = vst.msk [vmem:[#allocation2 + $0x8] sm:$0xc0] %vm2002_vm7, %v3420_v58 }
0x45c4   :  { %v3424_v59 = vld [vmem:[#allocation2 + $0x8] sm:$0xff] }
0x45c5   :  { %8146 = vmatmul.mubr.msk.f32.vlgmr.msra.gmra.mxu1 %vm584_vm5, %v3424_v59 }
0x45c6   :  { %8160 = vmatpush3.msra.mxu1 %v9877_v44  ;;  %8167 = vmatprep.mubr.msk.f32.mxu1 %vm9177_vm1, %v9176_v7 }
0x45c7   :  { %8161 = vmatprep.subr.mxu1 %v9176_v7 }
0x45c8   :  { %8162 = vmatpush3.msra.mxu1 %v9880_v45 }
0x45c9   :  { %8163 = vmatprep.subr.mxu1 %v9176_v7 }
0x45ca   :  { %8164 = vmatpush3.msra.mxu1 %v9883_v46 }
0x45cb   :  { %8165 = vmatprep.subr.mxu1 %v9176_v7 }
0x45cc   :  { %8166 = vmatpush3.msra.mxu1 %v9889_v47 }
0x45cd   :  { %8181 = vmatprep.subr.mxu1 %v9176_v7 }
0x4685   :  { %v8147_v61 = vpop.f32.mrf.mxu1 }
0x4686   :  { %v9921_v18 = vadd.f32 %v8147_v61, %v7297_v60 }
0x4687   :  { %v3510_v21 = vpop.f32.mrf.mxu1 }
0x4688   :  { %v9923_v28 = vadd.f32 %v7297_v60, %v3510_v21 }
0x468a   :  { %v3594_v63 = vadd.f32 %v3590_v13, %v9923_v28 }
0x468c   :  { %v7300_v0 = vmul.f32 -1.442695, %v3594_v63 }
0x468e   :  { %8411 = vpow2.f32 %v7300_v0 }
0x469b   :  { %v8412_v1 = vpop.eup %8411 }
0x469c   :  { %v3598_v2 = vadd.f32 1.0, %v8412_v1 }
0x469e   :  { %8413 = vrcp.f32 %v3598_v2 }
0x46ab   :  { %v8414_v3 = vpop.eup %8413 }
0x46ac   :  { %v3601_v4 = vmul.f32 2.0, %v8414_v3  ;;  %v3603_v55 = vmul.f32 0.0, %v8414_v3 }
0x46ae   :  { %v7301_v6 = vadd.f32 -1.0, %v3601_v4 }
0x46b0   :  { %3605 = vrot.lane.b32.xlu0 %v7301_v6, %s9180_s4 }
0x4722   :  { %v3606_v8 = vpop.permute.xlu0 %3605 }
0x4723   :  { %v3608_v9 = vmul.f32 %v8414_v3, %v3606_v8 }
0x4725   :  { %3610 = vrot.lane.b32.xlu1 %v3608_v9, %s9181_s0 }
0x4797   :  { %v3611_v14 = vpop.permute.xlu1 %3610 }
0x4798   :  { %v3613_v16 = vadd.f32 %v3611_v14, %v3603_v55 }
0x479a   :  { %8415 = vtanh.f32 %v3613_v16  ;;  %v3713_v35 = vrot.slane %v3613_v16, 6 }
0x47a7   :  { %v8416_v19 = vpop.eup %8415 }
0x47a8   :  { %3616 = vrot.lane.b32.xlu0 %v8416_v19, %s9180_s4 }
0x481a   :  { %v3617_v20 = vpop.permute.xlu0 %3616 }
0x481b   :  { %v3619_v43 = vmul.f32 %v8414_v3, %v3617_v20 }
0x481d   :  { %3621 = vrot.lane.b32.xlu1 %v3619_v43, %s9181_s0 }
0x488f   :  { %v3622_v10 = vpop.permute.xlu1 %3621 }
0x4890   :  { %3625 = vst.msk [vmem:[#allocation2] sm:$0x1] %vm3624_vm9, %v3622_v10  ;;  %8168 = vmatmul.mubr.msk.f32.vlgmr.msra.gmra.mxu1 %vm584_vm5, %v3622_v10 }
0x4891   :  { %3627 = vst.msk [vmem:[#allocation2 + $0x7] sm:$0x2] %vm3626_vm10, %v3622_v10  ;;  %8182 = vmatpush3.msra.mxu1 %v9877_v44  ;;  %8189 = vmatprep.mubr.msk.f32.mxu1 %vm9177_vm1, %v9176_v7 }
0x4892   :  { %8183 = vmatprep.subr.mxu1 %v9176_v7 }
0x4893   :  { %8184 = vmatpush3.msra.mxu1 %v9880_v45 }
0x4894   :  { %8185 = vmatprep.subr.mxu1 %v9176_v7 }
0x4895   :  { %8186 = vmatpush3.msra.mxu1 %v9883_v46 }
0x4896   :  { %8187 = vmatprep.subr.mxu1 %v9176_v7 }
0x4897   :  { %8188 = vmatpush3.msra.mxu1 %v9889_v47 }
0x4898   :  { %8203 = vmatprep.subr.mxu1 %v9176_v7 }
0x4950   :  { %v3696_v30 = vpop.f32.mrf.mxu1 }
0x4951   :  { %v3701_v12 = vrot.slane %v3696_v30, 6 }
0x4952   :  { %v8169_v22 = vpop.f32.mrf.mxu1 }
0x4953   :  { %v3703_v38 = vadd.f32 %v3701_v12, %v9923_v28 }
0x4955   :  { %v7303_v24 = vmul.f32 -1.442695, %v3703_v38 }
0x4957   :  { %8417 = vpow2.f32 %v7303_v24 }
0x4964   :  { %v8418_v49 = vpop.eup %8417 }
0x4965   :  { %v3707_v29 = vadd.f32 1.0, %v8418_v49 }
0x4967   :  { %8419 = vrcp.f32 %v3707_v29 }
0x4974   :  { %v8420_v23 = vpop.eup %8419 }
0x4975   :  { %v3710_v17 = vmul.f32 2.0, %v8420_v23  ;;  %v3715_v51 = vmul.f32 %v8420_v23, %v3713_v35 }
0x4977   :  { %v7304_v62 = vadd.f32 -1.0, %v3710_v17 }
0x4979   :  { %3717 = vrot.lane.b32.xlu0 %v7304_v62, %s9180_s4 }
0x49eb   :  { %v3718_v34 = vpop.permute.xlu0 %3717 }
0x49ec   :  { %v3720_v31 = vmul.f32 %v8420_v23, %v3718_v34 }
0x49ee   :  { %3722 = vrot.lane.b32.xlu1 %v3720_v31, %s9181_s0 }
0x4a60   :  { %v3723_v53 = vpop.permute.xlu1 %3722 }
0x4a61   :  { %v3725_v37 = vadd.f32 %v3723_v53, %v3715_v51 }
0x4a63   :  { %8421 = vtanh.f32 %v3725_v37  ;;  %v3828_v13 = vrot.slane %v3725_v37, 6 }
0x4a70   :  { %v8422_v33 = vpop.eup %8421 }
0x4a71   :  { %3728 = vrot.lane.b32.xlu0 %v8422_v33, %s9180_s4 }
0x4ae3   :  { %v3729_v50 = vpop.permute.xlu0 %3728 }
0x4ae4   :  { %v9947_v39 = vmul.f32 %v8420_v23, %v3729_v50 }
0x4ae6   :  { %v3740_v5 = vrot.slane %v9947_v39, 2 }
0x4ae8   :  { %3741 = vrot.lane.b32.xlu1 %v3740_v5, %s9181_s0 }
0x4b5a   :  { %v3742_v40 = vpop.permute.xlu1 %3741 }
0x4b5b   :  { %8179 = vmatmul.mubr.msk.f32.vlgmr.msra.gmra.mxu0 %vm584_vm5, %v3742_v40 }
0x4b5c   :  { %8193 = vmatpush3.msra.mxu0 %v9877_v44  ;;  %8200 = vmatprep.mubr.msk.f32.mxu0 %vm9177_vm1, %v9176_v7 }
0x4b5d   :  { %8194 = vmatprep.subr.mxu0 %v9176_v7 }
0x4b5e   :  { %8195 = vmatpush3.msra.mxu0 %v9880_v45 }
0x4b5f   :  { %8196 = vmatprep.subr.mxu0 %v9176_v7 }
0x4b60   :  { %8197 = vmatpush3.msra.mxu0 %v9883_v46 }
0x4b61   :  { %8198 = vmatprep.subr.mxu0 %v9176_v7 }
0x4b62   :  { %8199 = vmatpush3.msra.mxu0 %v9889_v47 }
0x4b63   :  { %8214 = vmatprep.subr.mxu0 %v9176_v7 }
0x4c1b   :  { %v3811_v32 = vpop.f32.mrf.mxu0 }
0x4c1c   :  { %v3816_v15 = vrot.slane %v3811_v32, 4 }
0x4c1d   :  { %v8180_v42 = vpop.f32.mrf.mxu0 }
0x4c1e   :  { %v3818_v25 = vadd.f32 %v3816_v15, %v9923_v28 }
0x4c20   :  { %v7306_v57 = vmul.f32 -1.442695, %v3818_v25 }
0x4c22   :  { %8423 = vpow2.f32 %v7306_v57 }
0x4c2f   :  { %v8424_v41 = vpop.eup %8423 }
0x4c30   :  { %v3822_v48 = vadd.f32 1.0, %v8424_v41 }
0x4c32   :  { %8425 = vrcp.f32 %v3822_v48 }
0x4c3f   :  { %v8426_v52 = vpop.eup %8425 }
0x4c40   :  { %v3825_v54 = vmul.f32 2.0, %v8426_v52  ;;  %v3830_v26 = vmul.f32 %v8426_v52, %v3828_v13 }
0x4c42   :  { %v7307_v56 = vadd.f32 -1.0, %v3825_v54 }
0x4c44   :  { %3832 = vrot.lane.b32.xlu0 %v7307_v56, %s9180_s4 }
0x4cb6   :  { %v3833_v58 = vpop.permute.xlu0 %3832 }
0x4cb7   :  { %v3835_v59 = vmul.f32 %v8426_v52, %v3833_v58 }
0x4cb9   :  { %3837 = vrot.lane.b32.xlu1 %v3835_v59, %s9181_s0 }
0x4d2b   :  { %v3838_v60 = vpop.permute.xlu1 %3837 }
0x4d2c   :  { %v3840_v61 = vadd.f32 %v3838_v60, %v3830_v26 }
0x4d2e   :  { %8427 = vtanh.f32 %v3840_v61  ;;  %v3943_v30 = vrot.slane %v3840_v61, 6 }
0x4d3b   :  { %v8428_v21 = vpop.eup %8427 }
0x4d3c   :  { %3843 = vrot.lane.b32.xlu0 %v8428_v21, %s9180_s4 }
0x4dae   :  { %v3844_v63 = vpop.permute.xlu0 %3843 }
0x4daf   :  { %v9966_v0 = vmul.f32 %v8426_v52, %v3844_v63 }
0x4db1   :  { %v3855_v1 = vrot.slane %v9966_v0, 4 }
0x4db3   :  { %3856 = vrot.lane.b32.xlu1 %v3855_v1, %s9181_s0 }
0x4e25   :  { %v3857_v2 = vpop.permute.xlu1 %3856 }
0x4e26   :  { %8190 = vmatmul.mubr.msk.f32.vlgmr.msra.gmra.mxu1 %vm584_vm5, %v3857_v2 }
0x4e27   :  { %8204 = vmatpush3.msra.mxu1 %v9877_v44  ;;  %8211 = vmatprep.mubr.msk.f32.mxu1 %vm9177_vm1, %v9176_v7 }
0x4e28   :  { %8205 = vmatprep.subr.mxu1 %v9176_v7 }
0x4e29   :  { %8206 = vmatpush3.msra.mxu1 %v9880_v45 }
0x4e2a   :  { %8207 = vmatprep.subr.mxu1 %v9176_v7 }
0x4e2b   :  { %8208 = vmatpush3.msra.mxu1 %v9883_v46 }
0x4e2c   :  { %8209 = vmatprep.subr.mxu1 %v9176_v7 }
0x4e2d   :  { %8210 = vmatpush3.msra.mxu1 %v9889_v47 }
0x4e2e   :  { %8225 = vmatprep.subr.mxu1 %v9176_v7 }
0x4ee6   :  { %v3926_v3 = vpop.f32.mrf.mxu1 }
0x4ee7   :  { %v3931_v4 = vrot.slane %v3926_v3, 2 }
0x4ee8   :  { %v8191_v6 = vpop.f32.mrf.mxu1 }
0x4ee9   :  { %v3933_v8 = vadd.f32 %v3931_v4, %v9923_v28 }
0x4eeb   :  { %v7309_v9 = vmul.f32 -1.442695, %v3933_v8 }
0x4eed   :  { %8429 = vpow2.f32 %v7309_v9 }
0x4efa   :  { %v8430_v55 = vpop.eup %8429 }
0x4efb   :  { %v3937_v14 = vadd.f32 1.0, %v8430_v55 }
0x4efd   :  { %8431 = vrcp.f32 %v3937_v14 }
0x4f0a   :  { %v8432_v16 = vpop.eup %8431 }
0x4f0b   :  { %v3940_v19 = vmul.f32 2.0, %v8432_v16  ;;  %v3945_v12 = vmul.f32 %v8432_v16, %v3943_v30 }
0x4f0d   :  { %v7310_v20 = vadd.f32 -1.0, %v3940_v19 }
0x4f0f   :  { %3947 = vrot.lane.b32.xlu0 %v7310_v20, %s9180_s4 }
0x4f81   :  { %v3948_v43 = vpop.permute.xlu0 %3947 }
0x4f82   :  { %v3950_v10 = vmul.f32 %v8432_v16, %v3948_v43 }
0x4f84   :  { %3952 = vrot.lane.b32.xlu1 %v3950_v10, %s9181_s0 }
0x4ff6   :  { %v3953_v22 = vpop.permute.xlu1 %3952 }
0x4ff7   :  { %v3955_v38 = vadd.f32 %v3953_v22, %v3945_v12 }
0x4ff9   :  { %8433 = vtanh.f32 %v3955_v38  ;;  %v4055_v40 = vrot.slane %v3955_v38, 6 }
0x5006   :  { %v8434_v28 = vpop.eup %8433 }
0x5007   :  { %3958 = vrot.lane.b32.xlu0 %v8434_v28, %s9180_s4 }
0x5079   :  { %v3959_v24 = vpop.permute.xlu0 %3958 }
0x507a   :  { %v9985_v49 = vmul.f32 %v8432_v16, %v3959_v24 }
0x507c   :  { %v3970_v29 = vrot.slane %v9985_v49, 6 }
0x507e   :  { %3971 = vrot.lane.b32.xlu1 %v3970_v29, %s9181_s0 }
0x50f0   :  { %v3972_v23 = vpop.permute.xlu1 %3971 }
0x50f1   :  { %8201 = vmatmul.mubr.msk.f32.vlgmr.msra.gmra.mxu0 %vm584_vm5, %v3972_v23 }
0x50f2   :  { %8215 = vmatpush3.msra.mxu0 %v9877_v44  ;;  %8222 = vmatprep.mubr.msk.f32.mxu0 %vm9177_vm1, %v9176_v7 }
0x50f3   :  { %8216 = vmatprep.subr.mxu0 %v9176_v7 }
0x50f4   :  { %8217 = vmatpush3.msra.mxu0 %v9880_v45 }
0x50f5   :  { %8218 = vmatprep.subr.mxu0 %v9176_v7 }
0x50f6   :  { %8219 = vmatpush3.msra.mxu0 %v9883_v46 }
0x50f7   :  { %8220 = vmatprep.subr.mxu0 %v9176_v7 }
0x50f8   :  { %8221 = vmatpush3.msra.mxu0 %v9889_v47 }
0x51b1   :  { %v4041_v17 = vpop.f32.mrf.mxu0 }
0x51b2   :  { %v4045_v62 = vadd.f32 %v4041_v17, %v9921_v18 }
0x51b3   :  { %v8202_v34 = vpop.f32.mrf.mxu0 }
0x51b4   :  { %v7312_v31 = vmul.f32 -1.442695, %v4045_v62 }
0x51b6   :  { %8435 = vpow2.f32 %v7312_v31 }
0x51c3   :  { %v8436_v35 = vpop.eup %8435 }
0x51c4   :  { %v4049_v51 = vadd.f32 1.0, %v8436_v35 }
0x51c6   :  { %8437 = vrcp.f32 %v4049_v51 }
0x51d3   :  { %v8438_v53 = vpop.eup %8437 }
0x51d4   :  { %v4052_v37 = vmul.f32 2.0, %v8438_v53  ;;  %v4057_v32 = vmul.f32 %v8438_v53, %v4055_v40 }
0x51d6   :  { %v7313_v33 = vadd.f32 -1.0, %v4052_v37 }
0x51d8   :  { %4059 = vrot.lane.b32.xlu0 %v7313_v33, %s9180_s4 }
0x524a   :  { %v4060_v50 = vpop.permute.xlu0 %4059 }
0x524b   :  { %v4062_v5 = vmul.f32 %v8438_v53, %v4060_v50 }
0x524d   :  { %4064 = vrot.lane.b32.xlu1 %v4062_v5, %s9181_s0 }
0x52bf   :  { %v4065_v15 = vpop.permute.xlu1 %4064 }
0x52c0   :  { %v4067_v42 = vadd.f32 %v4065_v15, %v4057_v32 }
0x52c2   :  { %8439 = vtanh.f32 %v4067_v42 }
0x52cf   :  { %v8440_v25 = vpop.eup %8439 }
0x52d0   :  { %4070 = vrot.lane.b32.xlu0 %v8440_v25, %s9180_s4 }
0x5342   :  { %v4071_v57 = vpop.permute.xlu0 %4070 }
0x5343   :  { %v4073_v41 = vmul.f32 %v8438_v53, %v4071_v57 }
0x5345   :  { %4075 = vrot.lane.b32.xlu1 %v4073_v41, %s9181_s0 }
0x53b7   :  { %v4076_v48 = vpop.permute.xlu1 %4075 }
0x53b8   :  { %4078 = vst.msk [vmem:[#allocation2 + $0x4] sm:$0x1] %vm3624_vm9, %v4076_v48  ;;  %8212 = vmatmul.mubr.msk.f32.vlgmr.msra.gmra.mxu1 %vm584_vm5, %v4076_v48 }
0x53b9   :  { %4079 = vst.msk [vmem:[#allocation2 + $0xb] sm:$0x2] %vm3626_vm10, %v4076_v48  ;;  %8226 = vmatpush3.msra.mxu1 %v9877_v44  ;;  %8233 = vmatprep.mubr.msk.f32.mxu1 %vm9177_vm1, %v9176_v7 }
0x53ba   :  { %8227 = vmatprep.subr.mxu1 %v9176_v7 }
0x53bb   :  { %8228 = vmatpush3.msra.mxu1 %v9880_v45 }
0x53bc   :  { %8229 = vmatprep.subr.mxu1 %v9176_v7 }
0x53bd   :  { %8230 = vmatpush3.msra.mxu1 %v9883_v46 }
0x53be   :  { %8231 = vmatprep.subr.mxu1 %v9176_v7  ;;  %v4165_v7 = vrot.slane %v4067_v42, 6 }
0x53bf   :  { %8232 = vmatpush3.msra.mxu1 %v9889_v47 }
0x5478   :  { %v4148_v52 = vpop.f32.mrf.mxu1 }
0x5479   :  { %v4153_v54 = vrot.slane %v4148_v52, 6 }
0x547a   :  { %v8213_v56 = vpop.f32.mrf.mxu1 }
0x547b   :  { %v4155_v44 = vadd.f32 %v4153_v54, %v9921_v18 }
0x547d   :  { %v7315_v58 = vmul.f32 -1.442695, %v4155_v44 }
0x547f   :  { %8441 = vpow2.f32 %v7315_v58 }
0x548c   :  { %v8442_v59 = vpop.eup %8441 }
0x548d   :  { %v4159_v13 = vadd.f32 1.0, %v8442_v59 }
0x548f   :  { %8443 = vrcp.f32 %v4159_v13 }
0x549c   :  { %v8444_v26 = vpop.eup %8443 }
0x549d   :  { %v4162_v45 = vmul.f32 2.0, %v8444_v26  ;;  %v4167_v47 = vmul.f32 %v8444_v26, %v4165_v7 }
0x549f   :  { %v7316_v60 = vadd.f32 -1.0, %v4162_v45 }
0x54a1   :  { %4169 = vrot.lane.b32.xlu0 %v7316_v60, %s9180_s4 }
0x5513   :  { %v4170_v46 = vpop.permute.xlu0 %4169 }
0x5514   :  { %v4172_v61 = vmul.f32 %v8444_v26, %v4170_v46 }
0x5516   :  { %4174 = vrot.lane.b32.xlu1 %v4172_v61, %s9181_s0 }
0x5588   :  { %v4175_v21 = vpop.permute.xlu1 %4174 }
0x5589   :  { %v4177_v63 = vadd.f32 %v4175_v21, %v4167_v47 }
0x558b   :  { %8445 = vtanh.f32 %v4177_v63  ;;  %v4278_v38 = vrot.slane %v4177_v63, 6 }
0x5598   :  { %v8446_v1 = vpop.eup %8445 }
0x5599   :  { %4180 = vrot.lane.b32.xlu0 %v8446_v1, %s9180_s4 }
0x560b   :  { %v4181_v2 = vpop.permute.xlu0 %4180 }
0x560c   :  { %v10020_v3 = vmul.f32 %v8444_v26, %v4181_v2 }
0x560e   :  { %v4190_v4 = vrot.slane %v10020_v3, 2 }
0x5610   :  { %4191 = vrot.lane.b32.xlu1 %v4190_v4, %s9181_s0 }
0x5682   :  { %v4192_v6 = vpop.permute.xlu1 %4191 }
0x5683   :  { %8223 = vmatmul.mubr.msk.f32.vlgmr.msra.gmra.mxu0 %vm584_vm5, %v4192_v6 }
0x5743   :  { %v4261_v8 = vpop.f32.mrf.mxu0 }
0x5744   :  { %v4266_v9 = vrot.slane %v4261_v8, 4 }
0x5745   :  { %v8224_v55 = vpop.f32.mrf.mxu0 }
0x5746   :  { %v4268_v14 = vadd.f32 %v4266_v9, %v9921_v18 }
0x5748   :  { %v7318_v16 = vmul.f32 -1.442695, %v4268_v14 }
0x574a   :  { %8447 = vpow2.f32 %v7318_v16 }
0x5757   :  { %v8448_v19 = vpop.eup %8447 }
0x5758   :  { %v4272_v20 = vadd.f32 1.0, %v8448_v19 }
0x575a   :  { %8449 = vrcp.f32 %v4272_v20 }
0x5767   :  { %v8450_v43 = vpop.eup %8449 }
0x5768   :  { %v4275_v10 = vmul.f32 2.0, %v8450_v43  ;;  %v4280_v28 = vmul.f32 %v8450_v43, %v4278_v38 }
0x576a   :  { %v7319_v30 = vadd.f32 -1.0, %v4275_v10 }
0x576c   :  { %4282 = vrot.lane.b32.xlu0 %v7319_v30, %s9180_s4 }
0x57de   :  { %v4283_v12 = vpop.permute.xlu0 %4282 }
0x57df   :  { %v4285_v22 = vmul.f32 %v8450_v43, %v4283_v12 }
0x57e1   :  { %4287 = vrot.lane.b32.xlu1 %v4285_v22, %s9181_s0 }
0x5853   :  { %v4288_v24 = vpop.permute.xlu1 %4287 }
0x5854   :  { %v4290_v29 = vadd.f32 %v4288_v24, %v4280_v28 }
0x5856   :  { %8451 = vtanh.f32 %v4290_v29 }
0x5863   :  { %v8452_v23 = vpop.eup %8451 }
0x5864   :  { %4293 = vrot.lane.b32.xlu0 %v8452_v23, %s9180_s4 }
0x58d6   :  { %v4294_v17 = vpop.permute.xlu0 %4293 }
0x58d7   :  { %v4296_v62 = vmul.f32 %v8450_v43, %v4294_v17 }
0x58d9   :  { %v4303_v34 = vrot.slane %v4296_v62, 4 }
0x58db   :  { %4304 = vrot.lane.b32.xlu1 %v4303_v34, %s9181_s0 }
0x594d   :  { %v4305_v31 = vpop.permute.xlu1 %4304 }
0x594e   :  { %8234 = vmatmul.mubr.msk.f32.vlgmr.msra.gmra.mxu1 %vm584_vm5, %v4305_v31 }
0x5a0e   :  { %v4374_v35 = vpop.f32.mrf.mxu1 }
0x5a0f   :  { %v4379_v51 = vrot.slane %v4374_v35, 2 }
0x5a10   :  { %v8235_v53 = vpop.f32.mrf.mxu1 }
0x5a11   :  { %v4381_v37 = vadd.f32 %v4379_v51, %v9921_v18  ;;  %v4391_v18 = vrot.slane %v4290_v29, 6 }
0x5a13   :  { %v7321_v33 = vmul.f32 -1.442695, %v4381_v37 }
0x5a15   :  { %8453 = vpow2.f32 %v7321_v33 }
0x5a22   :  { %v8454_v50 = vpop.eup %8453 }
0x5a23   :  { %v4385_v5 = vadd.f32 1.0, %v8454_v50 }
0x5a25   :  { %8455 = vrcp.f32 %v4385_v5 }
0x5a32   :  { %v8456_v40 = vpop.eup %8455 }
0x5a33   :  { %v4388_v32 = vmul.f32 2.0, %v8456_v40  ;;  %v4393_v57 = vmul.f32 %v8456_v40, %v4391_v18 }
0x5a35   :  { %v7322_v15 = vadd.f32 -1.0, %v4388_v32 }
0x5a37   :  { %4395 = vrot.lane.b32.xlu0 %v7322_v15, %s9180_s4 }
0x5aa9   :  { %v4396_v42 = vpop.permute.xlu0 %4395 }
0x5aaa   :  { %v4398_v25 = vmul.f32 %v8456_v40, %v4396_v42 }
0x5aac   :  { %4400 = vrot.lane.b32.xlu1 %v4398_v25, %s9181_s0 }
0x5ab0   :  { %3733 = vrot.lane.b32.xlu1 %v9947_v39, %s9181_s0 }
0x5ab4   :  { %3963 = vrot.lane.b32.xlu1 %v9985_v49, %s9181_s0 }
0x5ab8   :  { %4298 = vrot.lane.b32.xlu1 %v4296_v62, %s9181_s0 }
0x5b1e   :  { %v4401_v41 = vpop.permute.xlu1 %4400 }
0x5b1f   :  { %v4403_v48 = vadd.f32 %v4401_v41, %v4393_v57 }
0x5b21   :  { %8457 = vtanh.f32 %v4403_v48 }
0x5b22   :  { %v3734_v52 = vpop.permute.xlu1 %3733 }
0x5b23   :  { %3737 = vst.msk [vmem:[#allocation2 - $0x1] sm:$0x4] %vm3736_vm11, %v3734_v52 }
0x5b24   :  { %3739 = vst.msk [vmem:[#allocation2 + $0x6] sm:$0x8] %vm3738_vm12, %v3734_v52 }
0x5b26   :  { %v3964_v39 = vpop.permute.xlu1 %3963 }
0x5b27   :  { %3967 = vst.msk [vmem:[#allocation2 - $0x3] sm:$0x40] %vm3966_vm13, %v3964_v39 }
0x5b28   :  { %3969 = vst.msk [vmem:[#allocation2 + $0x4] sm:$0x80] %vm3968_vm14, %v3964_v39 }
0x5b2a   :  { %v4299_v49 = vpop.permute.xlu1 %4298 }
0x5b2b   :  { %4301 = vst.msk [vmem:[#allocation2 + $0x2] sm:$0x10] %vm3851_vm15, %v4299_v49 }
0x5b2c   :  { %4302 = vst.msk [vmem:[#allocation2 + $0x9] sm:$0x20] %vm3853_vm0, %v4299_v49 }
0x5b2e   :  { %v8458_v54 = vpop.eup %8457 }
0x5b2f   :  { %4406 = vrot.lane.b32.xlu0 %v8458_v54, %s9180_s4 }
0x5b33   :  { %3848 = vrot.lane.b32.xlu0 %v9966_v0, %s9181_s0 }
0x5b37   :  { %4185 = vrot.lane.b32.xlu0 %v10020_v3, %s9181_s0 }
0x5ba1   :  { %v4407_v56 = vpop.permute.xlu0 %4406 }
0x5ba2   :  { %9086 = shalt.err (!%p9083_p6)  }
0x5ba3   :  { %142 = dma.hbm_to_vmem [thread:$0]  %s10217_s8, 2048, %s140_s26, [#allocation6]  ;;  %v4409_v0 = vmul.f32 %v8456_v40, %v4407_v56 }
0x5ba4   :  { %s9095_s6 = scalar_lea.vmem %s152_s27, 32768  ;;  %p9100_p8 = scmp.lt.s32.totalorder %s152_s27, %s152_s27 }
0x5ba5   :  { %p9096_p7 = scmp.ne.s32.totalorder %s152_s27, %s9095_s6  ;;  %p9101_p9 = scmp.lt.s32.totalorder %s9095_s6, %s9095_s6 }
0x5ba7   :  { %p9102_p10 = por %p9101_p9, %p9100_p8 }
0x5ba9   :  { %p9103_p11 = pnand %p9102_p10, %p9096_p7 }
0x5bab   :  { %9106 = shalt.err (!%p9103_p11)  }
0x5bac   :  { %154 = dma.hbm_to_vmem [thread:$0]  %s10218_s9, 32768, %s152_s27, [#allocation6 + $0x1]  ;;  %4411 = vrot.lane.b32.xlu0 %v4409_v0, %s9181_s0  ;;  %v3849_v44 = vpop.permute.xlu0 %3848 }
0x5bad   :  { %s9184_s19 = smov [#allocation5]   ;;  %3852 = vst.msk [vmem:[#allocation2 - $0x2] sm:$0x10] %vm3851_vm15, %v3849_v44 }
0x5bae   :  { %s163_s12 = sshll.u32 %s9184_s19, 4  ;;  %3854 = vst.msk [vmem:[#allocation2 + $0x5] sm:$0x20] %vm3853_vm0, %v3849_v44  ;;  %s164_s12 = int_to_ptr.vmem [resolvable:$true] %s163_s12 }
0x5baf   :  { %s9115_s8 = scalar_lea.vmem %s164_s12, 8192  ;;  %p9120_p13 = scmp.lt.s32.totalorder %s164_s12, %s164_s12 }
0x5bb0   :  { %p9116_p12 = scmp.ne.s32.totalorder %s164_s12, %s9115_s8  ;;  %p9121_p0 = scmp.lt.s32.totalorder %s9115_s8, %s9115_s8 }
0x5bb2   :  { %p9122_p1 = por %p9121_p0, %p9120_p13 }
0x5bb4   :  { %p9123_p2 = pnand %p9122_p1, %p9116_p12 }
0x5bb6   :  { %9126 = shalt.err (!%p9123_p2)  }
0x5bb7   :  { %166 = dma.hbm_to_vmem [thread:$0]  %s10219_s10, 8192, %s164_s12, [#allocation6 + $0x2]  ;;  %v4186_v58 = vpop.permute.xlu0 %4185 }
0x5bb8   :  { %4188 = vst.msk [vmem:[#allocation2 + $0x3] sm:$0x4] %vm3736_vm11, %v4186_v58 }
0x5bb9   :  { %4189 = vst.msk [vmem:[#allocation2 + $0xa] sm:$0x8] %vm3738_vm12, %v4186_v58 }
0x5c1e   :  { %v4412_v59 = vpop.permute.xlu0 %4411 }
0x5c1f   :  { %4414 = vst.msk [vmem:[#allocation2 + $0x1] sm:$0x40] %vm3966_vm13, %v4412_v59 }
0x5c20   :  { %4415 = vst.msk [vmem:[#allocation2 + $0x8] sm:$0x80] %vm3968_vm14, %v4412_v59 }
0x5c26   :  { %v4416_v13 = vld [vmem:[#allocation2] sm:$0xff] }
0x5c27   :  { %v4417_v26 = vld [vmem:[#allocation2 + $0x8] sm:$0xff] }
0x5c28   :  { %9157 = dma.done.wait [#allocation6], 2048 }
0x5c29   :  { %9158 = vsyncadd [#allocation6], 4294965248  ;;  %v9185_v45 = vmov 0   ;;  %v4431_v60 = vld [vmem:[#allocation3 + $0x40] sm:$0xff]  ;;  %v4432_v61 = vld [vmem:[#allocation3 + $0x48] sm:$0xff]  ;;  %v4422_v38 = vpack.c.bf16 %v4417_v26, %v4416_v13  ;;  %v4451_v51 = vsub.s32 2, %v9311_v11 }
0x5c2a   :  { %4596 = vmatprep.mubr.bf16.mxu0 %v9185_v45  ;;  %4639 = vmatprep.mubr.bf16.mxu1 %v9185_v45  ;;  %v4435_v46 = vld [vmem:[#allocation3 + $0x60] sm:$0xff]  ;;  %v4436_v47 = vld [vmem:[#allocation3 + $0x68] sm:$0xff]  ;;  %v4433_v9 = vld [vmem:[#allocation3 + $0x50] sm:$0xff]  ;;  %v4455_v53 = vsub.s32 3, %v9311_v11  ;;  %v4459_v42 = vsub.s32 4, %v9311_v11  ;;  %v4467_v57 = vsub.s32 6, %v9311_v11 }
0x5c2b   :  { %v7332_v7 = vcombine.high %v4431_v60, %v4435_v46  ;;  %v7331_v21 = vcombine.low %v4431_v60, %v4435_v46  ;;  %v4423_v63 = vld [vmem:[#allocation3] sm:$0xff]  ;;  %v7334_v2 = vcombine.high %v4432_v61, %v4436_v47  ;;  %v7333_v3 = vcombine.low %v4432_v61, %v4436_v47  ;;  %v4424_v6 = vld [vmem:[#allocation3 + $0x8] sm:$0xff]  ;;  %v4437_v14 = vld [vmem:[#allocation3 + $0x70] sm:$0xff] }
0x5c2c   :  { %v4427_v1 = vld [vmem:[#allocation3 + $0x20] sm:$0xff]  ;;  %v4428_v8 = vld [vmem:[#allocation3 + $0x28] sm:$0xff]  ;;  %v4434_v16 = vld [vmem:[#allocation3 + $0x58] sm:$0xff]  ;;  %v7336_v10 = vcombine.high %v4433_v9, %v4437_v14  ;;  %v7335_v29 = vcombine.low %v4433_v9, %v4437_v14  ;;  %v4463_v39 = vsub.s32 5, %v9311_v11  ;;  %v4471_v0 = vsub.s32 7, %v9311_v11 }
0x5c2d   :  { %v7324_v4 = vcombine.high %v4423_v63, %v4427_v1  ;;  %4576 = vmatprep.subr.bf16.mxu0 %v7332_v7  ;;  %v7326_v55 = vcombine.high %v4424_v6, %v4428_v8  ;;  %v4438_v19 = vld [vmem:[#allocation3 + $0x78] sm:$0xff]  ;;  %4619 = vmatprep.subr.bf16.mxu1 %v7334_v2  ;;  %v7323_v20 = vcombine.low %v4423_v63, %v4427_v1  ;;  %v4425_v12 = vld [vmem:[#allocation3 + $0x10] sm:$0xff] }
0x5c2e   :  { %4577 = vmatpush1.bf16.msra.mxu0 %v7331_v21  ;;  %4620 = vmatpush1.bf16.msra.mxu1 %v7333_v3  ;;  %v7325_v43 = vcombine.low %v4424_v6, %v4428_v8  ;;  %v7338_v30 = vcombine.high %v4434_v16, %v4438_v19  ;;  %v4429_v22 = vld [vmem:[#allocation3 + $0x30] sm:$0xff]  ;;  %v4426_v28 = vld [vmem:[#allocation3 + $0x18] sm:$0xff]  ;;  %v7337_v23 = vcombine.low %v4434_v16, %v4438_v19 }
0x5c2f   :  { %4578 = vmatprep.subr.bf16.mxu0 %v7324_v4  ;;  %4621 = vmatprep.subr.bf16.mxu1 %v7326_v55  ;;  %v4430_v24 = vld [vmem:[#allocation3 + $0x38] sm:$0xff]  ;;  %v7328_v17 = vcombine.high %v4425_v12, %v4429_v22  ;;  %v7327_v34 = vcombine.low %v4425_v12, %v4429_v22 }
0x5c30   :  { %v7330_v62 = vcombine.high %v4426_v28, %v4430_v24  ;;  %v7329_v31 = vcombine.low %v4426_v28, %v4430_v24  ;;  %v4439_v35 = vld [vmem:[#allocation17] sm:$0xff] }
0x5c31   :  { %v4444_v37 = vrot.slane %v4439_v35, %v9320_v27  ;;  %v4452_v33 = vrot.slane %v4439_v35, %v4451_v51  ;;  %v4448_v50 = vrot.slane %v4439_v35, %v9323_v36  ;;  %v4456_v40 = vrot.slane %v4439_v35, %v4455_v53 }
0x5c32   :  { %4579 = vmatpush1.bf16.msra.mxu0 %v7323_v20  ;;  %4622 = vmatpush1.bf16.msra.mxu1 %v7325_v43  ;;  %v4460_v13 = vrot.slane %v4439_v35, %v4459_v42  ;;  %v4468_v46 = vrot.slane %v4439_v35, %v4467_v57  ;;  %v4464_v21 = vrot.slane %v4439_v35, %v4463_v39 }
0x5c33   :  { %4662 = vmatprep.subr.bf16.mxu0 %v7336_v10  ;;  %4705 = vmatprep.subr.bf16.mxu1 %v7338_v30  ;;  %v4472_v3 = vrot.slane %v4439_v35, %v4471_v0 }
0x5c35   :  { %7339 = vmatmul.mubr.msk.bf16.vlgmr.msra.gmra.mxu0 %vm584_vm5, %v4422_v38  ;;  %7340 = vmatmul.mubr.msk.bf16.vlgmr.msra.gmra.mxu1 %vm584_vm5, %v4422_v38 }
0x5c36   :  { %4663 = vmatpush1.bf16.msra.mxu0 %v7335_v29  ;;  %4706 = vmatpush1.bf16.msra.mxu1 %v7337_v23 }
0x5c37   :  { %4664 = vmatprep.subr.bf16.mxu0 %v7328_v17  ;;  %4707 = vmatprep.subr.bf16.mxu1 %v7330_v62 }
0x5c38   :  { %4682 = vmatprep.mubr.bf16.mxu0 %v9185_v45  ;;  %4725 = vmatprep.mubr.bf16.mxu1 %v9185_v45 }
0x5c3a   :  { %4665 = vmatpush1.bf16.msra.mxu0 %v7327_v34  ;;  %4708 = vmatpush1.bf16.msra.mxu1 %v7329_v31 }
0x5c3d   :  { %7341 = vmatmul.mubr.msk.bf16.vlgmr.msra.gmra.mxu0 %vm584_vm5, %v4422_v38  ;;  %7342 = vmatmul.mubr.msk.bf16.vlgmr.msra.gmra.mxu1 %vm584_vm5, %v4422_v38 }
0x5cf5   :  { %v4598_v5 = vpop.f32.mrf.mxu0  ;;  %v4641_v15 = vpop.f32.mrf.mxu1 }
0x5cf6   :  { %v10078_v32 = vadd.f32 %v4598_v5, %v4444_v37  ;;  %v10081_v25 = vadd.f32 %v4641_v15, %v4452_v33 }
0x5cf7   :  { %v4600_v18 = vpop.f32.mrf.mxu0  ;;  %v4643_v52 = vpop.f32.mrf.mxu1 }
0x5cf8   :  { %v4736_v41 = vmax.f32 %v10078_v32, 0.0  ;;  %v4601_v48 = vadd.f32 %v4600_v18, %v4448_v50  ;;  %v4738_v49 = vmax.f32 %v10081_v25, 0.0  ;;  %v4644_v54 = vadd.f32 %v4643_v52, %v4456_v40 }
0x5cf9   :  { %v4602_v56 = vpop.f32.mrf.mxu0  ;;  %v4645_v59 = vpop.f32.mrf.mxu1 }
0x5cfa   :  { %v4737_v44 = vmax.f32 %v4601_v48, 0.0  ;;  %v10088_v58 = vadd.f32 %v4602_v56, %v4444_v37  ;;  %v4739_v26 = vmax.f32 %v4644_v54, 0.0  ;;  %v10090_v45 = vadd.f32 %v4645_v59, %v4452_v33 }
0x5cfb   :  { %v4604_v60 = vpop.f32.mrf.mxu0  ;;  %v4647_v47 = vpop.f32.mrf.mxu1 }
0x5cfc   :  { %v4744_v61 = vmax.f32 %v10088_v58, 0.0  ;;  %v4605_v7 = vadd.f32 %v4604_v60, %v4448_v50  ;;  %v4746_v63 = vmax.f32 %v10090_v45, 0.0  ;;  %v4648_v1 = vadd.f32 %v4647_v47, %v4456_v40 }
0x5cfd   :  { %v4684_v2 = vpop.f32.mrf.mxu0  ;;  %v4727_v8 = vpop.f32.mrf.mxu1 }
0x5cfe   :  { %v4745_v4 = vmax.f32 %v4605_v7, 0.0  ;;  %v10094_v6 = vadd.f32 %v4684_v2, %v4460_v13  ;;  %v4747_v9 = vmax.f32 %v4648_v1, 0.0  ;;  %v10096_v55 = vadd.f32 %v4727_v8, %v4468_v46 }
0x5cff   :  { %v4686_v14 = vpop.f32.mrf.mxu0  ;;  %v4729_v20 = vpop.f32.mrf.mxu1 }
0x5d00   :  { %v4740_v16 = vmax.f32 %v10094_v6, 0.0  ;;  %v10099_v19 = vadd.f32 %v4686_v14, %v4464_v21  ;;  %v4742_v43 = vmax.f32 %v10096_v55, 0.0  ;;  %v10102_v10 = vadd.f32 %v4729_v20, %v4472_v3 }
0x5d01   :  { %v4688_v30 = vpop.f32.mrf.mxu0  ;;  %v4731_v38 = vpop.f32.mrf.mxu1 }
0x5d02   :  { %v4741_v12 = vmax.f32 %v10099_v19, 0.0  ;;  %v10105_v22 = vadd.f32 %v4688_v30, %v4460_v13  ;;  %v4743_v28 = vmax.f32 %v10102_v10, 0.0  ;;  %v10108_v24 = vadd.f32 %v4731_v38, %v4468_v46 }
0x5d03   :  { %v4690_v29 = vpop.f32.mrf.mxu0  ;;  %v4733_v62 = vpop.f32.mrf.mxu1 }
0x5d04   :  { %v4748_v23 = vmax.f32 %v10105_v22, 0.0  ;;  %v10111_v17 = vadd.f32 %v4690_v29, %v4464_v21  ;;  %v4750_v34 = vmax.f32 %v10108_v24, 0.0  ;;  %v10114_v31 = vadd.f32 %v4733_v62, %v4472_v3 }
0x5d06   :  { %v4749_v35 = vmax.f32 %v10111_v17, 0.0  ;;  %v4751_v37 = vmax.f32 %v10114_v31, 0.0 }
0x5d07   :  { %9159 = dma.done.wait [#allocation6 + $0x1], 32768 }
0x5d08   :  { %9160 = vsyncadd [#allocation6 + $0x1], 4294934528  ;;  %v10118_v33 = vpack.c.bf16 %v4745_v4, %v4737_v44  ;;  %v10120_v50 = vpack.c.bf16 %v4747_v9, %v4739_v26  ;;  %v8459_v5 = vld [vmem:[#allocation4 + $0xe4] ss:$16 sps:$4 sm:$0xff]   ;;  %v8463_v15 = vld [vmem:[#allocation4 + $0xe0] ss:$16 sps:$4 sm:$0xff]   ;;  %v10140_v32 = vpack.c.bf16 %v4749_v35, %v4741_v12  ;;  %v10146_v25 = vpack.c.bf16 %v4751_v37, %v4743_v28 }
0x5d09   :  { %v8461_v40 = vld [vmem:[#allocation4 + $0x2e4] ss:$16 sps:$4 sm:$0xff]   ;;  %6322 = vmatprep.subr.bf16.mxu0 %v8459_v5  ;;  %v8464_v42 = vld [vmem:[#allocation4 + $0x2e0] ss:$16 sps:$4 sm:$0xff]   ;;  %v8657_v6 = vld [vmem:[#allocation4 + $0xc8] ss:$16 sps:$4 sm:$0xff]  }
0x5d0a   :  { %6354 = vmatprep.mubr.bf16.mxu0 %v10118_v33  ;;  %6397 = vmatprep.mubr.bf16.mxu1 %v10120_v50  ;;  %v8465_v18 = vld [vmem:[#allocation4 + $0xc4] ss:$16 sps:$4 sm:$0xff]   ;;  %v8469_v48 = vld [vmem:[#allocation4 + $0xc0] ss:$16 sps:$4 sm:$0xff]   ;;  %v8665_v55 = vld [vmem:[#allocation4 + $0xac] ss:$16 sps:$4 sm:$0xff]  }
0x5d0b   :  { %6365 = vmatprep.subr.bf16.mxu1 %v8461_v40  ;;  %6323 = vmatpush1.bf16.msra.mxu0 %v8463_v15  ;;  %v8467_v57 = vld [vmem:[#allocation4 + $0x2c4] ss:$16 sps:$4 sm:$0xff]   ;;  %v8470_v52 = vld [vmem:[#allocation4 + $0x2c0] ss:$16 sps:$4 sm:$0xff]   ;;  %v8663_v22 = vld [vmem:[#allocation4 + $0xa8] ss:$16 sps:$4 sm:$0xff]  }
0x5d0c   :  { %6366 = vmatpush1.bf16.msra.mxu1 %v8464_v42  ;;  %6324 = vmatprep.subr.bf16.mxu0 %v8465_v18  ;;  %v8471_v39 = vld [vmem:[#allocation4 + $0xa4] ss:$16 sps:$4 sm:$0xff]   ;;  %v8475_v56 = vld [vmem:[#allocation4 + $0xa0] ss:$16 sps:$4 sm:$0xff]   ;;  %v8666_v24 = vld [vmem:[#allocation4 + $0x2a8] ss:$16 sps:$4 sm:$0xff]  }
0x5d0d   :  { %6367 = vmatprep.subr.bf16.mxu1 %v8467_v57  ;;  %v8473_v54 = vld [vmem:[#allocation4 + $0x2a4] ss:$16 sps:$4 sm:$0xff]   ;;  %v8476_v0 = vld [vmem:[#allocation4 + $0x2a0] ss:$16 sps:$4 sm:$0xff]  }
0x5d0e   :  { %v8477_v44 = vld [vmem:[#allocation4 + $0x84] ss:$16 sps:$4 sm:$0xff]   ;;  %v8481_v13 = vld [vmem:[#allocation4 + $0x80] ss:$16 sps:$4 sm:$0xff]  }
0x5d0f   :  { %6325 = vmatpush1.bf16.msra.mxu0 %v8469_v48  ;;  %v8479_v59 = vld [vmem:[#allocation4 + $0x284] ss:$16 sps:$4 sm:$0xff]   ;;  %v8482_v26 = vld [vmem:[#allocation4 + $0x280] ss:$16 sps:$4 sm:$0xff]  }
0x5d10   :  { %6368 = vmatpush1.bf16.msra.mxu1 %v8470_v52  ;;  %6326 = vmatprep.subr.bf16.mxu0 %v8471_v39  ;;  %v8483_v60 = vld [vmem:[#allocation4 + $0x64] ss:$16 sps:$4 sm:$0xff]   ;;  %v8487_v7 = vld [vmem:[#allocation4 + $0x60] ss:$16 sps:$4 sm:$0xff]  }
0x5d11   :  { %6369 = vmatprep.subr.bf16.mxu1 %v8473_v54  ;;  %v8485_v46 = vld [vmem:[#allocation4 + $0x264] ss:$16 sps:$4 sm:$0xff]   ;;  %v8488_v47 = vld [vmem:[#allocation4 + $0x260] ss:$16 sps:$4 sm:$0xff]  }
0x5d12   :  { %v8489_v21 = vld [vmem:[#allocation4 + $0x44] ss:$16 sps:$4 sm:$0xff]   ;;  %v8493_v2 = vld [vmem:[#allocation4 + $0x40] ss:$16 sps:$4 sm:$0xff]  }
0x5d13   :  { %6327 = vmatpush1.bf16.msra.mxu0 %v8475_v56  ;;  %v8491_v1 = vld [vmem:[#allocation4 + $0x244] ss:$16 sps:$4 sm:$0xff]   ;;  %v8494_v3 = vld [vmem:[#allocation4 + $0x240] ss:$16 sps:$4 sm:$0xff]  }
0x5d14   :  { %6370 = vmatpush1.bf16.msra.mxu1 %v8476_v0  ;;  %6328 = vmatprep.subr.bf16.mxu0 %v8477_v44  ;;  %v8495_v4 = vld [vmem:[#allocation4 + $0x24] ss:$16 sps:$4 sm:$0xff]   ;;  %v8499_v9 = vld [vmem:[#allocation4 + $0x20] ss:$16 sps:$4 sm:$0xff]  }
0x5d15   :  { %6371 = vmatprep.subr.bf16.mxu1 %v8479_v59  ;;  %v8497_v8 = vld [vmem:[#allocation4 + $0x224] ss:$16 sps:$4 sm:$0xff]   ;;  %v8500_v14 = vld [vmem:[#allocation4 + $0x220] ss:$16 sps:$4 sm:$0xff]  }
0x5d16   :  { %v8501_v20 = vld [vmem:[#allocation4 + $0x4] ss:$16 sps:$4 sm:$0xff]   ;;  %v8505_v38 = vld [vmem:[#allocation4] ss:$16 sps:$4 sm:$0xff]  }
0x5d17   :  { %6329 = vmatpush1.bf16.msra.mxu0 %v8481_v13  ;;  %v8503_v30 = vld [vmem:[#allocation4 + $0x204] ss:$16 sps:$4 sm:$0xff]   ;;  %v8506_v29 = vld [vmem:[#allocation4 + $0x200] ss:$16 sps:$4 sm:$0xff]  }
0x5d18   :  { %6372 = vmatpush1.bf16.msra.mxu1 %v8482_v26  ;;  %6330 = vmatprep.subr.bf16.mxu0 %v8483_v60  ;;  %v8507_v62 = vld [vmem:[#allocation4 + $0x1e4] ss:$16 sps:$4 sm:$0xff]   ;;  %v8511_v40 = vld [vmem:[#allocation4 + $0x1e0] ss:$16 sps:$4 sm:$0xff]  }
0x5d19   :  { %6373 = vmatprep.subr.bf16.mxu1 %v8485_v46  ;;  %v8509_v5 = vld [vmem:[#allocation4 + $0x3e4] ss:$16 sps:$4 sm:$0xff]   ;;  %v8512_v15 = vld [vmem:[#allocation4 + $0x3e0] ss:$16 sps:$4 sm:$0xff]  }
0x5d1a   :  { %v8513_v42 = vld [vmem:[#allocation4 + $0x1c4] ss:$16 sps:$4 sm:$0xff]   ;;  %v8517_v57 = vld [vmem:[#allocation4 + $0x1c0] ss:$16 sps:$4 sm:$0xff]  }
0x5d1b   :  { %6331 = vmatpush1.bf16.msra.mxu0 %v8487_v7  ;;  %v8515_v18 = vld [vmem:[#allocation4 + $0x3c4] ss:$16 sps:$4 sm:$0xff]   ;;  %v8518_v48 = vld [vmem:[#allocation4 + $0x3c0] ss:$16 sps:$4 sm:$0xff]  }
0x5d1c   :  { %6374 = vmatpush1.bf16.msra.mxu1 %v8488_v47  ;;  %6332 = vmatprep.subr.bf16.mxu0 %v8489_v21  ;;  %v8519_v52 = vld [vmem:[#allocation4 + $0x1a4] ss:$16 sps:$4 sm:$0xff]   ;;  %v8523_v54 = vld [vmem:[#allocation4 + $0x1a0] ss:$16 sps:$4 sm:$0xff]  }
0x5d1d   :  { %6375 = vmatprep.subr.bf16.mxu1 %v8491_v1  ;;  %v8521_v39 = vld [vmem:[#allocation4 + $0x3a4] ss:$16 sps:$4 sm:$0xff]   ;;  %v8524_v56 = vld [vmem:[#allocation4 + $0x3a0] ss:$16 sps:$4 sm:$0xff]  }
0x5d1e   :  { %v8525_v0 = vld [vmem:[#allocation4 + $0x184] ss:$16 sps:$4 sm:$0xff]   ;;  %v8529_v59 = vld [vmem:[#allocation4 + $0x180] ss:$16 sps:$4 sm:$0xff]  }
0x5d1f   :  { %6333 = vmatpush1.bf16.msra.mxu0 %v8493_v2  ;;  %v8527_v44 = vld [vmem:[#allocation4 + $0x384] ss:$16 sps:$4 sm:$0xff]   ;;  %v8530_v13 = vld [vmem:[#allocation4 + $0x380] ss:$16 sps:$4 sm:$0xff]  }
0x5d20   :  { %6376 = vmatpush1.bf16.msra.mxu1 %v8494_v3  ;;  %6334 = vmatprep.subr.bf16.mxu0 %v8495_v4  ;;  %v8531_v26 = vld [vmem:[#allocation4 + $0x164] ss:$16 sps:$4 sm:$0xff]   ;;  %v8535_v46 = vld [vmem:[#allocation4 + $0x160] ss:$16 sps:$4 sm:$0xff]  }
0x5d21   :  { %6377 = vmatprep.subr.bf16.mxu1 %v8497_v8  ;;  %v8533_v60 = vld [vmem:[#allocation4 + $0x364] ss:$16 sps:$4 sm:$0xff]   ;;  %v8536_v7 = vld [vmem:[#allocation4 + $0x360] ss:$16 sps:$4 sm:$0xff]  }
0x5d22   :  { %v8537_v47 = vld [vmem:[#allocation4 + $0x144] ss:$16 sps:$4 sm:$0xff]   ;;  %v8541_v1 = vld [vmem:[#allocation4 + $0x140] ss:$16 sps:$4 sm:$0xff]  }
0x5d23   :  { %6335 = vmatpush1.bf16.msra.mxu0 %v8499_v9  ;;  %v8539_v21 = vld [vmem:[#allocation4 + $0x344] ss:$16 sps:$4 sm:$0xff]   ;;  %v8542_v2 = vld [vmem:[#allocation4 + $0x340] ss:$16 sps:$4 sm:$0xff]  }
0x5d24   :  { %6378 = vmatpush1.bf16.msra.mxu1 %v8500_v14  ;;  %6336 = vmatprep.subr.bf16.mxu0 %v8501_v20  ;;  %v8543_v3 = vld [vmem:[#allocation4 + $0x124] ss:$16 sps:$4 sm:$0xff]   ;;  %v8547_v8 = vld [vmem:[#allocation4 + $0x120] ss:$16 sps:$4 sm:$0xff]  }
0x5d25   :  { %6379 = vmatprep.subr.bf16.mxu1 %v8503_v30  ;;  %v8545_v4 = vld [vmem:[#allocation4 + $0x324] ss:$16 sps:$4 sm:$0xff]   ;;  %v8548_v9 = vld [vmem:[#allocation4 + $0x320] ss:$16 sps:$4 sm:$0xff]  }
0x5d26   :  { %v8549_v14 = vld [vmem:[#allocation4 + $0x104] ss:$16 sps:$4 sm:$0xff]   ;;  %v8553_v30 = vld [vmem:[#allocation4 + $0x100] ss:$16 sps:$4 sm:$0xff]  }
0x5d27   :  { %6337 = vmatpush1.bf16.msra.mxu0 %v8505_v38  ;;  %v8551_v20 = vld [vmem:[#allocation4 + $0x304] ss:$16 sps:$4 sm:$0xff]   ;;  %v8554_v38 = vld [vmem:[#allocation4 + $0x300] ss:$16 sps:$4 sm:$0xff]  }
0x5d28   :  { %6380 = vmatpush1.bf16.msra.mxu1 %v8506_v29  ;;  %6338 = vmatprep.subr.bf16.mxu0 %v8507_v62  ;;  %v8557_v29 = vld [vmem:[#allocation4 + $0x4e4] ss:$16 sps:$4 sm:$0xff]   ;;  %v8573_v12 = vld [vmem:[#allocation4 + $0x480] ss:$16 sps:$4 sm:$0xff]  }
0x5d29   :  { %6381 = vmatprep.subr.bf16.mxu1 %v8509_v5  ;;  %v8560_v62 = vld [vmem:[#allocation4 + $0x6e4] ss:$16 sps:$4 sm:$0xff]   ;;  %v10128_v5 = vpack.c.bf16 %v4744_v61, %v4736_v41  ;;  %v8561_v41 = vld [vmem:[#allocation4 + $0x4c0] ss:$16 sps:$4 sm:$0xff]  }
0x5d2a   :  { %v8569_v58 = vld [vmem:[#allocation4 + $0x4a4] ss:$16 sps:$4 sm:$0xff]   ;;  %v8567_v61 = vld [vmem:[#allocation4 + $0x4a0] ss:$16 sps:$4 sm:$0xff]  }
0x5d2b   :  { %6339 = vmatpush2.bf16.msra.mxu0 %v8511_v40  ;;  %v10134_v40 = vpack.c.bf16 %v4746_v63, %v4738_v49  ;;  %v8564_v49 = vld [vmem:[#allocation4 + $0x6c0] ss:$16 sps:$4 sm:$0xff]   ;;  %v8572_v45 = vld [vmem:[#allocation4 + $0x6a4] ss:$16 sps:$4 sm:$0xff]  }
0x5d2c   :  { %6382 = vmatpush2.bf16.msra.mxu1 %v8512_v15  ;;  %6340 = vmatprep.subr.bf16.mxu0 %v8513_v42  ;;  %v8555_v15 = vld [vmem:[#allocation4 + $0x4e0] ss:$16 sps:$4 sm:$0xff]   ;;  %v8575_v19 = vld [vmem:[#allocation4 + $0x484] ss:$16 sps:$4 sm:$0xff]  }
0x5d2d   :  { %6383 = vmatprep.subr.bf16.mxu1 %v8515_v18  ;;  %v8558_v42 = vld [vmem:[#allocation4 + $0x6e0] ss:$16 sps:$4 sm:$0xff]   ;;  %v8563_v18 = vld [vmem:[#allocation4 + $0x4c4] ss:$16 sps:$4 sm:$0xff]  }
0x5d2e   :  { %v8570_v63 = vld [vmem:[#allocation4 + $0x6a0] ss:$16 sps:$4 sm:$0xff]   ;;  %v8578_v10 = vld [vmem:[#allocation4 + $0x684] ss:$16 sps:$4 sm:$0xff]  }
0x5d2f   :  { %6341 = vmatpush2.bf16.msra.mxu0 %v8517_v57  ;;  %v8566_v57 = vld [vmem:[#allocation4 + $0x6c4] ss:$16 sps:$4 sm:$0xff]   ;;  %v8576_v28 = vld [vmem:[#allocation4 + $0x680] ss:$16 sps:$4 sm:$0xff]  }
0x5d30   :  { %6384 = vmatpush2.bf16.msra.mxu1 %v8518_v48  ;;  %6342 = vmatprep.subr.bf16.mxu0 %v8519_v52  ;;  %v8581_v17 = vld [vmem:[#allocation4 + $0x464] ss:$16 sps:$4 sm:$0xff]   ;;  %v8579_v35 = vld [vmem:[#allocation4 + $0x460] ss:$16 sps:$4 sm:$0xff]  }
0x5d31   :  { %6385 = vmatprep.subr.bf16.mxu1 %v8521_v39  ;;  %v8584_v31 = vld [vmem:[#allocation4 + $0x664] ss:$16 sps:$4 sm:$0xff]   ;;  %v8582_v37 = vld [vmem:[#allocation4 + $0x660] ss:$16 sps:$4 sm:$0xff]  }
0x5d32   :  { %v8587_v48 = vld [vmem:[#allocation4 + $0x444] ss:$16 sps:$4 sm:$0xff]   ;;  %v8585_v39 = vld [vmem:[#allocation4 + $0x440] ss:$16 sps:$4 sm:$0xff]  }
0x5d33   :  { %6343 = vmatpush2.bf16.msra.mxu0 %v8523_v54  ;;  %v8590_v52 = vld [vmem:[#allocation4 + $0x644] ss:$16 sps:$4 sm:$0xff]   ;;  %v8588_v54 = vld [vmem:[#allocation4 + $0x640] ss:$16 sps:$4 sm:$0xff]  }
0x5d34   :  { %6386 = vmatpush2.bf16.msra.mxu1 %v8524_v56  ;;  %6344 = vmatprep.subr.bf16.mxu0 %v8525_v0  ;;  %v8593_v56 = vld [vmem:[#allocation4 + $0x424] ss:$16 sps:$4 sm:$0xff]  }
0x5d35   :  { %6387 = vmatprep.subr.bf16.mxu1 %v8527_v44  ;;  %v8596_v0 = vld [vmem:[#allocation4 + $0x624] ss:$16 sps:$4 sm:$0xff]   ;;  %v8591_v44 = vld [vmem:[#allocation4 + $0x420] ss:$16 sps:$4 sm:$0xff]  }
0x5d37   :  { %6345 = vmatpush2.bf16.msra.mxu0 %v8529_v59  ;;  %v8594_v59 = vld [vmem:[#allocation4 + $0x620] ss:$16 sps:$4 sm:$0xff]  }
0x5d38   :  { %6388 = vmatpush2.bf16.msra.mxu1 %v8530_v13  ;;  %6346 = vmatprep.subr.bf16.mxu0 %v8531_v26  ;;  %v8599_v13 = vld [vmem:[#allocation4 + $0x404] ss:$16 sps:$4 sm:$0xff]  }
0x5d39   :  { %6389 = vmatprep.subr.bf16.mxu1 %v8533_v60  ;;  %v8602_v26 = vld [vmem:[#allocation4 + $0x604] ss:$16 sps:$4 sm:$0xff]   ;;  %v8597_v60 = vld [vmem:[#allocation4 + $0x400] ss:$16 sps:$4 sm:$0xff]  }
0x5d3b   :  { %6347 = vmatpush2.bf16.msra.mxu0 %v8535_v46  ;;  %v8600_v46 = vld [vmem:[#allocation4 + $0x600] ss:$16 sps:$4 sm:$0xff]  }
0x5d3c   :  { %6390 = vmatpush2.bf16.msra.mxu1 %v8536_v7  ;;  %6348 = vmatprep.subr.bf16.mxu0 %v8537_v47  ;;  %v8605_v7 = vld [vmem:[#allocation4 + $0x5e4] ss:$16 sps:$4 sm:$0xff]  }
0x5d3d   :  { %6391 = vmatprep.subr.bf16.mxu1 %v8539_v21  ;;  %v8608_v47 = vld [vmem:[#allocation4 + $0x7e4] ss:$16 sps:$4 sm:$0xff]   ;;  %v8603_v21 = vld [vmem:[#allocation4 + $0x5e0] ss:$16 sps:$4 sm:$0xff]  }
0x5d3f   :  { %6349 = vmatpush2.bf16.msra.mxu0 %v8541_v1  ;;  %v8606_v1 = vld [vmem:[#allocation4 + $0x7e0] ss:$16 sps:$4 sm:$0xff]  }
0x5d40   :  { %6392 = vmatpush2.bf16.msra.mxu1 %v8542_v2  ;;  %6350 = vmatprep.subr.bf16.mxu0 %v8543_v3  ;;  %v8611_v2 = vld [vmem:[#allocation4 + $0x5c4] ss:$16 sps:$4 sm:$0xff]  }
0x5d41   :  { %6393 = vmatprep.subr.bf16.mxu1 %v8545_v4  ;;  %v8614_v3 = vld [vmem:[#allocation4 + $0x7c4] ss:$16 sps:$4 sm:$0xff]   ;;  %v8609_v4 = vld [vmem:[#allocation4 + $0x5c0] ss:$16 sps:$4 sm:$0xff]  }
0x5d43   :  { %6351 = vmatpush2.bf16.msra.mxu0 %v8547_v8  ;;  %v8612_v8 = vld [vmem:[#allocation4 + $0x7c0] ss:$16 sps:$4 sm:$0xff]  }
0x5d44   :  { %6394 = vmatpush2.bf16.msra.mxu1 %v8548_v9  ;;  %6352 = vmatprep.subr.bf16.mxu0 %v8549_v14  ;;  %v8617_v9 = vld [vmem:[#allocation4 + $0x5a4] ss:$16 sps:$4 sm:$0xff]  }
0x5d45   :  { %6395 = vmatprep.subr.bf16.mxu1 %v8551_v20  ;;  %v8620_v14 = vld [vmem:[#allocation4 + $0x7a4] ss:$16 sps:$4 sm:$0xff]   ;;  %v8615_v20 = vld [vmem:[#allocation4 + $0x5a0] ss:$16 sps:$4 sm:$0xff]  }
0x5d47   :  { %6353 = vmatpush2.bf16.msra.mxu0 %v8553_v30  ;;  %v8618_v30 = vld [vmem:[#allocation4 + $0x7a0] ss:$16 sps:$4 sm:$0xff]  }
0x5d48   :  { %6396 = vmatpush2.bf16.msra.mxu1 %v8554_v38  ;;  %6408 = vmatprep.subr.bf16.mxu0 %v8557_v29  ;;  %v8623_v38 = vld [vmem:[#allocation4 + $0x584] ss:$16 sps:$4 sm:$0xff]  }
0x5d49   :  { %6451 = vmatprep.subr.bf16.mxu1 %v8560_v62  ;;  %v8626_v29 = vld [vmem:[#allocation4 + $0x784] ss:$16 sps:$4 sm:$0xff]   ;;  %v8621_v62 = vld [vmem:[#allocation4 + $0x580] ss:$16 sps:$4 sm:$0xff]  }
0x5d4a   :  { %6355 = vmatmul.mubr.bf16.vlgmr.msra.gmra.mxu0 %v10128_v5 }
0x5d4b   :  { %6398 = vmatmul.mubr.bf16.vlgmr.msra.gmra.mxu1 %v10134_v40  ;;  %6409 = vmatpush1.bf16.msra.mxu0 %v8555_v15  ;;  %v8624_v15 = vld [vmem:[#allocation4 + $0x780] ss:$16 sps:$4 sm:$0xff]  }
0x5d4c   :  { %6452 = vmatpush1.bf16.msra.mxu1 %v8558_v42  ;;  %6410 = vmatprep.subr.bf16.mxu0 %v8563_v18  ;;  %v8629_v42 = vld [vmem:[#allocation4 + $0x564] ss:$16 sps:$4 sm:$0xff]  }
0x5d4d   :  { %6453 = vmatprep.subr.bf16.mxu1 %v8566_v57  ;;  %6440 = vmatprep.mubr.bf16.mxu0 %v10140_v32  ;;  %v8632_v18 = vld [vmem:[#allocation4 + $0x764] ss:$16 sps:$4 sm:$0xff]   ;;  %v8627_v57 = vld [vmem:[#allocation4 + $0x560] ss:$16 sps:$4 sm:$0xff]  }
0x5d4e   :  { %6483 = vmatprep.mubr.bf16.mxu1 %v10146_v25 }
0x5d4f   :  { %6411 = vmatpush1.bf16.msra.mxu0 %v8561_v41  ;;  %v8630_v41 = vld [vmem:[#allocation4 + $0x760] ss:$16 sps:$4 sm:$0xff]  }
0x5d50   :  { %6454 = vmatpush1.bf16.msra.mxu1 %v8564_v49  ;;  %6412 = vmatprep.subr.bf16.mxu0 %v8569_v58  ;;  %v8635_v49 = vld [vmem:[#allocation4 + $0x544] ss:$16 sps:$4 sm:$0xff]  }
0x5d51   :  { %6455 = vmatprep.subr.bf16.mxu1 %v8572_v45  ;;  %v8638_v58 = vld [vmem:[#allocation4 + $0x744] ss:$16 sps:$4 sm:$0xff]   ;;  %v8633_v45 = vld [vmem:[#allocation4 + $0x540] ss:$16 sps:$4 sm:$0xff]  }
0x5d53   :  { %6413 = vmatpush1.bf16.msra.mxu0 %v8567_v61  ;;  %v8636_v61 = vld [vmem:[#allocation4 + $0x740] ss:$16 sps:$4 sm:$0xff]  }
0x5d54   :  { %6456 = vmatpush1.bf16.msra.mxu1 %v8570_v63  ;;  %6414 = vmatprep.subr.bf16.mxu0 %v8575_v19  ;;  %v8641_v63 = vld [vmem:[#allocation4 + $0x524] ss:$16 sps:$4 sm:$0xff]  }
0x5d55   :  { %6457 = vmatprep.subr.bf16.mxu1 %v8578_v10  ;;  %v8644_v19 = vld [vmem:[#allocation4 + $0x724] ss:$16 sps:$4 sm:$0xff]   ;;  %v8639_v10 = vld [vmem:[#allocation4 + $0x520] ss:$16 sps:$4 sm:$0xff]  }
0x5d57   :  { %6415 = vmatpush1.bf16.msra.mxu0 %v8573_v12  ;;  %v8642_v12 = vld [vmem:[#allocation4 + $0x720] ss:$16 sps:$4 sm:$0xff]  }
0x5d58   :  { %6458 = vmatpush1.bf16.msra.mxu1 %v8576_v28  ;;  %6416 = vmatprep.subr.bf16.mxu0 %v8581_v17  ;;  %v8647_v28 = vld [vmem:[#allocation4 + $0x504] ss:$16 sps:$4 sm:$0xff]  }
0x5d59   :  { %6459 = vmatprep.subr.bf16.mxu1 %v8584_v31  ;;  %v8650_v17 = vld [vmem:[#allocation4 + $0x704] ss:$16 sps:$4 sm:$0xff]   ;;  %v8645_v31 = vld [vmem:[#allocation4 + $0x500] ss:$16 sps:$4 sm:$0xff]  }
0x5d5b   :  { %6417 = vmatpush1.bf16.msra.mxu0 %v8579_v35  ;;  %v8648_v35 = vld [vmem:[#allocation4 + $0x700] ss:$16 sps:$4 sm:$0xff]  }
0x5d5c   :  { %6460 = vmatpush1.bf16.msra.mxu1 %v8582_v37  ;;  %6418 = vmatprep.subr.bf16.mxu0 %v8587_v48  ;;  %v8653_v37 = vld [vmem:[#allocation4 + $0xec] ss:$16 sps:$4 sm:$0xff]  }
0x5d5d   :  { %6461 = vmatprep.subr.bf16.mxu1 %v8590_v52  ;;  %v8656_v48 = vld [vmem:[#allocation4 + $0x2ec] ss:$16 sps:$4 sm:$0xff]   ;;  %v10156_v52 = vpack.c.bf16 %v4748_v23, %v4740_v16  ;;  %v8660_v16 = vld [vmem:[#allocation4 + $0x2c8] ss:$16 sps:$4 sm:$0xff]  }
0x5d5e   :  { %v8671_v23 = vld [vmem:[#allocation4 + $0x8c] ss:$16 sps:$4 sm:$0xff]  }
0x5d5f   :  { %6419 = vmatpush1.bf16.msra.mxu0 %v8585_v39  ;;  %v10162_v39 = vpack.c.bf16 %v4750_v34, %v4742_v43  ;;  %v8668_v43 = vld [vmem:[#allocation4 + $0x2ac] ss:$16 sps:$4 sm:$0xff]  }
0x5d60   :  { %6462 = vmatpush1.bf16.msra.mxu1 %v8588_v54  ;;  %6420 = vmatprep.subr.bf16.mxu0 %v8593_v56  ;;  %v8651_v54 = vld [vmem:[#allocation4 + $0xe8] ss:$16 sps:$4 sm:$0xff]   ;;  %v8674_v34 = vld [vmem:[#allocation4 + $0x28c] ss:$16 sps:$4 sm:$0xff]  }
0x5d61   :  { %6463 = vmatprep.subr.bf16.mxu1 %v8596_v0  ;;  %v8654_v56 = vld [vmem:[#allocation4 + $0x2e8] ss:$16 sps:$4 sm:$0xff]   ;;  %v8659_v0 = vld [vmem:[#allocation4 + $0xcc] ss:$16 sps:$4 sm:$0xff]  }
0x5d63   :  { %6421 = vmatpush1.bf16.msra.mxu0 %v8591_v44  ;;  %v8662_v44 = vld [vmem:[#allocation4 + $0x2cc] ss:$16 sps:$4 sm:$0xff]  }
0x5d64   :  { %6464 = vmatpush1.bf16.msra.mxu1 %v8594_v59  ;;  %6422 = vmatprep.subr.bf16.mxu0 %v8599_v13  ;;  %v8669_v59 = vld [vmem:[#allocation4 + $0x88] ss:$16 sps:$4 sm:$0xff]  }
0x5d65   :  { %6465 = vmatprep.subr.bf16.mxu1 %v8602_v26  ;;  %v8672_v13 = vld [vmem:[#allocation4 + $0x288] ss:$16 sps:$4 sm:$0xff]   ;;  %v8677_v26 = vld [vmem:[#allocation4 + $0x6c] ss:$16 sps:$4 sm:$0xff]  }
0x5d67   :  { %6423 = vmatpush1.bf16.msra.mxu0 %v8597_v60  ;;  %v8680_v60 = vld [vmem:[#allocation4 + $0x26c] ss:$16 sps:$4 sm:$0xff]  }
0x5d68   :  { %6466 = vmatpush1.bf16.msra.mxu1 %v8600_v46  ;;  %6424 = vmatprep.subr.bf16.mxu0 %v8605_v7  ;;  %v8675_v46 = vld [vmem:[#allocation4 + $0x68] ss:$16 sps:$4 sm:$0xff]   ;;  %v8686_v7 = vld [vmem:[#allocation4 + $0x24c] ss:$16 sps:$4 sm:$0xff]  }
0x5d69   :  { %6467 = vmatprep.subr.bf16.mxu1 %v8608_v47  ;;  %v8681_v47 = vld [vmem:[#allocation4 + $0x48] ss:$16 sps:$4 sm:$0xff]  }
0x5d6b   :  { %6425 = vmatpush2.bf16.msra.mxu0 %v8603_v21  ;;  %v8684_v21 = vld [vmem:[#allocation4 + $0x248] ss:$16 sps:$4 sm:$0xff]  }
0x5d6c   :  { %6468 = vmatpush2.bf16.msra.mxu1 %v8606_v1  ;;  %6426 = vmatprep.subr.bf16.mxu0 %v8611_v2  ;;  %v8689_v1 = vld [vmem:[#allocation4 + $0x2c] ss:$16 sps:$4 sm:$0xff]  }
0x5d6d   :  { %6469 = vmatprep.subr.bf16.mxu1 %v8614_v3  ;;  %v8692_v2 = vld [vmem:[#allocation4 + $0x22c] ss:$16 sps:$4 sm:$0xff]   ;;  %v8687_v3 = vld [vmem:[#allocation4 + $0x28] ss:$16 sps:$4 sm:$0xff]  }
0x5d6f   :  { %6427 = vmatpush2.bf16.msra.mxu0 %v8609_v4  ;;  %v8690_v4 = vld [vmem:[#allocation4 + $0x228] ss:$16 sps:$4 sm:$0xff]  }
0x5d70   :  { %6470 = vmatpush2.bf16.msra.mxu1 %v8612_v8  ;;  %6428 = vmatprep.subr.bf16.mxu0 %v8617_v9  ;;  %v8695_v8 = vld [vmem:[#allocation4 + $0xc] ss:$16 sps:$4 sm:$0xff]  }
0x5d71   :  { %6471 = vmatprep.subr.bf16.mxu1 %v8620_v14  ;;  %v8698_v9 = vld [vmem:[#allocation4 + $0x20c] ss:$16 sps:$4 sm:$0xff]   ;;  %v8693_v14 = vld [vmem:[#allocation4 + $0x8] ss:$16 sps:$4 sm:$0xff]  }
0x5d73   :  { %6429 = vmatpush2.bf16.msra.mxu0 %v8615_v20  ;;  %v8696_v20 = vld [vmem:[#allocation4 + $0x208] ss:$16 sps:$4 sm:$0xff]  }
0x5d74   :  { %6472 = vmatpush2.bf16.msra.mxu1 %v8618_v30  ;;  %6430 = vmatprep.subr.bf16.mxu0 %v8623_v38  ;;  %v8701_v30 = vld [vmem:[#allocation4 + $0x1ec] ss:$16 sps:$4 sm:$0xff]  }
0x5d75   :  { %6473 = vmatprep.subr.bf16.mxu1 %v8626_v29  ;;  %v8704_v38 = vld [vmem:[#allocation4 + $0x3ec] ss:$16 sps:$4 sm:$0xff]   ;;  %v8699_v29 = vld [vmem:[#allocation4 + $0x1e8] ss:$16 sps:$4 sm:$0xff]  }
0x5d77   :  { %6431 = vmatpush2.bf16.msra.mxu0 %v8621_v62  ;;  %v8702_v62 = vld [vmem:[#allocation4 + $0x3e8] ss:$16 sps:$4 sm:$0xff]  }
0x5d78   :  { %6474 = vmatpush2.bf16.msra.mxu1 %v8624_v15  ;;  %6432 = vmatprep.subr.bf16.mxu0 %v8629_v42  ;;  %v8707_v15 = vld [vmem:[#allocation4 + $0x1cc] ss:$16 sps:$4 sm:$0xff]  }
0x5d79   :  { %6475 = vmatprep.subr.bf16.mxu1 %v8632_v18  ;;  %v8710_v42 = vld [vmem:[#allocation4 + $0x3cc] ss:$16 sps:$4 sm:$0xff]   ;;  %v8705_v18 = vld [vmem:[#allocation4 + $0x1c8] ss:$16 sps:$4 sm:$0xff]  }
0x5d7b   :  { %6433 = vmatpush2.bf16.msra.mxu0 %v8627_v57  ;;  %v8708_v57 = vld [vmem:[#allocation4 + $0x3c8] ss:$16 sps:$4 sm:$0xff]  }
0x5d7c   :  { %6476 = vmatpush2.bf16.msra.mxu1 %v8630_v41  ;;  %6434 = vmatprep.subr.bf16.mxu0 %v8635_v49  ;;  %v8713_v41 = vld [vmem:[#allocation4 + $0x1ac] ss:$16 sps:$4 sm:$0xff]  }
0x5d7d   :  { %6477 = vmatprep.subr.bf16.mxu1 %v8638_v58  ;;  %v8716_v49 = vld [vmem:[#allocation4 + $0x3ac] ss:$16 sps:$4 sm:$0xff]   ;;  %v8711_v58 = vld [vmem:[#allocation4 + $0x1a8] ss:$16 sps:$4 sm:$0xff]  }
0x5d7f   :  { %6435 = vmatpush2.bf16.msra.mxu0 %v8633_v45  ;;  %v8714_v45 = vld [vmem:[#allocation4 + $0x3a8] ss:$16 sps:$4 sm:$0xff]  }
0x5d80   :  { %6478 = vmatpush2.bf16.msra.mxu1 %v8636_v61  ;;  %6436 = vmatprep.subr.bf16.mxu0 %v8641_v63  ;;  %v8719_v61 = vld [vmem:[#allocation4 + $0x18c] ss:$16 sps:$4 sm:$0xff]  }
0x5d81   :  { %6479 = vmatprep.subr.bf16.mxu1 %v8644_v19  ;;  %v8722_v63 = vld [vmem:[#allocation4 + $0x38c] ss:$16 sps:$4 sm:$0xff]   ;;  %v8717_v19 = vld [vmem:[#allocation4 + $0x188] ss:$16 sps:$4 sm:$0xff]  }
0x5d83   :  { %6437 = vmatpush2.bf16.msra.mxu0 %v8639_v10  ;;  %v8720_v10 = vld [vmem:[#allocation4 + $0x388] ss:$16 sps:$4 sm:$0xff]  }
0x5d84   :  { %6480 = vmatpush2.bf16.msra.mxu1 %v8642_v12  ;;  %6438 = vmatprep.subr.bf16.mxu0 %v8647_v28  ;;  %v8725_v12 = vld [vmem:[#allocation4 + $0x16c] ss:$16 sps:$4 sm:$0xff]  }
0x5d85   :  { %6481 = vmatprep.subr.bf16.mxu1 %v8650_v17  ;;  %v8728_v28 = vld [vmem:[#allocation4 + $0x36c] ss:$16 sps:$4 sm:$0xff]   ;;  %v8723_v17 = vld [vmem:[#allocation4 + $0x168] ss:$16 sps:$4 sm:$0xff]  }
0x5d87   :  { %6439 = vmatpush2.bf16.msra.mxu0 %v8645_v31  ;;  %v8726_v31 = vld [vmem:[#allocation4 + $0x368] ss:$16 sps:$4 sm:$0xff]  }
0x5d88   :  { %6482 = vmatpush2.bf16.msra.mxu1 %v8648_v35  ;;  %6494 = vmatprep.subr.bf16.mxu0 %v8653_v37  ;;  %v8731_v35 = vld [vmem:[#allocation4 + $0x14c] ss:$16 sps:$4 sm:$0xff]  }
0x5d89   :  { %6537 = vmatprep.subr.bf16.mxu1 %v8656_v48  ;;  %v8734_v37 = vld [vmem:[#allocation4 + $0x34c] ss:$16 sps:$4 sm:$0xff]   ;;  %v8729_v48 = vld [vmem:[#allocation4 + $0x148] ss:$16 sps:$4 sm:$0xff]  }
0x5d8a   :  { %6441 = vmatmul.mubr.bf16.vlgmr.msra.gmra.mxu0 %v10156_v52 }
0x5d8b   :  { %6484 = vmatmul.mubr.bf16.vlgmr.msra.gmra.mxu1 %v10162_v39  ;;  %6495 = vmatpush1.bf16.msra.mxu0 %v8651_v54  ;;  %v8732_v54 = vld [vmem:[#allocation4 + $0x348] ss:$16 sps:$4 sm:$0xff]  }
0x5d8c   :  { %6538 = vmatpush1.bf16.msra.mxu1 %v8654_v56  ;;  %6496 = vmatprep.subr.bf16.mxu0 %v8659_v0  ;;  %v8737_v56 = vld [vmem:[#allocation4 + $0x12c] ss:$16 sps:$4 sm:$0xff]  }
0x5d8d   :  { %6539 = vmatprep.subr.bf16.mxu1 %v8662_v44  ;;  %6526 = vmatprep.mubr.bf16.mxu0 %v10118_v33  ;;  %v8678_v33 = vld [vmem:[#allocation4 + $0x268] ss:$16 sps:$4 sm:$0xff]   ;;  %v8740_v0 = vld [vmem:[#allocation4 + $0x32c] ss:$16 sps:$4 sm:$0xff]  }
0x5d8e   :  { %6569 = vmatprep.mubr.bf16.mxu1 %v10120_v50  ;;  %v8683_v50 = vld [vmem:[#allocation4 + $0x4c] ss:$16 sps:$4 sm:$0xff]   ;;  %v8735_v44 = vld [vmem:[#allocation4 + $0x128] ss:$16 sps:$4 sm:$0xff]  }
0x5d8f   :  { %6497 = vmatpush1.bf16.msra.mxu0 %v8657_v6  ;;  %v8738_v6 = vld [vmem:[#allocation4 + $0x328] ss:$16 sps:$4 sm:$0xff]  }
0x5d90   :  { %6540 = vmatpush1.bf16.msra.mxu1 %v8660_v16  ;;  %6498 = vmatprep.subr.bf16.mxu0 %v8665_v55  ;;  %v8743_v16 = vld [vmem:[#allocation4 + $0x10c] ss:$16 sps:$4 sm:$0xff]  }
0x5d91   :  { %6541 = vmatprep.subr.bf16.mxu1 %v8668_v43  ;;  %v8746_v55 = vld [vmem:[#allocation4 + $0x30c] ss:$16 sps:$4 sm:$0xff]   ;;  %v8741_v43 = vld [vmem:[#allocation4 + $0x108] ss:$16 sps:$4 sm:$0xff]  }
0x5d93   :  { %6499 = vmatpush1.bf16.msra.mxu0 %v8663_v22  ;;  %v8744_v22 = vld [vmem:[#allocation4 + $0x308] ss:$16 sps:$4 sm:$0xff]  }
0x5d94   :  { %6542 = vmatpush1.bf16.msra.mxu1 %v8666_v24  ;;  %6500 = vmatprep.subr.bf16.mxu0 %v8671_v23  ;;  %v8749_v24 = vld [vmem:[#allocation4 + $0x4ec] ss:$16 sps:$4 sm:$0xff]  }
0x5d95   :  { %6543 = vmatprep.subr.bf16.mxu1 %v8674_v34  ;;  %v8752_v23 = vld [vmem:[#allocation4 + $0x6ec] ss:$16 sps:$4 sm:$0xff]   ;;  %v8747_v34 = vld [vmem:[#allocation4 + $0x4e8] ss:$16 sps:$4 sm:$0xff]  }
0x5d97   :  { %6501 = vmatpush1.bf16.msra.mxu0 %v8669_v59  ;;  %v8750_v59 = vld [vmem:[#allocation4 + $0x6e8] ss:$16 sps:$4 sm:$0xff]  }
0x5d98   :  { %6544 = vmatpush1.bf16.msra.mxu1 %v8672_v13  ;;  %6502 = vmatprep.subr.bf16.mxu0 %v8677_v26  ;;  %v8755_v13 = vld [vmem:[#allocation4 + $0x4cc] ss:$16 sps:$4 sm:$0xff]  }
0x5d99   :  { %6545 = vmatprep.subr.bf16.mxu1 %v8680_v60  ;;  %v8758_v26 = vld [vmem:[#allocation4 + $0x6cc] ss:$16 sps:$4 sm:$0xff]   ;;  %v8753_v60 = vld [vmem:[#allocation4 + $0x4c8] ss:$16 sps:$4 sm:$0xff]  }
0x5d9b   :  { %6503 = vmatpush1.bf16.msra.mxu0 %v8675_v46  ;;  %v8756_v46 = vld [vmem:[#allocation4 + $0x6c8] ss:$16 sps:$4 sm:$0xff]  }
0x5d9c   :  { %6546 = vmatpush1.bf16.msra.mxu1 %v8678_v33  ;;  %6504 = vmatprep.subr.bf16.mxu0 %v8683_v50  ;;  %v8761_v33 = vld [vmem:[#allocation4 + $0x4ac] ss:$16 sps:$4 sm:$0xff]  }
0x5d9d   :  { %6547 = vmatprep.subr.bf16.mxu1 %v8686_v7  ;;  %v8764_v50 = vld [vmem:[#allocation4 + $0x6ac] ss:$16 sps:$4 sm:$0xff]   ;;  %v8759_v7 = vld [vmem:[#allocation4 + $0x4a8] ss:$16 sps:$4 sm:$0xff]  }
0x5d9f   :  { %6505 = vmatpush1.bf16.msra.mxu0 %v8681_v47  ;;  %v8762_v47 = vld [vmem:[#allocation4 + $0x6a8] ss:$16 sps:$4 sm:$0xff]  }
0x5da0   :  { %6548 = vmatpush1.bf16.msra.mxu1 %v8684_v21  ;;  %6506 = vmatprep.subr.bf16.mxu0 %v8689_v1  ;;  %v8765_v21 = vld [vmem:[#allocation4 + $0x488] ss:$16 sps:$4 sm:$0xff]  }
0x5da1   :  { %6549 = vmatprep.subr.bf16.mxu1 %v8692_v2  ;;  %v8768_v1 = vld [vmem:[#allocation4 + $0x688] ss:$16 sps:$4 sm:$0xff]   ;;  %v8773_v2 = vld [vmem:[#allocation4 + $0x46c] ss:$16 sps:$4 sm:$0xff]  }
0x5da3   :  { %6507 = vmatpush1.bf16.msra.mxu0 %v8687_v3  ;;  %v8776_v3 = vld [vmem:[#allocation4 + $0x66c] ss:$16 sps:$4 sm:$0xff]  }
0x5da4   :  { %6550 = vmatpush1.bf16.msra.mxu1 %v8690_v4  ;;  %6508 = vmatprep.subr.bf16.mxu0 %v8695_v8  ;;  %v8779_v4 = vld [vmem:[#allocation4 + $0x44c] ss:$16 sps:$4 sm:$0xff]  }
0x5da5   :  { %6551 = vmatprep.subr.bf16.mxu1 %v8698_v9  ;;  %v8782_v8 = vld [vmem:[#allocation4 + $0x64c] ss:$16 sps:$4 sm:$0xff]   ;;  %v8777_v9 = vld [vmem:[#allocation4 + $0x448] ss:$16 sps:$4 sm:$0xff]  }
0x5da7   :  { %6509 = vmatpush1.bf16.msra.mxu0 %v8693_v14  ;;  %v8780_v14 = vld [vmem:[#allocation4 + $0x648] ss:$16 sps:$4 sm:$0xff]  }
0x5da8   :  { %6552 = vmatpush1.bf16.msra.mxu1 %v8696_v20  ;;  %6510 = vmatprep.subr.bf16.mxu0 %v8701_v30  ;;  %v8785_v20 = vld [vmem:[#allocation4 + $0x42c] ss:$16 sps:$4 sm:$0xff]  }
0x5da9   :  { %6553 = vmatprep.subr.bf16.mxu1 %v8704_v38  ;;  %v8788_v30 = vld [vmem:[#allocation4 + $0x62c] ss:$16 sps:$4 sm:$0xff]   ;;  %v8783_v38 = vld [vmem:[#allocation4 + $0x428] ss:$16 sps:$4 sm:$0xff]  }
0x5dab   :  { %6511 = vmatpush2.bf16.msra.mxu0 %v8699_v29  ;;  %v8786_v29 = vld [vmem:[#allocation4 + $0x628] ss:$16 sps:$4 sm:$0xff]  }
0x5dac   :  { %6554 = vmatpush2.bf16.msra.mxu1 %v8702_v62  ;;  %6512 = vmatprep.subr.bf16.mxu0 %v8707_v15  ;;  %v8791_v62 = vld [vmem:[#allocation4 + $0x40c] ss:$16 sps:$4 sm:$0xff]  }
0x5dad   :  { %6555 = vmatprep.subr.bf16.mxu1 %v8710_v42  ;;  %v8794_v15 = vld [vmem:[#allocation4 + $0x60c] ss:$16 sps:$4 sm:$0xff]   ;;  %v8789_v42 = vld [vmem:[#allocation4 + $0x408] ss:$16 sps:$4 sm:$0xff]  }
0x5daf   :  { %6513 = vmatpush2.bf16.msra.mxu0 %v8705_v18  ;;  %v8792_v18 = vld [vmem:[#allocation4 + $0x608] ss:$16 sps:$4 sm:$0xff]  }
0x5db0   :  { %6556 = vmatpush2.bf16.msra.mxu1 %v8708_v57  ;;  %6514 = vmatprep.subr.bf16.mxu0 %v8713_v41  ;;  %v8797_v57 = vld [vmem:[#allocation4 + $0x5ec] ss:$16 sps:$4 sm:$0xff]  }
0x5db1   :  { %6557 = vmatprep.subr.bf16.mxu1 %v8716_v49  ;;  %v8800_v41 = vld [vmem:[#allocation4 + $0x7ec] ss:$16 sps:$4 sm:$0xff]   ;;  %v8795_v49 = vld [vmem:[#allocation4 + $0x5e8] ss:$16 sps:$4 sm:$0xff]  }
0x5db3   :  { %6515 = vmatpush2.bf16.msra.mxu0 %v8711_v58  ;;  %v8798_v58 = vld [vmem:[#allocation4 + $0x7e8] ss:$16 sps:$4 sm:$0xff]  }
0x5db4   :  { %6558 = vmatpush2.bf16.msra.mxu1 %v8714_v45  ;;  %6516 = vmatprep.subr.bf16.mxu0 %v8719_v61  ;;  %v8803_v45 = vld [vmem:[#allocation4 + $0x5cc] ss:$16 sps:$4 sm:$0xff]  }
0x5db5   :  { %6559 = vmatprep.subr.bf16.mxu1 %v8722_v63  ;;  %v8806_v61 = vld [vmem:[#allocation4 + $0x7cc] ss:$16 sps:$4 sm:$0xff]   ;;  %v8801_v63 = vld [vmem:[#allocation4 + $0x5c8] ss:$16 sps:$4 sm:$0xff]  }
0x5db7   :  { %6517 = vmatpush2.bf16.msra.mxu0 %v8717_v19  ;;  %v8804_v19 = vld [vmem:[#allocation4 + $0x7c8] ss:$16 sps:$4 sm:$0xff]  }
0x5db8   :  { %6560 = vmatpush2.bf16.msra.mxu1 %v8720_v10  ;;  %6518 = vmatprep.subr.bf16.mxu0 %v8725_v12  ;;  %v8809_v10 = vld [vmem:[#allocation4 + $0x5ac] ss:$16 sps:$4 sm:$0xff]  }
0x5db9   :  { %6561 = vmatprep.subr.bf16.mxu1 %v8728_v28  ;;  %v8812_v12 = vld [vmem:[#allocation4 + $0x7ac] ss:$16 sps:$4 sm:$0xff]   ;;  %v8807_v28 = vld [vmem:[#allocation4 + $0x5a8] ss:$16 sps:$4 sm:$0xff]  }
0x5dbb   :  { %6519 = vmatpush2.bf16.msra.mxu0 %v8723_v17  ;;  %v8810_v17 = vld [vmem:[#allocation4 + $0x7a8] ss:$16 sps:$4 sm:$0xff]  }
0x5dbc   :  { %6562 = vmatpush2.bf16.msra.mxu1 %v8726_v31  ;;  %6520 = vmatprep.subr.bf16.mxu0 %v8731_v35  ;;  %v8815_v31 = vld [vmem:[#allocation4 + $0x58c] ss:$16 sps:$4 sm:$0xff]  }
0x5dbd   :  { %6563 = vmatprep.subr.bf16.mxu1 %v8734_v37  ;;  %v8818_v35 = vld [vmem:[#allocation4 + $0x78c] ss:$16 sps:$4 sm:$0xff]   ;;  %v8813_v37 = vld [vmem:[#allocation4 + $0x588] ss:$16 sps:$4 sm:$0xff]  }
0x5dbf   :  { %6521 = vmatpush2.bf16.msra.mxu0 %v8729_v48  ;;  %v8816_v48 = vld [vmem:[#allocation4 + $0x788] ss:$16 sps:$4 sm:$0xff]  }
0x5dc0   :  { %6564 = vmatpush2.bf16.msra.mxu1 %v8732_v54  ;;  %6522 = vmatprep.subr.bf16.mxu0 %v8737_v56  ;;  %v8821_v54 = vld [vmem:[#allocation4 + $0x56c] ss:$16 sps:$4 sm:$0xff]  }
0x5dc1   :  { %6565 = vmatprep.subr.bf16.mxu1 %v8740_v0  ;;  %v8824_v56 = vld [vmem:[#allocation4 + $0x76c] ss:$16 sps:$4 sm:$0xff]   ;;  %v8819_v0 = vld [vmem:[#allocation4 + $0x568] ss:$16 sps:$4 sm:$0xff]  }
0x5dc3   :  { %6523 = vmatpush2.bf16.msra.mxu0 %v8735_v44  ;;  %v8822_v44 = vld [vmem:[#allocation4 + $0x768] ss:$16 sps:$4 sm:$0xff]  }
0x5dc4   :  { %6566 = vmatpush2.bf16.msra.mxu1 %v8738_v6  ;;  %6524 = vmatprep.subr.bf16.mxu0 %v8743_v16  ;;  %v8827_v6 = vld [vmem:[#allocation4 + $0x54c] ss:$16 sps:$4 sm:$0xff]  }
0x5dc5   :  { %6567 = vmatprep.subr.bf16.mxu1 %v8746_v55  ;;  %v8830_v16 = vld [vmem:[#allocation4 + $0x74c] ss:$16 sps:$4 sm:$0xff]   ;;  %v8825_v55 = vld [vmem:[#allocation4 + $0x548] ss:$16 sps:$4 sm:$0xff]  }
0x5dc7   :  { %6525 = vmatpush2.bf16.msra.mxu0 %v8741_v43  ;;  %v8828_v43 = vld [vmem:[#allocation4 + $0x748] ss:$16 sps:$4 sm:$0xff]  }
0x5dc8   :  { %6568 = vmatpush2.bf16.msra.mxu1 %v8744_v22  ;;  %6580 = vmatprep.subr.bf16.mxu0 %v8749_v24  ;;  %v8833_v22 = vld [vmem:[#allocation4 + $0x52c] ss:$16 sps:$4 sm:$0xff]  }
0x5dc9   :  { %6623 = vmatprep.subr.bf16.mxu1 %v8752_v23  ;;  %v8836_v24 = vld [vmem:[#allocation4 + $0x72c] ss:$16 sps:$4 sm:$0xff]   ;;  %v8831_v23 = vld [vmem:[#allocation4 + $0x528] ss:$16 sps:$4 sm:$0xff]  }
0x5dca   :  { %6527 = vmatmul.mubr.bf16.vlgmr.msra.gmra.mxu0 %v10128_v5  ;;  %v8767_v5 = vld [vmem:[#allocation4 + $0x48c] ss:$16 sps:$4 sm:$0xff]  }
0x5dcb   :  { %6570 = vmatmul.mubr.bf16.vlgmr.msra.gmra.mxu1 %v10134_v40  ;;  %6581 = vmatpush1.bf16.msra.mxu0 %v8747_v34  ;;  %v8770_v40 = vld [vmem:[#allocation4 + $0x68c] ss:$16 sps:$4 sm:$0xff]   ;;  %v8834_v34 = vld [vmem:[#allocation4 + $0x728] ss:$16 sps:$4 sm:$0xff]  }
0x5dcc   :  { %6624 = vmatpush1.bf16.msra.mxu1 %v8750_v59  ;;  %6582 = vmatprep.subr.bf16.mxu0 %v8755_v13  ;;  %v8839_v59 = vld [vmem:[#allocation4 + $0x50c] ss:$16 sps:$4 sm:$0xff]  }
0x5dcd   :  { %6625 = vmatprep.subr.bf16.mxu1 %v8758_v26  ;;  %6612 = vmatprep.mubr.bf16.mxu0 %v10140_v32  ;;  %v8771_v32 = vld [vmem:[#allocation4 + $0x468] ss:$16 sps:$4 sm:$0xff]   ;;  %v8842_v13 = vld [vmem:[#allocation4 + $0x70c] ss:$16 sps:$4 sm:$0xff]  }
0x5dce   :  { %6655 = vmatprep.mubr.bf16.mxu1 %v10146_v25  ;;  %v8774_v25 = vld [vmem:[#allocation4 + $0x668] ss:$16 sps:$4 sm:$0xff]  }
0x5dcf   :  { %6583 = vmatpush1.bf16.msra.mxu0 %v8753_v60  ;;  %v8837_v26 = vld [vmem:[#allocation4 + $0x508] ss:$16 sps:$4 sm:$0xff]  }
0x5dd0   :  { %6626 = vmatpush1.bf16.msra.mxu1 %v8756_v46  ;;  %6584 = vmatprep.subr.bf16.mxu0 %v8761_v33  ;;  %v8840_v60 = vld [vmem:[#allocation4 + $0x708] ss:$16 sps:$4 sm:$0xff]  }
0x5dd1   :  { %6627 = vmatprep.subr.bf16.mxu1 %v8764_v50  ;;  %v5020_v50 = vld [vmem:[#allocation18] sm:$0xf] }
0x5dd3   :  { %6585 = vmatpush1.bf16.msra.mxu0 %v8759_v7 }
0x5dd4   :  { %6628 = vmatpush1.bf16.msra.mxu1 %v8762_v47  ;;  %6586 = vmatprep.subr.bf16.mxu0 %v8767_v5  ;;  %v5025_v5 = vrot.slane %v5020_v50, %v9320_v27 }
0x5dd5   :  { %6629 = vmatprep.subr.bf16.mxu1 %v8770_v40  ;;  %v5029_v40 = vrot.slane %v5020_v50, %v9323_v36 }
0x5dd7   :  { %6587 = vmatpush1.bf16.msra.mxu0 %v8765_v21 }
0x5dd8   :  { %6630 = vmatpush1.bf16.msra.mxu1 %v8768_v1  ;;  %6588 = vmatprep.subr.bf16.mxu0 %v8773_v2 }
0x5dd9   :  { %6631 = vmatprep.subr.bf16.mxu1 %v8776_v3 }
0x5ddb   :  { %6589 = vmatpush1.bf16.msra.mxu0 %v8771_v32 }
0x5ddc   :  { %6632 = vmatpush1.bf16.msra.mxu1 %v8774_v25  ;;  %6590 = vmatprep.subr.bf16.mxu0 %v8779_v4 }
0x5ddd   :  { %6633 = vmatprep.subr.bf16.mxu1 %v8782_v8 }
0x5ddf   :  { %6591 = vmatpush1.bf16.msra.mxu0 %v8777_v9 }
0x5de0   :  { %6634 = vmatpush1.bf16.msra.mxu1 %v8780_v14  ;;  %6592 = vmatprep.subr.bf16.mxu0 %v8785_v20 }
0x5de1   :  { %6635 = vmatprep.subr.bf16.mxu1 %v8788_v30 }
0x5de3   :  { %6593 = vmatpush1.bf16.msra.mxu0 %v8783_v38 }
0x5de4   :  { %6636 = vmatpush1.bf16.msra.mxu1 %v8786_v29  ;;  %6594 = vmatprep.subr.bf16.mxu0 %v8791_v62 }
0x5de5   :  { %6637 = vmatprep.subr.bf16.mxu1 %v8794_v15 }
0x5de7   :  { %6595 = vmatpush1.bf16.msra.mxu0 %v8789_v42 }
0x5de8   :  { %6638 = vmatpush1.bf16.msra.mxu1 %v8792_v18  ;;  %6596 = vmatprep.subr.bf16.mxu0 %v8797_v57 }
0x5de9   :  { %6639 = vmatprep.subr.bf16.mxu1 %v8800_v41 }
0x5deb   :  { %6597 = vmatpush2.bf16.msra.mxu0 %v8795_v49 }
0x5dec   :  { %6640 = vmatpush2.bf16.msra.mxu1 %v8798_v58  ;;  %6598 = vmatprep.subr.bf16.mxu0 %v8803_v45 }
0x5ded   :  { %6641 = vmatprep.subr.bf16.mxu1 %v8806_v61 }
0x5def   :  { %6599 = vmatpush2.bf16.msra.mxu0 %v8801_v63 }
0x5df0   :  { %6642 = vmatpush2.bf16.msra.mxu1 %v8804_v19  ;;  %6600 = vmatprep.subr.bf16.mxu0 %v8809_v10 }
0x5df1   :  { %6643 = vmatprep.subr.bf16.mxu1 %v8812_v12 }
0x5df3   :  { %6601 = vmatpush2.bf16.msra.mxu0 %v8807_v28 }
0x5df4   :  { %6644 = vmatpush2.bf16.msra.mxu1 %v8810_v17  ;;  %6602 = vmatprep.subr.bf16.mxu0 %v8815_v31 }
0x5df5   :  { %6645 = vmatprep.subr.bf16.mxu1 %v8818_v35 }
0x5df7   :  { %6603 = vmatpush2.bf16.msra.mxu0 %v8813_v37 }
0x5df8   :  { %6646 = vmatpush2.bf16.msra.mxu1 %v8816_v48  ;;  %6604 = vmatprep.subr.bf16.mxu0 %v8821_v54  ;;  %v5033_v54 = vrot.slane %v5020_v50, %v4451_v51 }
0x5df9   :  { %6647 = vmatprep.subr.bf16.mxu1 %v8824_v56  ;;  %v5037_v56 = vrot.slane %v5020_v50, %v4455_v53 }
0x5dfb   :  { %6605 = vmatpush2.bf16.msra.mxu0 %v8819_v0 }
0x5dfc   :  { %6648 = vmatpush2.bf16.msra.mxu1 %v8822_v44  ;;  %6606 = vmatprep.subr.bf16.mxu0 %v8827_v6 }
0x5dfd   :  { %6649 = vmatprep.subr.bf16.mxu1 %v8830_v16 }
0x5dff   :  { %6607 = vmatpush2.bf16.msra.mxu0 %v8825_v55 }
0x5e00   :  { %6650 = vmatpush2.bf16.msra.mxu1 %v8828_v43  ;;  %6608 = vmatprep.subr.bf16.mxu0 %v8833_v22 }
0x5e01   :  { %6651 = vmatprep.subr.bf16.mxu1 %v8836_v24 }
0x5e03   :  { %6609 = vmatpush2.bf16.msra.mxu0 %v8831_v23 }
0x5e04   :  { %6652 = vmatpush2.bf16.msra.mxu1 %v8834_v34  ;;  %6610 = vmatprep.subr.bf16.mxu0 %v8839_v59 }
0x5e05   :  { %6653 = vmatprep.subr.bf16.mxu1 %v8842_v13 }
0x5e07   :  { %6611 = vmatpush2.bf16.msra.mxu0 %v8837_v26 }
0x5e08   :  { %6654 = vmatpush2.bf16.msra.mxu1 %v8840_v60 }
0x5e0a   :  { %6613 = vmatmul.mubr.bf16.vlgmr.msra.gmra.mxu0 %v10156_v52  ;;  %v6356_v46 = vpop.f32.mrf.mxu0 }
0x5e0b   :  { %6656 = vmatmul.mubr.bf16.vlgmr.msra.gmra.mxu1 %v10162_v39  ;;  %v6399_v33 = vpop.f32.mrf.mxu1  ;;  %v6357_v2 = vadd.f32 %v6356_v46, %v5025_v5 }
0x5e0c   :  { %v6358_v7 = vpop.f32.mrf.mxu0 }
0x5e0d   :  { %v6401_v47 = vpop.f32.mrf.mxu1  ;;  %v6359_v3 = vadd.f32 %v6358_v7, %v5029_v40  ;;  %v6400_v4 = vadd.f32 %v6399_v33, %v6357_v2 }
0x5e0e   :  { %v6360_v21 = vpop.f32.mrf.mxu0 }
0x5e0f   :  { %v6403_v1 = vpop.f32.mrf.mxu1  ;;  %v6361_v8 = vadd.f32 %v6360_v21, %v5025_v5  ;;  %v6402_v39 = vadd.f32 %v6401_v47, %v6359_v3 }
0x5e10   :  { %v6362_v32 = vpop.f32.mrf.mxu0 }
0x5e11   :  { %v6405_v25 = vpop.f32.mrf.mxu1  ;;  %v6363_v14 = vadd.f32 %v6362_v32, %v5029_v40  ;;  %v6404_v29 = vadd.f32 %v6403_v1, %v6361_v8 }
0x5e13   :  { %v6406_v57 = vadd.f32 %v6405_v25, %v6363_v14 }
0x5e4a   :  { %v6442_v52 = vpop.f32.mrf.mxu0 }
0x5e4b   :  { %v6485_v9 = vpop.f32.mrf.mxu1  ;;  %v6443_v20 = vadd.f32 %v6442_v52, %v6400_v4 }
0x5e4c   :  { %v6444_v30 = vpop.f32.mrf.mxu0 }
0x5e4d   :  { %v6487_v38 = vpop.f32.mrf.mxu1  ;;  %v10176_v62 = vadd.f32 %v6485_v9, %v6443_v20  ;;  %v6445_v15 = vadd.f32 %v6444_v30, %v6402_v39 }
0x5e4e   :  { %v6446_v42 = vpop.f32.mrf.mxu0 }
0x5e4f   :  { %v6489_v18 = vpop.f32.mrf.mxu1  ;;  %v6666_v41 = vmax.f32 %v10176_v62, 0.0  ;;  %v6488_v49 = vadd.f32 %v6487_v38, %v6445_v15  ;;  %v6447_v58 = vadd.f32 %v6446_v42, %v6404_v29 }
0x5e50   :  { %v6448_v45 = vpop.f32.mrf.mxu0 }
0x5e51   :  { %v6667_v61 = vmax.f32 %v6488_v49, 0.0  ;;  %v10179_v63 = vadd.f32 %v6489_v18, %v6447_v58  ;;  %v6449_v19 = vadd.f32 %v6448_v45, %v6406_v57  ;;  %v6491_v10 = vpop.f32.mrf.mxu1 }
0x5e53   :  { %v6670_v12 = vmax.f32 %v10179_v63, 0.0  ;;  %v6492_v28 = vadd.f32 %v6491_v10, %v6449_v19 }
0x5e55   :  { %v6671_v17 = vmax.f32 %v6492_v28, 0.0 }
0x5e8a   :  { %v6528_v31 = vpop.f32.mrf.mxu0 }
0x5e8b   :  { %v6571_v35 = vpop.f32.mrf.mxu1  ;;  %v6529_v6 = vadd.f32 %v6528_v31, %v5033_v54 }
0x5e8c   :  { %v6530_v37 = vpop.f32.mrf.mxu0 }
0x5e8d   :  { %v6573_v48 = vpop.f32.mrf.mxu1  ;;  %v6531_v16 = vadd.f32 %v6530_v37, %v5037_v56  ;;  %v6572_v22 = vadd.f32 %v6571_v35, %v6529_v6 }
0x5e8e   :  { %v6532_v0 = vpop.f32.mrf.mxu0 }
0x5e8f   :  { %v6575_v44 = vpop.f32.mrf.mxu1  ;;  %v6533_v24 = vadd.f32 %v6532_v0, %v5033_v54  ;;  %v6574_v59 = vadd.f32 %v6573_v48, %v6531_v16 }
0x5e90   :  { %v6534_v55 = vpop.f32.mrf.mxu0 }
0x5e91   :  { %v6577_v43 = vpop.f32.mrf.mxu1  ;;  %v6535_v13 = vadd.f32 %v6534_v55, %v5037_v56  ;;  %v6576_v33 = vadd.f32 %v6575_v44, %v6533_v24 }
0x5e93   :  { %v6578_v7 = vadd.f32 %v6577_v43, %v6535_v13 }
0x5eca   :  { %v6614_v23 = vpop.f32.mrf.mxu0 }
0x5ecb   :  { %v6657_v34 = vpop.f32.mrf.mxu1  ;;  %v6615_v26 = vadd.f32 %v6614_v23, %v6572_v22 }
0x5ecc   :  { %v6616_v60 = vpop.f32.mrf.mxu0 }
0x5ecd   :  { %v6659_v46 = vpop.f32.mrf.mxu1  ;;  %v10186_v51 = vadd.f32 %v6657_v34, %v6615_v26  ;;  %v6617_v11 = vadd.f32 %v6616_v60, %v6574_v59 }
0x5ece   :  { %v6618_v53 = vpop.f32.mrf.mxu0 }
0x5ecf   :  { %v6661_v50 = vpop.f32.mrf.mxu1  ;;  %v6668_v47 = vmax.f32 %v10186_v51, 0.0  ;;  %v6660_v5 = vadd.f32 %v6659_v46, %v6617_v11  ;;  %v6619_v40 = vadd.f32 %v6618_v53, %v6576_v33 }
0x5ed0   :  { %v6620_v21 = vpop.f32.mrf.mxu0 }
0x5ed1   :  { %v6669_v1 = vmax.f32 %v6660_v5, 0.0  ;;  %v10189_v2 = vadd.f32 %v6661_v50, %v6619_v40  ;;  %v6621_v3 = vadd.f32 %v6620_v21, %v6578_v7  ;;  %v6663_v32 = vpop.f32.mrf.mxu1 }
0x5ed3   :  { %v6672_v25 = vmax.f32 %v10189_v2, 0.0  ;;  %v6664_v4 = vadd.f32 %v6663_v32, %v6621_v3 }
0x5ed5   :  { %v6673_v8 = vmax.f32 %v6664_v4, 0.0 }
0x5ed6   :  { %9161 = dma.done.wait [#allocation6 + $0x2], 8192 }
0x5ed7   :  { %9162 = vsyncadd [#allocation6 + $0x2], 4294959104  ;;  %v6679_v52 = vpack.c.bf16 %v6671_v17, %v6667_v61  ;;  %v6681_v9 = vpack.c.bf16 %v6673_v8, %v6669_v1  ;;  %v8843_v39 = vld [vmem:[#allocation5 + $0x74] ss:$8 sps:$4 sm:$0xff]   ;;  %v8847_v20 = vld [vmem:[#allocation5 + $0x70] ss:$8 sps:$4 sm:$0xff]  }
0x5ed8   :  { %v8845_v14 = vld [vmem:[#allocation5 + $0x174] ss:$8 sps:$4 sm:$0xff]   ;;  %7078 = vmatprep.subr.bf16.mxu0 %v8843_v39  ;;  %v8848_v30 = vld [vmem:[#allocation5 + $0x170] ss:$8 sps:$4 sm:$0xff]   ;;  %v8849_v38 = vld [vmem:[#allocation5 + $0x64] ss:$8 sps:$4 sm:$0xff]  }
0x5ed9   :  { %7110 = vmatprep.mubr.bf16.mxu0 %v6679_v52  ;;  %7153 = vmatprep.mubr.bf16.mxu1 %v6681_v9  ;;  %v8851_v29 = vld [vmem:[#allocation5 + $0x164] ss:$8 sps:$4 sm:$0xff]   ;;  %v8853_v15 = vld [vmem:[#allocation5 + $0x60] ss:$8 sps:$4 sm:$0xff]   ;;  %v8855_v18 = vld [vmem:[#allocation5 + $0x54] ss:$8 sps:$4 sm:$0xff]  }
0x5eda   :  { %7121 = vmatprep.subr.bf16.mxu1 %v8845_v14  ;;  %7079 = vmatpush1.bf16.msra.mxu0 %v8847_v20  ;;  %v8854_v42 = vld [vmem:[#allocation5 + $0x160] ss:$8 sps:$4 sm:$0xff]   ;;  %v8857_v57 = vld [vmem:[#allocation5 + $0x154] ss:$8 sps:$4 sm:$0xff]   ;;  %v8859_v49 = vld [vmem:[#allocation5 + $0x50] ss:$8 sps:$4 sm:$0xff]  }
0x5edb   :  { %7122 = vmatpush1.bf16.msra.mxu1 %v8848_v30  ;;  %7080 = vmatprep.subr.bf16.mxu0 %v8849_v38  ;;  %v8860_v58 = vld [vmem:[#allocation5 + $0x150] ss:$8 sps:$4 sm:$0xff]   ;;  %v8861_v45 = vld [vmem:[#allocation5 + $0x44] ss:$8 sps:$4 sm:$0xff]   ;;  %v8865_v19 = vld [vmem:[#allocation5 + $0x40] ss:$8 sps:$4 sm:$0xff]  }
0x5edc   :  { %7123 = vmatprep.subr.bf16.mxu1 %v8851_v29  ;;  %v8863_v61 = vld [vmem:[#allocation5 + $0x144] ss:$8 sps:$4 sm:$0xff]   ;;  %v8866_v10 = vld [vmem:[#allocation5 + $0x140] ss:$8 sps:$4 sm:$0xff]   ;;  %v8867_v28 = vld [vmem:[#allocation5 + $0x34] ss:$8 sps:$4 sm:$0xff]  }
0x5edd   :  { %v8869_v17 = vld [vmem:[#allocation5 + $0x134] ss:$8 sps:$4 sm:$0xff]   ;;  %v8871_v31 = vld [vmem:[#allocation5 + $0x30] ss:$8 sps:$4 sm:$0xff]   ;;  %v8873_v37 = vld [vmem:[#allocation5 + $0x24] ss:$8 sps:$4 sm:$0xff]  }
0x5ede   :  { %7081 = vmatpush1.bf16.msra.mxu0 %v8853_v15  ;;  %v8872_v35 = vld [vmem:[#allocation5 + $0x130] ss:$8 sps:$4 sm:$0xff]   ;;  %v8875_v48 = vld [vmem:[#allocation5 + $0x124] ss:$8 sps:$4 sm:$0xff]   ;;  %v8877_v54 = vld [vmem:[#allocation5 + $0x20] ss:$8 sps:$4 sm:$0xff]  }
0x5edf   :  { %7124 = vmatpush1.bf16.msra.mxu1 %v8854_v42  ;;  %7082 = vmatprep.subr.bf16.mxu0 %v8855_v18  ;;  %v8878_v56 = vld [vmem:[#allocation5 + $0x120] ss:$8 sps:$4 sm:$0xff]   ;;  %v8879_v0 = vld [vmem:[#allocation5 + $0x14] ss:$8 sps:$4 sm:$0xff]   ;;  %v8883_v6 = vld [vmem:[#allocation5 + $0x10] ss:$8 sps:$4 sm:$0xff]  }
0x5ee0   :  { %7125 = vmatprep.subr.bf16.mxu1 %v8857_v57  ;;  %v8881_v44 = vld [vmem:[#allocation5 + $0x114] ss:$8 sps:$4 sm:$0xff]   ;;  %v8884_v16 = vld [vmem:[#allocation5 + $0x110] ss:$8 sps:$4 sm:$0xff]   ;;  %v8885_v55 = vld [vmem:[#allocation5 + $0x4] ss:$8 sps:$4 sm:$0xff]  }
0x5ee1   :  { %v8887_v43 = vld [vmem:[#allocation5 + $0x104] ss:$8 sps:$4 sm:$0xff]   ;;  %v8889_v22 = vld [vmem:[#allocation5] ss:$8 sps:$4 sm:$0xff]   ;;  %v8891_v23 = vld [vmem:[#allocation5 + $0xf4] ss:$8 sps:$4 sm:$0xff]  }
0x5ee2   :  { %7083 = vmatpush1.bf16.msra.mxu0 %v8859_v49  ;;  %v8890_v24 = vld [vmem:[#allocation5 + $0x100] ss:$8 sps:$4 sm:$0xff]   ;;  %v8893_v34 = vld [vmem:[#allocation5 + $0x1f4] ss:$8 sps:$4 sm:$0xff]   ;;  %v8895_v59 = vld [vmem:[#allocation5 + $0xf0] ss:$8 sps:$4 sm:$0xff]   ;;  %v6678_v49 = vpack.c.bf16 %v6670_v12, %v6666_v41 }
0x5ee3   :  { %7126 = vmatpush1.bf16.msra.mxu1 %v8860_v58  ;;  %7084 = vmatprep.subr.bf16.mxu0 %v8861_v45  ;;  %v8896_v13 = vld [vmem:[#allocation5 + $0x1f0] ss:$8 sps:$4 sm:$0xff]   ;;  %v8897_v26 = vld [vmem:[#allocation5 + $0xe4] ss:$8 sps:$4 sm:$0xff]   ;;  %v8901_v46 = vld [vmem:[#allocation5 + $0xe0] ss:$8 sps:$4 sm:$0xff]   ;;  %v6680_v58 = vpack.c.bf16 %v6672_v25, %v6668_v47 }
0x5ee4   :  { %7127 = vmatprep.subr.bf16.mxu1 %v8863_v61  ;;  %v8899_v60 = vld [vmem:[#allocation5 + $0x1e4] ss:$8 sps:$4 sm:$0xff]   ;;  %v8902_v33 = vld [vmem:[#allocation5 + $0x1e0] ss:$8 sps:$4 sm:$0xff]   ;;  %v8903_v11 = vld [vmem:[#allocation5 + $0xd4] ss:$8 sps:$4 sm:$0xff]  }
0x5ee5   :  { %v8905_v53 = vld [vmem:[#allocation5 + $0x1d4] ss:$8 sps:$4 sm:$0xff]   ;;  %v8907_v50 = vld [vmem:[#allocation5 + $0xd0] ss:$8 sps:$4 sm:$0xff]   ;;  %v8909_v5 = vld [vmem:[#allocation5 + $0xc4] ss:$8 sps:$4 sm:$0xff]  }
0x5ee6   :  { %7085 = vmatpush1.bf16.msra.mxu0 %v8865_v19  ;;  %v8908_v7 = vld [vmem:[#allocation5 + $0x1d0] ss:$8 sps:$4 sm:$0xff]   ;;  %v8911_v40 = vld [vmem:[#allocation5 + $0x1c4] ss:$8 sps:$4 sm:$0xff]   ;;  %v8913_v21 = vld [vmem:[#allocation5 + $0xc0] ss:$8 sps:$4 sm:$0xff]  }
0x5ee7   :  { %7128 = vmatpush1.bf16.msra.mxu1 %v8866_v10  ;;  %7086 = vmatprep.subr.bf16.mxu0 %v8867_v28  ;;  %v8914_v1 = vld [vmem:[#allocation5 + $0x1c0] ss:$8 sps:$4 sm:$0xff]   ;;  %v8915_v3 = vld [vmem:[#allocation5 + $0xb4] ss:$8 sps:$4 sm:$0xff]   ;;  %v8919_v4 = vld [vmem:[#allocation5 + $0xb0] ss:$8 sps:$4 sm:$0xff]  }
0x5ee8   :  { %7129 = vmatprep.subr.bf16.mxu1 %v8869_v17  ;;  %v8917_v32 = vld [vmem:[#allocation5 + $0x1b4] ss:$8 sps:$4 sm:$0xff]   ;;  %v8920_v8 = vld [vmem:[#allocation5 + $0x1b0] ss:$8 sps:$4 sm:$0xff]   ;;  %v8921_v52 = vld [vmem:[#allocation5 + $0xa4] ss:$8 sps:$4 sm:$0xff]  }
0x5ee9   :  { %v8923_v9 = vld [vmem:[#allocation5 + $0x1a4] ss:$8 sps:$4 sm:$0xff]   ;;  %v8925_v39 = vld [vmem:[#allocation5 + $0xa0] ss:$8 sps:$4 sm:$0xff]   ;;  %v8927_v20 = vld [vmem:[#allocation5 + $0x94] ss:$8 sps:$4 sm:$0xff]  }
0x5eea   :  { %7087 = vmatpush1.bf16.msra.mxu0 %v8871_v31  ;;  %v8926_v14 = vld [vmem:[#allocation5 + $0x1a0] ss:$8 sps:$4 sm:$0xff]   ;;  %v8929_v30 = vld [vmem:[#allocation5 + $0x194] ss:$8 sps:$4 sm:$0xff]   ;;  %v8931_v38 = vld [vmem:[#allocation5 + $0x90] ss:$8 sps:$4 sm:$0xff]  }
0x5eeb   :  { %7130 = vmatpush1.bf16.msra.mxu1 %v8872_v35  ;;  %7088 = vmatprep.subr.bf16.mxu0 %v8873_v37  ;;  %v8932_v29 = vld [vmem:[#allocation5 + $0x190] ss:$8 sps:$4 sm:$0xff]   ;;  %v8933_v15 = vld [vmem:[#allocation5 + $0x84] ss:$8 sps:$4 sm:$0xff]   ;;  %v8937_v18 = vld [vmem:[#allocation5 + $0x80] ss:$8 sps:$4 sm:$0xff]  }
0x5eec   :  { %7131 = vmatprep.subr.bf16.mxu1 %v8875_v48  ;;  %v8935_v42 = vld [vmem:[#allocation5 + $0x184] ss:$8 sps:$4 sm:$0xff]   ;;  %v8938_v57 = vld [vmem:[#allocation5 + $0x180] ss:$8 sps:$4 sm:$0xff]   ;;  %v6746_v45 = vld [vmem:[%s10222_s13] sm:$0x3] }
0x5eed   :  { %v6751_v61 = vrot.slane %v6746_v45, %v9320_v27  ;;  %v6755_v62 = vrot.slane %v6746_v45, %v9323_v36  ;;  %s9186_s2 = smov [#allocation20]  }
0x5eee   :  { %7089 = vmatpush1.bf16.msra.mxu0 %v8877_v54  ;;  %s7174_s15 = sshll.u32 %s9186_s2, 4  ;;  %s7175_s15 = int_to_ptr.vmem [resolvable:$true] %s7174_s15 }
0x5eef   :  { %7132 = vmatpush1.bf16.msra.mxu1 %v8878_v56  ;;  %7090 = vmatprep.subr.bf16.mxu0 %v8879_v0  ;;  %s9127_s13 = scalar_lea.vmem %s7175_s15, 512  ;;  %p9132_p4 = scmp.lt.s32.totalorder %s7175_s15, %s7175_s15 }
0x5ef0   :  { %7133 = vmatprep.subr.bf16.mxu1 %v8881_v44  ;;  %p9128_p3 = scmp.ne.s32.totalorder %s7175_s15, %s9127_s13  ;;  %p9133_p5 = scmp.lt.s32.totalorder %s9127_s13, %s9127_s13 }
0x5ef2   :  { %7091 = vmatpush1.bf16.msra.mxu0 %v8883_v6  ;;  %p9134_p6 = por %p9133_p5, %p9132_p4 }
0x5ef3   :  { %7134 = vmatpush1.bf16.msra.mxu1 %v8884_v16  ;;  %7092 = vmatprep.subr.bf16.mxu0 %v8885_v55 }
0x5ef4   :  { %7135 = vmatprep.subr.bf16.mxu1 %v8887_v43  ;;  %p9135_p7 = pnand %p9134_p6, %p9128_p3 }
0x5ef6   :  { %7093 = vmatpush1.bf16.msra.mxu0 %v8889_v22 }
0x5ef7   :  { %7136 = vmatpush1.bf16.msra.mxu1 %v8890_v24  ;;  %7094 = vmatprep.subr.bf16.mxu0 %v8891_v23 }
0x5ef8   :  { %7137 = vmatprep.subr.bf16.mxu1 %v8893_v34 }
0x5efa   :  { %7095 = vmatpush2.bf16.msra.mxu0 %v8895_v59 }
0x5efb   :  { %7138 = vmatpush2.bf16.msra.mxu1 %v8896_v13  ;;  %7096 = vmatprep.subr.bf16.mxu0 %v8897_v26 }
0x5efc   :  { %7139 = vmatprep.subr.bf16.mxu1 %v8899_v60 }
0x5efe   :  { %7097 = vmatpush2.bf16.msra.mxu0 %v8901_v46 }
0x5eff   :  { %7140 = vmatpush2.bf16.msra.mxu1 %v8902_v33  ;;  %7098 = vmatprep.subr.bf16.mxu0 %v8903_v11 }
0x5f00   :  { %7141 = vmatprep.subr.bf16.mxu1 %v8905_v53 }
0x5f02   :  { %7099 = vmatpush2.bf16.msra.mxu0 %v8907_v50 }
0x5f03   :  { %7142 = vmatpush2.bf16.msra.mxu1 %v8908_v7  ;;  %7100 = vmatprep.subr.bf16.mxu0 %v8909_v5 }
0x5f04   :  { %7143 = vmatprep.subr.bf16.mxu1 %v8911_v40 }
0x5f06   :  { %7101 = vmatpush2.bf16.msra.mxu0 %v8913_v21 }
0x5f07   :  { %7144 = vmatpush2.bf16.msra.mxu1 %v8914_v1  ;;  %7102 = vmatprep.subr.bf16.mxu0 %v8915_v3 }
0x5f08   :  { %7145 = vmatprep.subr.bf16.mxu1 %v8917_v32 }
0x5f0a   :  { %7103 = vmatpush2.bf16.msra.mxu0 %v8919_v4 }
0x5f0b   :  { %7146 = vmatpush2.bf16.msra.mxu1 %v8920_v8  ;;  %7104 = vmatprep.subr.bf16.mxu0 %v8921_v52 }
0x5f0c   :  { %7147 = vmatprep.subr.bf16.mxu1 %v8923_v9 }
0x5f0e   :  { %7105 = vmatpush2.bf16.msra.mxu0 %v8925_v39 }
0x5f0f   :  { %7148 = vmatpush2.bf16.msra.mxu1 %v8926_v14  ;;  %7106 = vmatprep.subr.bf16.mxu0 %v8927_v20 }
0x5f10   :  { %7149 = vmatprep.subr.bf16.mxu1 %v8929_v30 }
0x5f12   :  { %7107 = vmatpush2.bf16.msra.mxu0 %v8931_v38 }
0x5f13   :  { %7150 = vmatpush2.bf16.msra.mxu1 %v8932_v29  ;;  %7108 = vmatprep.subr.bf16.mxu0 %v8933_v15 }
0x5f14   :  { %7151 = vmatprep.subr.bf16.mxu1 %v8935_v42 }
0x5f16   :  { %7109 = vmatpush2.bf16.msra.mxu0 %v8937_v18 }
0x5f17   :  { %7152 = vmatpush2.bf16.msra.mxu1 %v8938_v57 }
0x5f19   :  { %7111 = vmatmul.mubr.bf16.vlgmr.msra.gmra.mxu0 %v6678_v49 }
0x5f1a   :  { %7154 = vmatmul.mubr.bf16.vlgmr.msra.gmra.mxu1 %v6680_v58 }
0x5fd9   :  { %v7112_v19 = vpop.f32.mrf.mxu0 }
0x5fda   :  { %v7155_v63 = vpop.f32.mrf.mxu1  ;;  %v7113_v41 = vadd.f32 %v7112_v19, %v6751_v61 }
0x5fdb   :  { %v7114_v12 = vpop.f32.mrf.mxu0 }
0x5fdc   :  { %v7157_v51 = vpop.f32.mrf.mxu1  ;;  %v7156_v10 = vadd.f32 %v7155_v63, %v7113_v41  ;;  %v7115_v2 = vadd.f32 %v7114_v12, %v6755_v62 }
0x5fdd   :  { %v7116_v47 = vpop.f32.mrf.mxu0 }
0x5fde   :  { %v7159_v25 = vpop.f32.mrf.mxu1  ;;  %7164 = vst [vmem:[#allocation20] sm:$0xff] %v7156_v10  ;;  %v7158_v28 = vadd.f32 %v7157_v51, %v7115_v2  ;;  %v7117_v17 = vadd.f32 %v7116_v47, %v6751_v61 }
0x5fdf   :  { %v7118_v31 = vpop.f32.mrf.mxu0 }
0x5fe0   :  { %7165 = vst [vmem:[#allocation20 + $0x8] sm:$0xff] %v7158_v28  ;;  %v7160_v35 = vadd.f32 %v7159_v25, %v7117_v17  ;;  %v7119_v27 = vadd.f32 %v7118_v31, %v6755_v62  ;;  %v7161_v37 = vpop.f32.mrf.mxu1 }
0x5fe2   :  { %7167 = vst [vmem:[#allocation20 + $0x10] sm:$0xff] %v7160_v35  ;;  %v7162_v36 = vadd.f32 %v7161_v37, %v7119_v27 }
0x5fe4   :  { %7168 = vst [vmem:[#allocation20 + $0x18] sm:$0xff] %v7162_v36 }
0x5fe5   :  { %9138 = shalt.err (!%p9135_p7)
}
0x5fe6   :  { %s9187_s17 = smov 256  }
0x5fe7   :  { %7180 = dma.vmem_to_hbm [thread:$0]  %s7175_s15, 512, %s10223_s14, [#allocation9], %s9187_s17, %s9187_s17, %s9169_s23  }
0x5fe8   :  { %9163 = dma.done.wait [#allocation9], 512  }
0x5fe9   :  { %9164 = vsyncadd [#allocation9], 4294966784 }
0x5fea   :  { %7184 = vsyncpa [#allocation8], 1 }
0x5feb   :  { %7185 = vsyncpa [#allocation13], 1 }
0x5fec   :  { %7186 = vsyncpa [#allocation16], 1 }
0x5fed   :  { %7187 = vsyncpa [#allocation19], 1 }
0x5fee   :  { %7188 = vsyncpa [#allocation9], 1 }
0x5fef   :  { %7189 = vsyncpa [#allocation10], 1 }
0x5ff0   :  { %7190 = vsyncmov [#allocation6] }
0x5ff3   :  { %s7191_s20 = vpop.sfrf %7190 }
0x5ff4   :  { %p7663_p8 = scmp.ne.s32.totalorder %s7191_s20, 0 }
0x5ff6   :  { %7195 = shalt.err (%p7663_p8)  }
0x5ff7   :  { %7197 = vsyncmov [#allocation6 + $0x1] }
0x5ffa   :  { %s7198_s21 = vpop.sfrf %7197 }
0x5ffb   :  { %p7664_p9 = scmp.ne.s32.totalorder %s7198_s21, 0 }
0x5ffd   :  { %7202 = shalt.err (%p7664_p9)  }
0x5ffe   :  { %7204 = vsyncmov [#allocation6 + $0x2] }
0x6001   :  { %s7205_s22 = vpop.sfrf %7204 }
0x6002   :  { %p7665_p10 = scmp.ne.s32.totalorder %s7205_s22, 0 }
0x6004   :  { %7209 = shalt.err (%p7665_p10)  }

</bundles_post_ra>
